<compile_context>
chip_gen: v5e
topology: v5e:2x2
jax: 0.10.0
libtpu: 0.0.40
codegen_flags: <defaults>
</compile_context>

<pallas_src>
import functools

import jax
import jax.numpy as jnp
from jax import lax
from jax.experimental import pallas as pl
from jax.experimental.pallas import tpu as pltpu

EPS = 1e-5
LANE = 128


# ---------------------------------------------------------------------------
# Kernels
# ---------------------------------------------------------------------------
def _mm_stats_kernel(x_ref, w_ref, y_ref, sum_ref, ssq_ref):
    """y = x @ w (bf16 MXU, f32 acc) + per-channel sum / sum-of-squares."""
    @pl.when(pl.program_id(0) == 0)
    def _init():
        sum_ref[...] = jnp.zeros_like(sum_ref)
        ssq_ref[...] = jnp.zeros_like(ssq_ref)

    y = jnp.dot(x_ref[...], w_ref[...], preferred_element_type=jnp.float32)
    y_ref[...] = y.astype(y_ref.dtype)
    sum_ref[...] += jnp.sum(y, axis=0, keepdims=True)
    ssq_ref[...] += jnp.sum(y * y, axis=0, keepdims=True)


def _mm_stats_split_kernel(split, x_ref, w_ref, y_ref, r_ref, sum_ref, ssq_ref):
    """Fused conv1 + residual projection: one matmul over [w1 | wr], the
    column halves are written to two separate bf16 outputs."""
    @pl.when(pl.program_id(0) == 0)
    def _init():
        sum_ref[...] = jnp.zeros_like(sum_ref)
        ssq_ref[...] = jnp.zeros_like(ssq_ref)

    y = jnp.dot(x_ref[...], w_ref[...], preferred_element_type=jnp.float32)
    y_ref[...] = y[:, :split].astype(y_ref.dtype)       # lane-aligned slices
    r_ref[...] = y[:, split:].astype(r_ref.dtype)
    sum_ref[...] += jnp.sum(y, axis=0, keepdims=True)
    ssq_ref[...] += jnp.sum(y * y, axis=0, keepdims=True)


def _affine_mm_stats_kernel(x_ref, a_ref, c_ref, w_ref, y_ref, sum_ref, ssq_ref):
    """y = relu(x*a + c) @ w (previous stage's BN folded in) + batch stats."""
    @pl.when(pl.program_id(0) == 0)
    def _init():
        sum_ref[...] = jnp.zeros_like(sum_ref)
        ssq_ref[...] = jnp.zeros_like(ssq_ref)

    z = jnp.maximum(x_ref[...].astype(jnp.float32) * a_ref[...] + c_ref[...], 0.0)
    y = jnp.dot(z.astype(jnp.bfloat16), w_ref[...],
                preferred_element_type=jnp.float32)
    y_ref[...] = y.astype(y_ref.dtype)
    sum_ref[...] += jnp.sum(y, axis=0, keepdims=True)
    ssq_ref[...] += jnp.sum(y * y, axis=0, keepdims=True)


def _conv3x3_kernel(h_chunk, W, n_chunks, *refs):
    """One (image, row-chunk) per grid step.  z = relu(y1*a + c); y2 =
    conv3x3(z) as 9 shifted bf16 matmuls accumulated in f32; per-channel
    sum/sumsq accumulated across the whole grid.  Halos arrive as 1-row DMAs
    and are masked to zero at image borders."""
    if n_chunks > 1:
        (y_ref, top_ref, bot_ref, a_ref, c_ref, w_ref,
         y2_ref, sum_ref, ssq_ref, pad_ref) = refs
    else:
        (y_ref, a_ref, c_ref, w_ref,
         y2_ref, sum_ref, ssq_ref, pad_ref) = refs
        top_ref = bot_ref = None

    C = a_ref.shape[1]
    ci = pl.program_id(1)

    @pl.when((pl.program_id(0) == 0) & (ci == 0))
    def _init():
        sum_ref[...] = jnp.zeros_like(sum_ref)
        ssq_ref[...] = jnp.zeros_like(ssq_ref)

    a = a_ref[...]            # (1, C)
    b = c_ref[...]

    def bn_relu(t):           # t: (rows, C) bf16 -> f32
        return jnp.maximum(t.astype(jnp.float32) * a + b, 0.0)

    zero_row = jnp.zeros((W, C), jnp.float32)
    if top_ref is None:                       # single chunk: both halos are pad
        z_top = zero_row
        z_bot = zero_row
    else:
        z_top = jnp.where(ci > 0, bn_relu(top_ref[...]), zero_row)
        z_bot = jnp.where(ci < n_chunks - 1, bn_relu(bot_ref[...]), zero_row)

    # Left/right 1-pixel halo columns: re-zero every step (2*(h+2) rows, cheap)
    # so correctness never depends on scratch persistence across variants.
    pad_ref[:, 0:1, :] = jnp.zeros((h_chunk + 2, 1, C), pad_ref.dtype)
    pad_ref[:, W + 1:W + 2, :] = jnp.zeros((h_chunk + 2, 1, C), pad_ref.dtype)
    pad_ref[0:1, 1:W + 1, :] = z_top.reshape(1, W, C)
    pad_ref[1:h_chunk + 1, 1:W + 1, :] = bn_relu(y_ref[...]).reshape(h_chunk, W, C)
    pad_ref[h_chunk + 1:h_chunk + 2, 1:W + 1, :] = z_bot.reshape(1, W, C)

    acc = jnp.zeros((h_chunk * W, C), jnp.float32)
    for dy in range(3):
        for dx in range(3):
            k = dy * 3 + dx
            win = pad_ref[dy:dy + h_chunk, dx:dx + W, :].reshape(h_chunk * W, C)
            acc = acc + jnp.dot(win.astype(jnp.bfloat16),
                                w_ref[k * C:(k + 1) * C, :],
                                preferred_element_type=jnp.float32)

    y2_ref[...] = acc.astype(y2_ref.dtype)
    sum_ref[...] += jnp.sum(acc, axis=0, keepdims=True)
    ssq_ref[...] += jnp.sum(acc * acc, axis=0, keepdims=True)


def _residual_out_kernel(t_ref, a_ref, c_ref, r_ref, ar_ref, cr_ref, out_ref):
    """out = relu((t*a + c) + (r*ar + cr)); identity residual uses ar=1, cr=0."""
    t = t_ref[...].astype(jnp.float32) * a_ref[...] + c_ref[...]
    r = r_ref[...].astype(jnp.float32) * ar_ref[...] + cr_ref[...]
    out_ref[...] = jnp.maximum(t + r, 0.0)


# ---------------------------------------------------------------------------
# pallas_call wrappers
# ---------------------------------------------------------------------------
def _conv1_call(x2d, w, tr):
    R, cin_p = x2d.shape
    cout_p = w.shape[1]
    return pl.pallas_call(
        _mm_stats_kernel,
        grid=(R // tr,),
        in_specs=[
            pl.BlockSpec((tr, cin_p), lambda i: (i, 0)),
            pl.BlockSpec((cin_p, cout_p), lambda i: (0, 0)),
        ],
        out_specs=(
            pl.BlockSpec((tr, cout_p), lambda i: (i, 0)),
            pl.BlockSpec((1, cout_p), lambda i: (0, 0)),
            pl.BlockSpec((1, cout_p), lambda i: (0, 0)),
        ),
        out_shape=(
            jax.ShapeDtypeStruct((R, cout_p), jnp.bfloat16),
            jax.ShapeDtypeStruct((1, cout_p), jnp.float32),
            jax.ShapeDtypeStruct((1, cout_p), jnp.float32),
        ),
        compiler_params=pltpu.CompilerParams(
            dimension_semantics=("arbitrary",)),   # BN stats accumulate over tiles
    )(x2d, w)


def _conv1_fused_call(x2d, w_cat, split, tr):
    R, cin_p = x2d.shape
    ncols = w_cat.shape[1]
    rcols = ncols - split
    kernel = functools.partial(_mm_stats_split_kernel, split)
    return pl.pallas_call(
        kernel,
        grid=(R // tr,),
        in_specs=[
            pl.BlockSpec((tr, cin_p), lambda i: (i, 0)),
            pl.BlockSpec((cin_p, ncols), lambda i: (0, 0)),
        ],
        out_specs=(
            pl.BlockSpec((tr, split), lambda i: (i, 0)),
            pl.BlockSpec((tr, rcols), lambda i: (i, 0)),
            pl.BlockSpec((1, ncols), lambda i: (0, 0)),
            pl.BlockSpec((1, ncols), lambda i: (0, 0)),
        ),
        out_shape=(
            jax.ShapeDtypeStruct((R, split), jnp.bfloat16),
            jax.ShapeDtypeStruct((R, rcols), jnp.bfloat16),
            jax.ShapeDtypeStruct((1, ncols), jnp.float32),
            jax.ShapeDtypeStruct((1, ncols), jnp.float32),
        ),
        compiler_params=pltpu.CompilerParams(
            dimension_semantics=("arbitrary",)),
    )(x2d, w_cat)


def _affine_mm_call(x2d, a, c, w, tr):
    R, cin_p = x2d.shape
    cout_p = w.shape[1]
    return pl.pallas_call(
        _affine_mm_stats_kernel,
        grid=(R // tr,),
        in_specs=[
            pl.BlockSpec((tr, cin_p), lambda i: (i, 0)),
            pl.BlockSpec((1, cin_p), lambda i: (0, 0)),
            pl.BlockSpec((1, cin_p), lambda i: (0, 0)),
            pl.BlockSpec((cin_p, cout_p), lambda i: (0, 0)),
        ],
        out_specs=(
            pl.BlockSpec((tr, cout_p), lambda i: (i, 0)),
            pl.BlockSpec((1, cout_p), lambda i: (0, 0)),
            pl.BlockSpec((1, cout_p), lambda i: (0, 0)),
        ),
        out_shape=(
            jax.ShapeDtypeStruct((R, cout_p), jnp.bfloat16),
            jax.ShapeDtypeStruct((1, cout_p), jnp.float32),
            jax.ShapeDtypeStruct((1, cout_p), jnp.float32),
        ),
        compiler_params=pltpu.CompilerParams(
            dimension_semantics=("arbitrary",)),
    )(x2d, a, c, w)


def _conv3x3_call(y1, a, c, w2, N, H, W, h_chunk):
    R, C = y1.shape
    n_chunks = H // h_chunk
    rows = h_chunk * W
    kernel = functools.partial(_conv3x3_kernel, h_chunk, W, n_chunks)

    in_specs = [pl.BlockSpec((rows, C), lambda n, i: (n * n_chunks + i, 0))]
    args = [y1]
    if n_chunks > 1:
        # 1-row halos above / below the chunk (clamped at image borders; the
        # kernel masks the clamped rows to zero).
        in_specs += [
            pl.BlockSpec((W, C),
                         lambda n, i: (n * H + jnp.maximum(i * h_chunk - 1, 0), 0)),
            pl.BlockSpec((W, C),
                         lambda n, i: (n * H + jnp.minimum((i + 1) * h_chunk, H - 1), 0)),
        ]
        args += [y1, y1]
    in_specs += [
        pl.BlockSpec((1, C), lambda n, i: (0, 0)),
        pl.BlockSpec((1, C), lambda n, i: (0, 0)),
        pl.BlockSpec((9 * C, C), lambda n, i: (0, 0)),
    ]
    args += [a, c, w2]

    return pl.pallas_call(
        kernel,
        grid=(N, n_chunks),
        in_specs=in_specs,
        out_specs=(
            pl.BlockSpec((rows, C), lambda n, i: (n * n_chunks + i, 0)),
            pl.BlockSpec((1, C), lambda n, i: (0, 0)),
            pl.BlockSpec((1, C), lambda n, i: (0, 0)),
        ),
        out_shape=(
            jax.ShapeDtypeStruct((R, C), jnp.bfloat16),
            jax.ShapeDtypeStruct((1, C), jnp.float32),
            jax.ShapeDtypeStruct((1, C), jnp.float32),
        ),
        scratch_shapes=[
            pltpu.VMEM((h_chunk + 2, W + 2, C), jnp.float32),  # padded chunk
        ],
        compiler_params=pltpu.CompilerParams(
            dimension_semantics=("arbitrary", "arbitrary")),
    )(*args)


def _residual_out_call(t, a, c, r, ar, cr, tr):
    R, C = t.shape
    return pl.pallas_call(
        _residual_out_kernel,
        grid=(R // tr,),
        in_specs=[
            pl.BlockSpec((tr, C), lambda i: (i, 0)),
            pl.BlockSpec((1, C), lambda i: (0, 0)),
            pl.BlockSpec((1, C), lambda i: (0, 0)),
            pl.BlockSpec((tr, C), lambda i: (i, 0)),
            pl.BlockSpec((1, C), lambda i: (0, 0)),
            pl.BlockSpec((1, C), lambda i: (0, 0)),
        ],
        out_specs=pl.BlockSpec((tr, C), lambda i: (i, 0)),
        out_shape=jax.ShapeDtypeStruct((R, C), jnp.float32),
        compiler_params=pltpu.CompilerParams(
            dimension_semantics=("parallel",)),
    )(t, a, c, r, ar, cr)


# ---------------------------------------------------------------------------
# Host-side helpers
# ---------------------------------------------------------------------------
def _pad128(c):
    return ((c + LANE - 1) // LANE) * LANE


def _pad2d_bf16(m, rows, cols):
    m = m.astype(jnp.float32)
    m = jnp.pad(m, ((0, rows - m.shape[0]), (0, cols - m.shape[1])))
    return m.astype(jnp.bfloat16)


def _pad_gamma_beta(g, b, c_p):
    c = g.shape[0]
    g_p = jnp.pad(g.astype(jnp.float32), (0, c_p - c),
                  constant_values=1.0).reshape(1, c_p)
    b_p = jnp.pad(b.astype(jnp.float32), (0, c_p - c)).reshape(1, c_p)
    return g_p, b_p


def _bn_scale_shift(ssum, ssq, gamma, beta, count):
    """Fold train-mode BN (batch mean, biased var) into y*scale + shift."""
    mean = ssum / count
    var = jnp.maximum(ssq / count - mean * mean, 0.0)   # clamp: bf16 matmul noise
    scale = gamma * lax.rsqrt(var + EPS)
    shift = beta - mean * scale
    return scale, shift


def _row_tile(rows, max_tile=1024):
    """Largest multiple-of-8 divisor of `rows` that is <= max_tile."""
    assert rows % 8 == 0, "N*H*W must be a multiple of 8 for (8,128) tiling"
    best = 8
    for t in range(8, min(rows, max_tile) + 1, 8):
        if rows % t == 0:
            best = t
    return best


def _h_chunk(H, W, max_rows=512):
    """Row-chunk height for the 3x3-conv stage.

    Chunking bounds the VMEM scratch independently of H*W and gives the
    pipeline N * n_chunks steps.  Halo row-blocks need W % 8 == 0; otherwise
    we fall back to whole images per step."""
    if W % 8 == 0:
        best = 0
        for h in range(1, H // 2 + 1):            # >=2 chunks when possible
            if H % h == 0 and (h * W) % 8 == 0 and h * W <= max_rows:
                best = h
        if best:
            return best
    return H


# ---------------------------------------------------------------------------
# Forward pass
# ---------------------------------------------------------------------------
def btnk_forward(x_nchw, params, inplanes, planes, outplanes):
    N, Cin, H, W = x_nchw.shape
    assert Cin == inplanes
    use_res_conv = inplanes != outplanes
    R = N * H * W

    cin_p, p_p, cout_p = _pad128(inplanes), _pad128(planes), _pad128(outplanes)
    tr = _row_tile(R)
    h_chunk = _h_chunk(H, W)

    # Activations: NCHW -> NHWC -> lane-dense (R, C_pad) bf16 slab.
    # TODO(synk): if the surrounding model is NHWC these transposes disappear.
    x2d = jnp.transpose(x_nchw, (0, 2, 3, 1)).reshape(R, Cin).astype(jnp.float32)
    x2d = jnp.pad(x2d, ((0, 0), (0, cin_p - Cin))).astype(jnp.bfloat16)

    # Weights: PyTorch (Cout, Cin, kh, kw) -> bf16 matmul layouts, lane-padded.
    w1 = _pad2d_bf16(jnp.transpose(params["w1"][:, :, 0, 0], (1, 0)), cin_p, p_p)
    w2 = jnp.transpose(params["w2"], (2, 3, 1, 0)).astype(jnp.float32)  # (3,3,Cin,Cout)
    w2 = jnp.pad(w2, ((0, 0), (0, 0), (0, p_p - planes), (0, p_p - planes)))
    w2 = w2.reshape(9 * p_p, p_p).astype(jnp.bfloat16)
    w3 = _pad2d_bf16(jnp.transpose(params["w3"][:, :, 0, 0], (1, 0)), p_p, cout_p)

    g1, b1 = _pad_gamma_beta(params["g1"], params["b1"], p_p)
    g2, b2 = _pad_gamma_beta(params["g2"], params["b2"], p_p)
    g3, b3 = _pad_gamma_beta(params["g3"], params["b3"], cout_p)

    # --- net[0:3] (+ residual projection fused): conv1x1 + batch stats -------
    if use_res_conv:
        wr = _pad2d_bf16(jnp.transpose(params["wr"][:, :, 0, 0], (1, 0)),
                         cin_p, cout_p)
        w_cat = jnp.concatenate([w1, wr], axis=1)     # single MXU pass over x
        y1, r, s_cat, q_cat = _conv1_fused_call(x2d, w_cat, p_p, tr)
        gr, br = _pad_gamma_beta(params["gr"], params["br"], cout_p)
        a1, c1 = _bn_scale_shift(s_cat[:, :p_p], q_cat[:, :p_p], g1, b1, R)
        ar, cr = _bn_scale_shift(s_cat[:, p_p:], q_cat[:, p_p:], gr, br, R)
    else:
        y1, s1, q1 = _conv1_call(x2d, w1, tr)
        a1, c1 = _bn_scale_shift(s1, q1, g1, b1, R)
        r = x2d                                       # cin_p == cout_p here
        ar = jnp.ones((1, cout_p), jnp.float32)
        cr = jnp.zeros((1, cout_p), jnp.float32)

    # --- net[3:6]: BN1+ReLU fused into row-chunked conv3x3 (+ batch stats) ---
    y2, s2, q2 = _conv3x3_call(y1, a1, c1, w2, N, H, W, h_chunk)
    a2, c2 = _bn_scale_shift(s2, q2, g2, b2, R)

    # --- net[6:8]: BN2+ReLU fused into conv1x1 (+ batch stats) ---------------
    y3, s3, q3 = _affine_mm_call(y2, a2, c2, w3, tr)
    a3, c3 = _bn_scale_shift(s3, q3, g3, b3, R)

    # --- relu(bn3(y3) + bn_r(residual)), lane-dense output -------------------
    out2d = _residual_out_call(y3, a3, c3, r, ar, cr, tr)
    out = out2d.reshape(N, H, W, cout_p)[:, :, :, :outplanes]
    return jnp.transpose(out, (0, 3, 1, 2))            # back to NCHW


# ---------------------------------------------------------------------------
# Parameter init + pure-JAX reference (f32, HIGHEST precision ground truth)
# ---------------------------------------------------------------------------
def init_params(key, inplanes, planes, outplanes):
    k1, k2, k3, k4 = jax.random.split(key, 4)

    def conv_init(k, shape):  # kaiming-ish, deterministic
        fan_in = shape[1] * shape[2] * shape[3]
        return ((2.0 / fan_in) ** 0.5) * jax.random.normal(k, shape, jnp.float32)

    p = {
        "w1": conv_init(k1, (planes, inplanes, 1, 1)),
        "w2": conv_init(k2, (planes, planes, 3, 3)),
        "w3": conv_init(k3, (outplanes, planes, 1, 1)),
        "g1": jnp.ones((planes,), jnp.float32), "b1": jnp.zeros((planes,), jnp.float32),
        "g2": jnp.ones((planes,), jnp.float32), "b2": jnp.zeros((planes,), jnp.float32),
        "g3": jnp.ones((outplanes,), jnp.float32), "b3": jnp.zeros((outplanes,), jnp.float32),
    }
    if inplanes != outplanes:
        p["wr"] = conv_init(k4, (outplanes, inplanes, 1, 1))
        p["gr"] = jnp.ones((outplanes,), jnp.float32)
        p["br"] = jnp.zeros((outplanes,), jnp.float32)
    return p


def btnk_reference(x_nchw, params, inplanes, planes, outplanes):
    """Pure-JAX reference matching the PyTorch forward (train-mode BN, f32)."""
    x = jnp.transpose(x_nchw, (0, 2, 3, 1)).astype(jnp.float32)
    N, H, W, _ = x.shape
    hp = lax.Precision.HIGHEST

    def bn(t, g, b):
        mean = jnp.mean(t, axis=(0, 1, 2), keepdims=True)
        var = jnp.mean(jnp.square(t - mean), axis=(0, 1, 2), keepdims=True)
        return (t - mean) * lax.rsqrt(var + EPS) * g + b

    def conv1x1(t, w):
        return jnp.einsum("nhwc,oc->nhwo", t, w[:, :, 0, 0], precision=hp)

    def conv3x3(t, w):
        tp = jnp.pad(t, ((0, 0), (1, 1), (1, 1), (0, 0)))
        out = jnp.zeros(t.shape[:3] + (w.shape[0],), jnp.float32)
        for dy in range(3):
            for dx in range(3):
                out = out + jnp.einsum("nhwc,oc->nhwo",
                                       tp[:, dy:dy + H, dx:dx + W, :],
                                       w[:, :, dy, dx], precision=hp)
        return out

    t = jax.nn.relu(bn(conv1x1(x, params["w1"]), params["g1"], params["b1"]))
    t = jax.nn.relu(bn(conv3x3(t, params["w2"]), params["g2"], params["b2"]))
    t = bn(conv1x1(t, params["w3"]), params["g3"], params["b3"])
    if inplanes != outplanes:
        r = bn(conv1x1(x, params["wr"]), params["gr"], params["br"])
    else:
        r = x
    return jnp.transpose(jax.nn.relu(t + r), (0, 3, 1, 2))


if __name__ == "__main__":
    N, H, W = 2, 16, 16
    configs = [
        (4, 4, 8),   # projection residual (1x1 conv + BN, fused into conv1)
        (8, 4, 8),   # identity residual
    ]

    fwd = jax.jit(btnk_forward, static_argnums=(2, 3, 4))
    key = jax.random.PRNGKey(0)
    for inplanes, planes, outplanes in configs:
        key, kx, kp = jax.random.split(key, 3)
        x = jax.random.normal(kx, (N, inplanes, H, W), jnp.float32)
        params = init_params(kp, inplanes, planes, outplanes)

        out = jax.block_until_ready(fwd(x, params, inplanes, planes, outplanes))
        ref = btnk_reference(x, params, inplanes, planes, outplanes)

        assert out.shape == (N, outplanes, H, W)
        assert bool(jnp.all(out >= 0.0))
        # Tolerance sized for bf16 storage + single-pass bf16 MXU matmuls vs.
        # the f32 HIGHEST-precision reference.
        max_err = float(jnp.max(jnp.abs(out - ref)))
        assert jnp.allclose(out, ref, rtol=3e-2, atol=8e-2), max_err

    print("KERNEL_OK")
</pallas_src>

<mosaic_0001>
module attributes {stable_mosaic.version = 11 : i64} {
  func.func @_residual_out_kernel(%arg0: i32, %arg1: memref<512x128xbf16, #tpu.memory_space<vmem>>, %arg2: memref<1x128xf32, #tpu.memory_space<vmem>>, %arg3: memref<1x128xf32, #tpu.memory_space<vmem>>, %arg4: memref<512x128xbf16, #tpu.memory_space<vmem>>, %arg5: memref<1x128xf32, #tpu.memory_space<vmem>>, %arg6: memref<1x128xf32, #tpu.memory_space<vmem>>, %arg7: memref<512x128xf32, #tpu.memory_space<vmem>>) attributes {dimension_semantics = [#tpu.dimension_semantics<parallel>], iteration_bounds = array<i64: 1>, scalar_prefetch = 0 : i64, scratch_operands = 0 : i64, tpu.core_type = #tpu.core_type<tc>, window_params = [{transform_indices = @transform_0, window_bounds = array<i64: 512, 128>}, {pipeline_mode = #tpu.pipeline_mode<synchronous>, transform_indices = @transform_1, window_bounds = array<i64: 1, 128>}, {pipeline_mode = #tpu.pipeline_mode<synchronous>, transform_indices = @transform_2, window_bounds = array<i64: 1, 128>}, {transform_indices = @transform_3, window_bounds = array<i64: 512, 128>}, {pipeline_mode = #tpu.pipeline_mode<synchronous>, transform_indices = @transform_4, window_bounds = array<i64: 1, 128>}, {pipeline_mode = #tpu.pipeline_mode<synchronous>, transform_indices = @transform_5, window_bounds = array<i64: 1, 128>}, {transform_indices = @transform_6, window_bounds = array<i64: 512, 128>}]} {
    %c0 = arith.constant 0 : index
    %c0_0 = arith.constant 0 : index
    %0 = vector.load %arg1[%c0, %c0_0] : memref<512x128xbf16, #tpu.memory_space<vmem>>, vector<512x128xbf16>
    %1 = arith.extf %0 : vector<512x128xbf16> to vector<512x128xf32>
    %c0_1 = arith.constant 0 : index
    %c0_2 = arith.constant 0 : index
    %2 = vector.load %arg2[%c0_1, %c0_2] : memref<1x128xf32, #tpu.memory_space<vmem>>, vector<1x128xf32>
    %3 = vector.broadcast %2 : vector<1x128xf32> to vector<512x128xf32>
    %4 = arith.mulf %1, %3 : vector<512x128xf32>
    %c0_3 = arith.constant 0 : index
    %c0_4 = arith.constant 0 : index
    %5 = vector.load %arg3[%c0_3, %c0_4] : memref<1x128xf32, #tpu.memory_space<vmem>>, vector<1x128xf32>
    %6 = vector.broadcast %5 : vector<1x128xf32> to vector<512x128xf32>
    %7 = arith.addf %4, %6 : vector<512x128xf32>
    %c0_5 = arith.constant 0 : index
    %c0_6 = arith.constant 0 : index
    %8 = vector.load %arg4[%c0_5, %c0_6] : memref<512x128xbf16, #tpu.memory_space<vmem>>, vector<512x128xbf16>
    %9 = arith.extf %8 : vector<512x128xbf16> to vector<512x128xf32>
    %c0_7 = arith.constant 0 : index
    %c0_8 = arith.constant 0 : index
    %10 = vector.load %arg5[%c0_7, %c0_8] : memref<1x128xf32, #tpu.memory_space<vmem>>, vector<1x128xf32>
    %11 = vector.broadcast %10 : vector<1x128xf32> to vector<512x128xf32>
    %12 = arith.mulf %9, %11 : vector<512x128xf32>
    %c0_9 = arith.constant 0 : index
    %c0_10 = arith.constant 0 : index
    %13 = vector.load %arg6[%c0_9, %c0_10] : memref<1x128xf32, #tpu.memory_space<vmem>>, vector<1x128xf32>
    %14 = vector.broadcast %13 : vector<1x128xf32> to vector<512x128xf32>
    %15 = arith.addf %12, %14 : vector<512x128xf32>
    %16 = arith.addf %7, %15 : vector<512x128xf32>
    %cst = arith.constant 0.000000e+00 : f32
    %17 = vector.broadcast %cst : f32 to vector<512x128xf32>
    %18 = arith.maximumf %16, %17 : vector<512x128xf32>
    %c0_11 = arith.constant 0 : index
    %c0_12 = arith.constant 0 : index
    %19 = vector.load %arg7[%c0_11, %c0_12] : memref<512x128xf32, #tpu.memory_space<vmem>>, vector<512x128xf32>
    tpu.vector_store %arg7[%c0_11, %c0_12], %18 {strides = array<i32>} : memref<512x128xf32, #tpu.memory_space<vmem>>, vector<512x128xf32>,
    return
  }
  func.func @transform_0(%arg0: i32) -> (i32, i32) {
    %c0_i32 = arith.constant 0 : i32
    %c0_i32_0 = arith.constant 0 : i32
    return %arg0, %c0_i32 : i32, i32
  }
  func.func @transform_1(%arg0: i32) -> (i32, i32) {
    %c0_i32 = arith.constant 0 : i32
    %c0_i32_0 = arith.constant 0 : i32
    %c0_i32_1 = arith.constant 0 : i32
    return %c0_i32, %c0_i32_0 : i32, i32
  }
  func.func @transform_2(%arg0: i32) -> (i32, i32) {
    %c0_i32 = arith.constant 0 : i32
    %c0_i32_0 = arith.constant 0 : i32
    %c0_i32_1 = arith.constant 0 : i32
    return %c0_i32, %c0_i32_0 : i32, i32
  }
  func.func @transform_3(%arg0: i32) -> (i32, i32) {
    %c0_i32 = arith.constant 0 : i32
    %c0_i32_0 = arith.constant 0 : i32
    return %arg0, %c0_i32 : i32, i32
  }
  func.func @transform_4(%arg0: i32) -> (i32, i32) {
    %c0_i32 = arith.constant 0 : i32
    %c0_i32_0 = arith.constant 0 : i32
    %c0_i32_1 = arith.constant 0 : i32
    return %c0_i32, %c0_i32_0 : i32, i32
  }
  func.func @transform_5(%arg0: i32) -> (i32, i32) {
    %c0_i32 = arith.constant 0 : i32
    %c0_i32_0 = arith.constant 0 : i32
    %c0_i32_1 = arith.constant 0 : i32
    return %c0_i32, %c0_i32_0 : i32, i32
  }
  func.func @transform_6(%arg0: i32) -> (i32, i32) {
    %c0_i32 = arith.constant 0 : i32
    %c0_i32_0 = arith.constant 0 : i32
    return %arg0, %c0_i32 : i32, i32
  }
}

module attributes {stable_mosaic.version = 11 : i64} {
  func.func @_mm_stats_split_kernel(%arg0: i32, %arg1: memref<512x128xbf16, #tpu.memory_space<vmem>>, %arg2: memref<128x256xbf16, #tpu.memory_space<vmem>>, %arg3: memref<512x128xbf16, #tpu.memory_space<vmem>>, %arg4: memref<512x128xbf16, #tpu.memory_space<vmem>>, %arg5: memref<1x256xf32, #tpu.memory_space<vmem>>, %arg6: memref<1x256xf32, #tpu.memory_space<vmem>>) attributes {dimension_semantics = [#tpu.dimension_semantics<arbitrary>], iteration_bounds = array<i64: 1>, scalar_prefetch = 0 : i64, scratch_operands = 0 : i64, tpu.core_type = #tpu.core_type<tc>, window_params = [{transform_indices = @transform_0, window_bounds = array<i64: 512, 128>}, {pipeline_mode = #tpu.pipeline_mode<synchronous>, transform_indices = @transform_1, window_bounds = array<i64: 128, 256>}, {transform_indices = @transform_2, window_bounds = array<i64: 512, 128>}, {transform_indices = @transform_3, window_bounds = array<i64: 512, 128>}, {pipeline_mode = #tpu.pipeline_mode<synchronous>, transform_indices = @transform_4, window_bounds = array<i64: 1, 256>}, {pipeline_mode = #tpu.pipeline_mode<synchronous>, transform_indices = @transform_5, window_bounds = array<i64: 1, 256>}]} {
    %c0_i32 = arith.constant 0 : i32
    %0 = arith.cmpi eq, %arg0, %c0_i32 : i32
    %1 = arith.extui %0 : i1 to i32
    %c0_i32_0 = arith.constant 0 : i32
    %2 = arith.cmpi ne, %1, %c0_i32_0 : i32
    scf.if %2 {
      %cst_18 = arith.constant 0.000000e+00 : f32
      %23 = vector.broadcast %cst_18 : f32 to vector<1x256xf32>
      %c0_19 = arith.constant 0 : index
      %c0_20 = arith.constant 0 : index
      %24 = vector.load %arg5[%c0_19, %c0_20] : memref<1x256xf32, #tpu.memory_space<vmem>>, vector<1x256xf32>
      tpu.vector_store %arg5[%c0_19, %c0_20], %23 {strides = array<i32>} : memref<1x256xf32, #tpu.memory_space<vmem>>, vector<1x256xf32>,
      %cst_21 = arith.constant 0.000000e+00 : f32
      %25 = vector.broadcast %cst_21 : f32 to vector<1x256xf32>
      %c0_22 = arith.constant 0 : index
      %c0_23 = arith.constant 0 : index
      %26 = vector.load %arg6[%c0_22, %c0_23] : memref<1x256xf32, #tpu.memory_space<vmem>>, vector<1x256xf32>
      tpu.vector_store %arg6[%c0_22, %c0_23], %25 {strides = array<i32>} : memref<1x256xf32, #tpu.memory_space<vmem>>, vector<1x256xf32>,
    } else {
    }
    %c0 = arith.constant 0 : index
    %c0_1 = arith.constant 0 : index
    %3 = vector.load %arg1[%c0, %c0_1] : memref<512x128xbf16, #tpu.memory_space<vmem>>, vector<512x128xbf16>
    %c0_2 = arith.constant 0 : index
    %c0_3 = arith.constant 0 : index
    %4 = vector.load %arg2[%c0_2, %c0_3] : memref<128x256xbf16, #tpu.memory_space<vmem>>, vector<128x256xbf16>
    %cst = arith.constant dense<0.000000e+00> : vector<512x256xf32>
    %5 = tpu.matmul %3, %4, %cst {dimension_numbers = #tpu.dot_dimension_numbers<[1], [0], [0], [1], [0, 0, 1, 1], [], []>} : vector<512x128xbf16>, vector<128x256xbf16>, vector<512x256xf32> -> vector<512x256xf32>
    %6 = vector.extract_strided_slice %5 {offsets = [0, 0], sizes = [512, 128], strides = [1, 1]} : vector<512x256xf32> to vector<512x128xf32>
    %7 = arith.truncf %6 : vector<512x128xf32> to vector<512x128xbf16>
    %c0_4 = arith.constant 0 : index
    %c0_5 = arith.constant 0 : index
    %8 = vector.load %arg3[%c0_4, %c0_5] : memref<512x128xbf16, #tpu.memory_space<vmem>>, vector<512x128xbf16>
    tpu.vector_store %arg3[%c0_4, %c0_5], %7 {strides = array<i32>} : memref<512x128xbf16, #tpu.memory_space<vmem>>, vector<512x128xbf16>,
    %9 = vector.extract_strided_slice %5 {offsets = [0, 128], sizes = [512, 128], strides = [1, 1]} : vector<512x256xf32> to vector<512x128xf32>
    %10 = arith.truncf %9 : vector<512x128xf32> to vector<512x128xbf16>
    %c0_6 = arith.constant 0 : index
    %c0_7 = arith.constant 0 : index
    %11 = vector.load %arg4[%c0_6, %c0_7] : memref<512x128xbf16, #tpu.memory_space<vmem>>, vector<512x128xbf16>
    tpu.vector_store %arg4[%c0_6, %c0_7], %10 {strides = array<i32>} : memref<512x128xbf16, #tpu.memory_space<vmem>>, vector<512x128xbf16>,
    %c0_8 = arith.constant 0 : index
    %c0_9 = arith.constant 0 : index
    %12 = vector.load %arg5[%c0_8, %c0_9] : memref<1x256xf32, #tpu.memory_space<vmem>>, vector<1x256xf32>
    %cst_10 = arith.constant dense<0.000000e+00> : vector<256xf32>
    %13 = vector.multi_reduction <add>, %5, %cst_10 [0] : vector<512x256xf32> to vector<256xf32>
    %14 = vector.shape_cast %13 : vector<256xf32> to vector<1x256xf32>
    %15 = arith.addf %12, %14 : vector<1x256xf32>
    %c0_11 = arith.constant 0 : index
    %c0_12 = arith.constant 0 : index
    %16 = vector.load %arg5[%c0_11, %c0_12] : memref<1x256xf32, #tpu.memory_space<vmem>>, vector<1x256xf32>
    tpu.vector_store %arg5[%c0_11, %c0_12], %15 {strides = array<i32>} : memref<1x256xf32, #tpu.memory_space<vmem>>, vector<1x256xf32>,
    %c0_13 = arith.constant 0 : index
    %c0_14 = arith.constant 0 : index
    %17 = vector.load %arg6[%c0_13, %c0_14] : memref<1x256xf32, #tpu.memory_space<vmem>>, vector<1x256xf32>
    %18 = arith.mulf %5, %5 : vector<512x256xf32>
    %cst_15 = arith.constant dense<0.000000e+00> : vector<256xf32>
    %19 = vector.multi_reduction <add>, %18, %cst_15 [0] : vector<512x256xf32> to vector<256xf32>
    %20 = vector.shape_cast %19 : vector<256xf32> to vector<1x256xf32>
    %21 = arith.addf %17, %20 : vector<1x256xf32>
    %c0_16 = arith.constant 0 : index
    %c0_17 = arith.constant 0 : index
    %22 = vector.load %arg6[%c0_16, %c0_17] : memref<1x256xf32, #tpu.memory_space<vmem>>, vector<1x256xf32>
    tpu.vector_store %arg6[%c0_16, %c0_17], %21 {strides = array<i32>} : memref<1x256xf32, #tpu.memory_space<vmem>>, vector<1x256xf32>,
    return
  }
  func.func @transform_0(%arg0: i32) -> (i32, i32) {
    %c0_i32 = arith.constant 0 : i32
    %c0_i32_0 = arith.constant 0 : i32
    return %arg0, %c0_i32 : i32, i32
  }
  func.func @transform_1(%arg0: i32) -> (i32, i32) {
    %c0_i32 = arith.constant 0 : i32
    %c0_i32_0 = arith.constant 0 : i32
    %c0_i32_1 = arith.constant 0 : i32
    return %c0_i32, %c0_i32_0 : i32, i32
  }
  func.func @transform_2(%arg0: i32) -> (i32, i32) {
    %c0_i32 = arith.constant 0 : i32
    %c0_i32_0 = arith.constant 0 : i32
    return %arg0, %c0_i32 : i32, i32
  }
  func.func @transform_3(%arg0: i32) -> (i32, i32) {
    %c0_i32 = arith.constant 0 : i32
    %c0_i32_0 = arith.constant 0 : i32
    return %arg0, %c0_i32 : i32, i32
  }
  func.func @transform_4(%arg0: i32) -> (i32, i32) {
    %c0_i32 = arith.constant 0 : i32
    %c0_i32_0 = arith.constant 0 : i32
    %c0_i32_1 = arith.constant 0 : i32
    return %c0_i32, %c0_i32_0 : i32, i32
  }
  func.func @transform_5(%arg0: i32) -> (i32, i32) {
    %c0_i32 = arith.constant 0 : i32
    %c0_i32_0 = arith.constant 0 : i32
    %c0_i32_1 = arith.constant 0 : i32
    return %c0_i32, %c0_i32_0 : i32, i32
  }
}

module attributes {stable_mosaic.version = 11 : i64} {
  func.func @_conv3x3_kernel(%arg0: i32, %arg1: i32, %arg2: memref<128x128xbf16, #tpu.memory_space<vmem>>, %arg3: memref<16x128xbf16, #tpu.memory_space<vmem>>, %arg4: memref<16x128xbf16, #tpu.memory_space<vmem>>, %arg5: memref<1x128xf32, #tpu.memory_space<vmem>>, %arg6: memref<1x128xf32, #tpu.memory_space<vmem>>, %arg7: memref<1152x128xbf16, #tpu.memory_space<vmem>>, %arg8: memref<128x128xbf16, #tpu.memory_space<vmem>>, %arg9: memref<1x128xf32, #tpu.memory_space<vmem>>, %arg10: memref<1x128xf32, #tpu.memory_space<vmem>>, %arg11: memref<10x18x128xf32, #tpu.memory_space<vmem>>) attributes {dimension_semantics = [#tpu.dimension_semantics<arbitrary>, #tpu.dimension_semantics<arbitrary>], iteration_bounds = array<i64: 2, 2>, scalar_prefetch = 0 : i64, scratch_operands = 1 : i64, tpu.core_type = #tpu.core_type<tc>, window_params = [{transform_indices = @transform_0, window_bounds = array<i64: 128, 128>}, {transform_indices = @transform_1, window_bounds = array<i64: 16, 128>}, {transform_indices = @transform_2, window_bounds = array<i64: 16, 128>}, {pipeline_mode = #tpu.pipeline_mode<synchronous>, transform_indices = @transform_3, window_bounds = array<i64: 1, 128>}, {pipeline_mode = #tpu.pipeline_mode<synchronous>, transform_indices = @transform_4, window_bounds = array<i64: 1, 128>}, {pipeline_mode = #tpu.pipeline_mode<synchronous>, transform_indices = @transform_5, window_bounds = array<i64: 1152, 128>}, {transform_indices = @transform_6, window_bounds = array<i64: 128, 128>}, {pipeline_mode = #tpu.pipeline_mode<synchronous>, transform_indices = @transform_7, window_bounds = array<i64: 1, 128>}, {pipeline_mode = #tpu.pipeline_mode<synchronous>, transform_indices = @transform_8, window_bounds = array<i64: 1, 128>}]} {
    %c0_i32 = arith.constant 0 : i32
    %0 = arith.cmpi eq, %arg0, %c0_i32 : i32
    %c0_i32_0 = arith.constant 0 : i32
    %1 = arith.cmpi eq, %arg1, %c0_i32_0 : i32
    %2 = arith.andi %0, %1 : i1
    %3 = arith.extui %2 : i1 to i32
    %c0_i32_1 = arith.constant 0 : i32
    %4 = arith.cmpi ne, %3, %c0_i32_1 : i32
    scf.if %4 {
      %cst_87 = arith.constant 0.000000e+00 : f32
      %114 = vector.broadcast %cst_87 : f32 to vector<1x128xf32>
      %c0_88 = arith.constant 0 : index
      %c0_89 = arith.constant 0 : index
      %115 = vector.load %arg9[%c0_88, %c0_89] : memref<1x128xf32, #tpu.memory_space<vmem>>, vector<1x128xf32>
      tpu.vector_store %arg9[%c0_88, %c0_89], %114 {strides = array<i32>} : memref<1x128xf32, #tpu.memory_space<vmem>>, vector<1x128xf32>,
      %cst_90 = arith.constant 0.000000e+00 : f32
      %116 = vector.broadcast %cst_90 : f32 to vector<1x128xf32>
      %c0_91 = arith.constant 0 : index
      %c0_92 = arith.constant 0 : index
      %117 = vector.load %arg10[%c0_91, %c0_92] : memref<1x128xf32, #tpu.memory_space<vmem>>, vector<1x128xf32>
      tpu.vector_store %arg10[%c0_91, %c0_92], %116 {strides = array<i32>} : memref<1x128xf32, #tpu.memory_space<vmem>>, vector<1x128xf32>,
    } else {
    }
    %c0 = arith.constant 0 : index
    %c0_2 = arith.constant 0 : index
    %5 = vector.load %arg5[%c0, %c0_2] : memref<1x128xf32, #tpu.memory_space<vmem>>, vector<1x128xf32>
    %c0_3 = arith.constant 0 : index
    %c0_4 = arith.constant 0 : index
    %6 = vector.load %arg6[%c0_3, %c0_4] : memref<1x128xf32, #tpu.memory_space<vmem>>, vector<1x128xf32>
    %cst = arith.constant 0.000000e+00 : f32
    %7 = vector.broadcast %cst : f32 to vector<16x128xf32>
    %c0_i32_5 = arith.constant 0 : i32
    %8 = arith.cmpi sgt, %arg1, %c0_i32_5 : i32
    %c0_6 = arith.constant 0 : index
    %c0_7 = arith.constant 0 : index
    %9 = vector.load %arg3[%c0_6, %c0_7] : memref<16x128xbf16, #tpu.memory_space<vmem>>, vector<16x128xbf16>
    %10 = arith.extf %9 : vector<16x128xbf16> to vector<16x128xf32>
    %11 = vector.broadcast %5 : vector<1x128xf32> to vector<16x128xf32>
    %12 = arith.mulf %10, %11 : vector<16x128xf32>
    %13 = vector.broadcast %6 : vector<1x128xf32> to vector<16x128xf32>
    %14 = arith.addf %12, %13 : vector<16x128xf32>
    %cst_8 = arith.constant 0.000000e+00 : f32
    %15 = vector.broadcast %cst_8 : f32 to vector<16x128xf32>
    %16 = arith.maximumf %14, %15 : vector<16x128xf32>
    %17 = arith.select %8, %16, %7 : vector<16x128xf32>
    %c1_i32 = arith.constant 1 : i32
    %18 = arith.cmpi slt, %arg1, %c1_i32 : i32
    %c0_9 = arith.constant 0 : index
    %c0_10 = arith.constant 0 : index
    %19 = vector.load %arg4[%c0_9, %c0_10] : memref<16x128xbf16, #tpu.memory_space<vmem>>, vector<16x128xbf16>
    %20 = arith.extf %19 : vector<16x128xbf16> to vector<16x128xf32>
    %21 = vector.broadcast %5 : vector<1x128xf32> to vector<16x128xf32>
    %22 = arith.mulf %20, %21 : vector<16x128xf32>
    %23 = vector.broadcast %6 : vector<1x128xf32> to vector<16x128xf32>
    %24 = arith.addf %22, %23 : vector<16x128xf32>
    %cst_11 = arith.constant 0.000000e+00 : f32
    %25 = vector.broadcast %cst_11 : f32 to vector<16x128xf32>
    %26 = arith.maximumf %24, %25 : vector<16x128xf32>
    %27 = arith.select %18, %26, %7 : vector<16x128xf32>
    %cst_12 = arith.constant 0.000000e+00 : f32
    %28 = vector.broadcast %cst_12 : f32 to vector<10x1x128xf32>
    %c0_13 = arith.constant 0 : index
    %c0_14 = arith.constant 0 : index
    %c0_15 = arith.constant 0 : index
    %29 = vector.load %arg11[%c0_13, %c0_14, %c0_15] : memref<10x18x128xf32, #tpu.memory_space<vmem>>, vector<10x1x128xf32>
    tpu.vector_store %arg11[%c0_13, %c0_14, %c0_15], %28 {strides = array<i32>} : memref<10x18x128xf32, #tpu.memory_space<vmem>>, vector<10x1x128xf32>,
    %cst_16 = arith.constant 0.000000e+00 : f32
    %30 = vector.broadcast %cst_16 : f32 to vector<10x1x128xf32>
    %c0_17 = arith.constant 0 : index
    %c17 = arith.constant 17 : index
    %c0_18 = arith.constant 0 : index
    %31 = vector.load %arg11[%c0_17, %c17, %c0_18] : memref<10x18x128xf32, #tpu.memory_space<vmem>>, vector<10x1x128xf32>
    tpu.vector_store %arg11[%c0_17, %c17, %c0_18], %30 {strides = array<i32>} : memref<10x18x128xf32, #tpu.memory_space<vmem>>, vector<10x1x128xf32>,
    %32 = vector.shape_cast %17 : vector<16x128xf32> to vector<1x16x128xf32>
    %c0_19 = arith.constant 0 : index
    %c1 = arith.constant 1 : index
    %c0_20 = arith.constant 0 : index
    %33 = vector.load %arg11[%c0_19, %c1, %c0_20] : memref<10x18x128xf32, #tpu.memory_space<vmem>>, vector<1x16x128xf32>
    tpu.vector_store %arg11[%c0_19, %c1, %c0_20], %32 {strides = array<i32>} : memref<10x18x128xf32, #tpu.memory_space<vmem>>, vector<1x16x128xf32>,
    %c0_21 = arith.constant 0 : index
    %c0_22 = arith.constant 0 : index
    %34 = vector.load %arg2[%c0_21, %c0_22] : memref<128x128xbf16, #tpu.memory_space<vmem>>, vector<128x128xbf16>
    %35 = arith.extf %34 : vector<128x128xbf16> to vector<128x128xf32>
    %36 = vector.broadcast %5 : vector<1x128xf32> to vector<128x128xf32>
    %37 = arith.mulf %35, %36 : vector<128x128xf32>
    %38 = vector.broadcast %6 : vector<1x128xf32> to vector<128x128xf32>
    %39 = arith.addf %37, %38 : vector<128x128xf32>
    %cst_23 = arith.constant 0.000000e+00 : f32
    %40 = vector.broadcast %cst_23 : f32 to vector<128x128xf32>
    %41 = arith.maximumf %39, %40 : vector<128x128xf32>
    %42 = vector.shape_cast %41 : vector<128x128xf32> to vector<8x16x128xf32>
    %c1_24 = arith.constant 1 : index
    %c1_25 = arith.constant 1 : index
    %c0_26 = arith.constant 0 : index
    %43 = vector.load %arg11[%c1_24, %c1_25, %c0_26] : memref<10x18x128xf32, #tpu.memory_space<vmem>>, vector<8x16x128xf32>
    tpu.vector_store %arg11[%c1_24, %c1_25, %c0_26], %42 {strides = array<i32>} : memref<10x18x128xf32, #tpu.memory_space<vmem>>, vector<8x16x128xf32>,
    %44 = vector.shape_cast %27 : vector<16x128xf32> to vector<1x16x128xf32>
    %c9 = arith.constant 9 : index
    %c1_27 = arith.constant 1 : index
    %c0_28 = arith.constant 0 : index
    %45 = vector.load %arg11[%c9, %c1_27, %c0_28] : memref<10x18x128xf32, #tpu.memory_space<vmem>>, vector<1x16x128xf32>
    tpu.vector_store %arg11[%c9, %c1_27, %c0_28], %44 {strides = array<i32>} : memref<10x18x128xf32, #tpu.memory_space<vmem>>, vector<1x16x128xf32>,
    %cst_29 = arith.constant 0.000000e+00 : f32
    %46 = vector.broadcast %cst_29 : f32 to vector<128x128xf32>
    %c0_30 = arith.constant 0 : index
    %c0_31 = arith.constant 0 : index
    %c0_32 = arith.constant 0 : index
    %47 = vector.load %arg11[%c0_30, %c0_31, %c0_32] : memref<10x18x128xf32, #tpu.memory_space<vmem>>, vector<8x16x128xf32>
    %48 = vector.shape_cast %47 : vector<8x16x128xf32> to vector<128x128xf32>
    %49 = arith.truncf %48 : vector<128x128xf32> to vector<128x128xbf16>
    %c0_33 = arith.constant 0 : index
    %c0_34 = arith.constant 0 : index
    %50 = vector.load %arg7[%c0_33, %c0_34] : memref<1152x128xbf16, #tpu.memory_space<vmem>>, vector<128x128xbf16>
    %cst_35 = arith.constant dense<0.000000e+00> : vector<128x128xf32>
    %51 = tpu.matmul %49, %50, %cst_35 {dimension_numbers = #tpu.dot_dimension_numbers<[1], [0], [0], [1], [0, 0, 1, 1], [], []>} : vector<128x128xbf16>, vector<128x128xbf16>, vector<128x128xf32> -> vector<128x128xf32>
    %52 = arith.addf %46, %51 : vector<128x128xf32>
    %c0_36 = arith.constant 0 : index
    %c1_37 = arith.constant 1 : index
    %c0_38 = arith.constant 0 : index
    %53 = vector.load %arg11[%c0_36, %c1_37, %c0_38] : memref<10x18x128xf32, #tpu.memory_space<vmem>>, vector<8x16x128xf32>
    %54 = vector.shape_cast %53 : vector<8x16x128xf32> to vector<128x128xf32>
    %55 = arith.truncf %54 : vector<128x128xf32> to vector<128x128xbf16>
    %c128 = arith.constant 128 : index
    %c0_39 = arith.constant 0 : index
    %56 = vector.load %arg7[%c128, %c0_39] : memref<1152x128xbf16, #tpu.memory_space<vmem>>, vector<128x128xbf16>
    %cst_40 = arith.constant dense<0.000000e+00> : vector<128x128xf32>
    %57 = tpu.matmul %55, %56, %cst_40 {dimension_numbers = #tpu.dot_dimension_numbers<[1], [0], [0], [1], [0, 0, 1, 1], [], []>} : vector<128x128xbf16>, vector<128x128xbf16>, vector<128x128xf32> -> vector<128x128xf32>
    %58 = arith.addf %52, %57 : vector<128x128xf32>
    %c0_41 = arith.constant 0 : index
    %c2 = arith.constant 2 : index
    %c0_42 = arith.constant 0 : index
    %59 = vector.load %arg11[%c0_41, %c2, %c0_42] : memref<10x18x128xf32, #tpu.memory_space<vmem>>, vector<8x16x128xf32>
    %60 = vector.shape_cast %59 : vector<8x16x128xf32> to vector<128x128xf32>
    %61 = arith.truncf %60 : vector<128x128xf32> to vector<128x128xbf16>
    %c256 = arith.constant 256 : index
    %c0_43 = arith.constant 0 : index
    %62 = vector.load %arg7[%c256, %c0_43] : memref<1152x128xbf16, #tpu.memory_space<vmem>>, vector<128x128xbf16>
    %cst_44 = arith.constant dense<0.000000e+00> : vector<128x128xf32>
    %63 = tpu.matmul %61, %62, %cst_44 {dimension_numbers = #tpu.dot_dimension_numbers<[1], [0], [0], [1], [0, 0, 1, 1], [], []>} : vector<128x128xbf16>, vector<128x128xbf16>, vector<128x128xf32> -> vector<128x128xf32>
    %64 = arith.addf %58, %63 : vector<128x128xf32>
    %c1_45 = arith.constant 1 : index
    %c0_46 = arith.constant 0 : index
    %c0_47 = arith.constant 0 : index
    %65 = vector.load %arg11[%c1_45, %c0_46, %c0_47] : memref<10x18x128xf32, #tpu.memory_space<vmem>>, vector<8x16x128xf32>
    %66 = vector.shape_cast %65 : vector<8x16x128xf32> to vector<128x128xf32>
    %67 = arith.truncf %66 : vector<128x128xf32> to vector<128x128xbf16>
    %c384 = arith.constant 384 : index
    %c0_48 = arith.constant 0 : index
    %68 = vector.load %arg7[%c384, %c0_48] : memref<1152x128xbf16, #tpu.memory_space<vmem>>, vector<128x128xbf16>
    %cst_49 = arith.constant dense<0.000000e+00> : vector<128x128xf32>
    %69 = tpu.matmul %67, %68, %cst_49 {dimension_numbers = #tpu.dot_dimension_numbers<[1], [0], [0], [1], [0, 0, 1, 1], [], []>} : vector<128x128xbf16>, vector<128x128xbf16>, vector<128x128xf32> -> vector<128x128xf32>
    %70 = arith.addf %64, %69 : vector<128x128xf32>
    %c1_50 = arith.constant 1 : index
    %c1_51 = arith.constant 1 : index
    %c0_52 = arith.constant 0 : index
    %71 = vector.load %arg11[%c1_50, %c1_51, %c0_52] : memref<10x18x128xf32, #tpu.memory_space<vmem>>, vector<8x16x128xf32>
    %72 = vector.shape_cast %71 : vector<8x16x128xf32> to vector<128x128xf32>
    %73 = arith.truncf %72 : vector<128x128xf32> to vector<128x128xbf16>
    %c512 = arith.constant 512 : index
    %c0_53 = arith.constant 0 : index
    %74 = vector.load %arg7[%c512, %c0_53] : memref<1152x128xbf16, #tpu.memory_space<vmem>>, vector<128x128xbf16>
    %cst_54 = arith.constant dense<0.000000e+00> : vector<128x128xf32>
    %75 = tpu.matmul %73, %74, %cst_54 {dimension_numbers = #tpu.dot_dimension_numbers<[1], [0], [0], [1], [0, 0, 1, 1], [], []>} : vector<128x128xbf16>, vector<128x128xbf16>, vector<128x128xf32> -> vector<128x128xf32>
    %76 = arith.addf %70, %75 : vector<128x128xf32>
    %c1_55 = arith.constant 1 : index
    %c2_56 = arith.constant 2 : index
    %c0_57 = arith.constant 0 : index
    %77 = vector.load %arg11[%c1_55, %c2_56, %c0_57] : memref<10x18x128xf32, #tpu.memory_space<vmem>>, vector<8x16x128xf32>
    %78 = vector.shape_cast %77 : vector<8x16x128xf32> to vector<128x128xf32>
    %79 = arith.truncf %78 : vector<128x128xf32> to vector<128x128xbf16>
    %c640 = arith.constant 640 : index
    %c0_58 = arith.constant 0 : index
    %80 = vector.load %arg7[%c640, %c0_58] : memref<1152x128xbf16, #tpu.memory_space<vmem>>, vector<128x128xbf16>
    %cst_59 = arith.constant dense<0.000000e+00> : vector<128x128xf32>
    %81 = tpu.matmul %79, %80, %cst_59 {dimension_numbers = #tpu.dot_dimension_numbers<[1], [0], [0], [1], [0, 0, 1, 1], [], []>} : vector<128x128xbf16>, vector<128x128xbf16>, vector<128x128xf32> -> vector<128x128xf32>
    %82 = arith.addf %76, %81 : vector<128x128xf32>
    %c2_60 = arith.constant 2 : index
    %c0_61 = arith.constant 0 : index
    %c0_62 = arith.constant 0 : index
    %83 = vector.load %arg11[%c2_60, %c0_61, %c0_62] : memref<10x18x128xf32, #tpu.memory_space<vmem>>, vector<8x16x128xf32>
    %84 = vector.shape_cast %83 : vector<8x16x128xf32> to vector<128x128xf32>
    %85 = arith.truncf %84 : vector<128x128xf32> to vector<128x128xbf16>
    %c768 = arith.constant 768 : index
    %c0_63 = arith.constant 0 : index
    %86 = vector.load %arg7[%c768, %c0_63] : memref<1152x128xbf16, #tpu.memory_space<vmem>>, vector<128x128xbf16>
    %cst_64 = arith.constant dense<0.000000e+00> : vector<128x128xf32>
    %87 = tpu.matmul %85, %86, %cst_64 {dimension_numbers = #tpu.dot_dimension_numbers<[1], [0], [0], [1], [0, 0, 1, 1], [], []>} : vector<128x128xbf16>, vector<128x128xbf16>, vector<128x128xf32> -> vector<128x128xf32>
    %88 = arith.addf %82, %87 : vector<128x128xf32>
    %c2_65 = arith.constant 2 : index
    %c1_66 = arith.constant 1 : index
    %c0_67 = arith.constant 0 : index
    %89 = vector.load %arg11[%c2_65, %c1_66, %c0_67] : memref<10x18x128xf32, #tpu.memory_space<vmem>>, vector<8x16x128xf32>
    %90 = vector.shape_cast %89 : vector<8x16x128xf32> to vector<128x128xf32>
    %91 = arith.truncf %90 : vector<128x128xf32> to vector<128x128xbf16>
    %c896 = arith.constant 896 : index
    %c0_68 = arith.constant 0 : index
    %92 = vector.load %arg7[%c896, %c0_68] : memref<1152x128xbf16, #tpu.memory_space<vmem>>, vector<128x128xbf16>
    %cst_69 = arith.constant dense<0.000000e+00> : vector<128x128xf32>
    %93 = tpu.matmul %91, %92, %cst_69 {dimension_numbers = #tpu.dot_dimension_numbers<[1], [0], [0], [1], [0, 0, 1, 1], [], []>} : vector<128x128xbf16>, vector<128x128xbf16>, vector<128x128xf32> -> vector<128x128xf32>
    %94 = arith.addf %88, %93 : vector<128x128xf32>
    %c2_70 = arith.constant 2 : index
    %c2_71 = arith.constant 2 : index
    %c0_72 = arith.constant 0 : index
    %95 = vector.load %arg11[%c2_70, %c2_71, %c0_72] : memref<10x18x128xf32, #tpu.memory_space<vmem>>, vector<8x16x128xf32>
    %96 = vector.shape_cast %95 : vector<8x16x128xf32> to vector<128x128xf32>
    %97 = arith.truncf %96 : vector<128x128xf32> to vector<128x128xbf16>
    %c1024 = arith.constant 1024 : index
    %c0_73 = arith.constant 0 : index
    %98 = vector.load %arg7[%c1024, %c0_73] : memref<1152x128xbf16, #tpu.memory_space<vmem>>, vector<128x128xbf16>
    %cst_74 = arith.constant dense<0.000000e+00> : vector<128x128xf32>
    %99 = tpu.matmul %97, %98, %cst_74 {dimension_numbers = #tpu.dot_dimension_numbers<[1], [0], [0], [1], [0, 0, 1, 1], [], []>} : vector<128x128xbf16>, vector<128x128xbf16>, vector<128x128xf32> -> vector<128x128xf32>
    %100 = arith.addf %94, %99 : vector<128x128xf32>
    %101 = arith.truncf %100 : vector<128x128xf32> to vector<128x128xbf16>
    %c0_75 = arith.constant 0 : index
    %c0_76 = arith.constant 0 : index
    %102 = vector.load %arg8[%c0_75, %c0_76] : memref<128x128xbf16, #tpu.memory_space<vmem>>, vector<128x128xbf16>
    tpu.vector_store %arg8[%c0_75, %c0_76], %101 {strides = array<i32>} : memref<128x128xbf16, #tpu.memory_space<vmem>>, vector<128x128xbf16>,
    %c0_77 = arith.constant 0 : index
    %c0_78 = arith.constant 0 : index
    %103 = vector.load %arg9[%c0_77, %c0_78] : memref<1x128xf32, #tpu.memory_space<vmem>>, vector<1x128xf32>
    %cst_79 = arith.constant dense<0.000000e+00> : vector<128xf32>
    %104 = vector.multi_reduction <add>, %100, %cst_79 [0] : vector<128x128xf32> to vector<128xf32>
    %105 = vector.shape_cast %104 : vector<128xf32> to vector<1x128xf32>
    %106 = arith.addf %103, %105 : vector<1x128xf32>
    %c0_80 = arith.constant 0 : index
    %c0_81 = arith.constant 0 : index
    %107 = vector.load %arg9[%c0_80, %c0_81] : memref<1x128xf32, #tpu.memory_space<vmem>>, vector<1x128xf32>
    tpu.vector_store %arg9[%c0_80, %c0_81], %106 {strides = array<i32>} : memref<1x128xf32, #tpu.memory_space<vmem>>, vector<1x128xf32>,
    %c0_82 = arith.constant 0 : index
    %c0_83 = arith.constant 0 : index
    %108 = vector.load %arg10[%c0_82, %c0_83] : memref<1x128xf32, #tpu.memory_space<vmem>>, vector<1x128xf32>
    %109 = arith.mulf %100, %100 : vector<128x128xf32>
    %cst_84 = arith.constant dense<0.000000e+00> : vector<128xf32>
    %110 = vector.multi_reduction <add>, %109, %cst_84 [0] : vector<128x128xf32> to vector<128xf32>
    %111 = vector.shape_cast %110 : vector<128xf32> to vector<1x128xf32>
    %112 = arith.addf %108, %111 : vector<1x128xf32>
    %c0_85 = arith.constant 0 : index
    %c0_86 = arith.constant 0 : index
    %113 = vector.load %arg10[%c0_85, %c0_86] : memref<1x128xf32, #tpu.memory_space<vmem>>, vector<1x128xf32>
    tpu.vector_store %arg10[%c0_85, %c0_86], %112 {strides = array<i32>} : memref<1x128xf32, #tpu.memory_space<vmem>>, vector<1x128xf32>,
    return
  }
  func.func @transform_0(%arg0: i32, %arg1: i32) -> (i32, i32) {
    %c2_i32 = arith.constant 2 : i32
    %0 = arith.muli %arg0, %c2_i32 : i32
    %1 = arith.addi %0, %arg1 : i32
    %c0_i32 = arith.constant 0 : i32
    %c0_i32_0 = arith.constant 0 : i32
    return %1, %c0_i32 : i32, i32
  }
  func.func @transform_1(%arg0: i32, %arg1: i32) -> (i32, i32) {
    %c16_i32 = arith.constant 16 : i32
    %0 = arith.muli %arg0, %c16_i32 : i32
    %c8_i32 = arith.constant 8 : i32
    %1 = arith.muli %arg1, %c8_i32 : i32
    %c1_i32 = arith.constant 1 : i32
    %2 = arith.subi %1, %c1_i32 : i32
    %c0_i32 = arith.constant 0 : i32
    %3 = arith.maxsi %2, %c0_i32 : i32
    %4 = arith.addi %0, %3 : i32
    %c0_i32_0 = arith.constant 0 : i32
    %c0_i32_1 = arith.constant 0 : i32
    return %4, %c0_i32_0 : i32, i32
  }
  func.func @transform_2(%arg0: i32, %arg1: i32) -> (i32, i32) {
    %c16_i32 = arith.constant 16 : i32
    %0 = arith.muli %arg0, %c16_i32 : i32
    %c1_i32 = arith.constant 1 : i32
    %1 = arith.addi %arg1, %c1_i32 : i32
    %c8_i32 = arith.constant 8 : i32
    %2 = arith.muli %1, %c8_i32 : i32
    %c15_i32 = arith.constant 15 : i32
    %3 = arith.minsi %2, %c15_i32 : i32
    %4 = arith.addi %0, %3 : i32
    %c0_i32 = arith.constant 0 : i32
    %c0_i32_0 = arith.constant 0 : i32
    return %4, %c0_i32 : i32, i32
  }
  func.func @transform_3(%arg0: i32, %arg1: i32) -> (i32, i32) {
    %c0_i32 = arith.constant 0 : i32
    %c0_i32_0 = arith.constant 0 : i32
    %c0_i32_1 = arith.constant 0 : i32
    return %c0_i32, %c0_i32_0 : i32, i32
  }
  func.func @transform_4(%arg0: i32, %arg1: i32) -> (i32, i32) {
    %c0_i32 = arith.constant 0 : i32
    %c0_i32_0 = arith.constant 0 : i32
    %c0_i32_1 = arith.constant 0 : i32
    return %c0_i32, %c0_i32_0 : i32, i32
  }
  func.func @transform_5(%arg0: i32, %arg1: i32) -> (i32, i32) {
    %c0_i32 = arith.constant 0 : i32
    %c0_i32_0 = arith.constant 0 : i32
    %c0_i32_1 = arith.constant 0 : i32
    return %c0_i32, %c0_i32_0 : i32, i32
  }
  func.func @transform_6(%arg0: i32, %arg1: i32) -> (i32, i32) {
    %c2_i32 = arith.constant 2 : i32
    %0 = arith.muli %arg0, %c2_i32 : i32
    %1 = arith.addi %0, %arg1 : i32
    %c0_i32 = arith.constant 0 : i32
    %c0_i32_0 = arith.constant 0 : i32
    return %1, %c0_i32 : i32, i32
  }
  func.func @transform_7(%arg0: i32, %arg1: i32) -> (i32, i32) {
    %c0_i32 = arith.constant 0 : i32
    %c0_i32_0 = arith.constant 0 : i32
    %c0_i32_1 = arith.constant 0 : i32
    return %c0_i32, %c0_i32_0 : i32, i32
  }
  func.func @transform_8(%arg0: i32, %arg1: i32) -> (i32, i32) {
    %c0_i32 = arith.constant 0 : i32
    %c0_i32_0 = arith.constant 0 : i32
    %c0_i32_1 = arith.constant 0 : i32
    return %c0_i32, %c0_i32_0 : i32, i32
  }
}

module attributes {stable_mosaic.version = 11 : i64} {
  func.func @_affine_mm_stats_kernel(%arg0: i32, %arg1: memref<512x128xbf16, #tpu.memory_space<vmem>>, %arg2: memref<1x128xf32, #tpu.memory_space<vmem>>, %arg3: memref<1x128xf32, #tpu.memory_space<vmem>>, %arg4: memref<128x128xbf16, #tpu.memory_space<vmem>>, %arg5: memref<512x128xbf16, #tpu.memory_space<vmem>>, %arg6: memref<1x128xf32, #tpu.memory_space<vmem>>, %arg7: memref<1x128xf32, #tpu.memory_space<vmem>>) attributes {dimension_semantics = [#tpu.dimension_semantics<arbitrary>], iteration_bounds = array<i64: 1>, scalar_prefetch = 0 : i64, scratch_operands = 0 : i64, tpu.core_type = #tpu.core_type<tc>, window_params = [{transform_indices = @transform_0, window_bounds = array<i64: 512, 128>}, {pipeline_mode = #tpu.pipeline_mode<synchronous>, transform_indices = @transform_1, window_bounds = array<i64: 1, 128>}, {pipeline_mode = #tpu.pipeline_mode<synchronous>, transform_indices = @transform_2, window_bounds = array<i64: 1, 128>}, {pipeline_mode = #tpu.pipeline_mode<synchronous>, transform_indices = @transform_3, window_bounds = array<i64: 128, 128>}, {transform_indices = @transform_4, window_bounds = array<i64: 512, 128>}, {pipeline_mode = #tpu.pipeline_mode<synchronous>, transform_indices = @transform_5, window_bounds = array<i64: 1, 128>}, {pipeline_mode = #tpu.pipeline_mode<synchronous>, transform_indices = @transform_6, window_bounds = array<i64: 1, 128>}]} {
    %c0_i32 = arith.constant 0 : i32
    %0 = arith.cmpi eq, %arg0, %c0_i32 : i32
    %1 = arith.extui %0 : i1 to i32
    %c0_i32_0 = arith.constant 0 : i32
    %2 = arith.cmpi ne, %1, %c0_i32_0 : i32
    scf.if %2 {
      %cst_21 = arith.constant 0.000000e+00 : f32
      %29 = vector.broadcast %cst_21 : f32 to vector<1x128xf32>
      %c0_22 = arith.constant 0 : index
      %c0_23 = arith.constant 0 : index
      %30 = vector.load %arg6[%c0_22, %c0_23] : memref<1x128xf32, #tpu.memory_space<vmem>>, vector<1x128xf32>
      tpu.vector_store %arg6[%c0_22, %c0_23], %29 {strides = array<i32>} : memref<1x128xf32, #tpu.memory_space<vmem>>, vector<1x128xf32>,
      %cst_24 = arith.constant 0.000000e+00 : f32
      %31 = vector.broadcast %cst_24 : f32 to vector<1x128xf32>
      %c0_25 = arith.constant 0 : index
      %c0_26 = arith.constant 0 : index
      %32 = vector.load %arg7[%c0_25, %c0_26] : memref<1x128xf32, #tpu.memory_space<vmem>>, vector<1x128xf32>
      tpu.vector_store %arg7[%c0_25, %c0_26], %31 {strides = array<i32>} : memref<1x128xf32, #tpu.memory_space<vmem>>, vector<1x128xf32>,
    } else {
    }
    %c0 = arith.constant 0 : index
    %c0_1 = arith.constant 0 : index
    %3 = vector.load %arg1[%c0, %c0_1] : memref<512x128xbf16, #tpu.memory_space<vmem>>, vector<512x128xbf16>
    %4 = arith.extf %3 : vector<512x128xbf16> to vector<512x128xf32>
    %c0_2 = arith.constant 0 : index
    %c0_3 = arith.constant 0 : index
    %5 = vector.load %arg2[%c0_2, %c0_3] : memref<1x128xf32, #tpu.memory_space<vmem>>, vector<1x128xf32>
    %6 = vector.broadcast %5 : vector<1x128xf32> to vector<512x128xf32>
    %7 = arith.mulf %4, %6 : vector<512x128xf32>
    %c0_4 = arith.constant 0 : index
    %c0_5 = arith.constant 0 : index
    %8 = vector.load %arg3[%c0_4, %c0_5] : memref<1x128xf32, #tpu.memory_space<vmem>>, vector<1x128xf32>
    %9 = vector.broadcast %8 : vector<1x128xf32> to vector<512x128xf32>
    %10 = arith.addf %7, %9 : vector<512x128xf32>
    %cst = arith.constant 0.000000e+00 : f32
    %11 = vector.broadcast %cst : f32 to vector<512x128xf32>
    %12 = arith.maximumf %10, %11 : vector<512x128xf32>
    %13 = arith.truncf %12 : vector<512x128xf32> to vector<512x128xbf16>
    %c0_6 = arith.constant 0 : index
    %c0_7 = arith.constant 0 : index
    %14 = vector.load %arg4[%c0_6, %c0_7] : memref<128x128xbf16, #tpu.memory_space<vmem>>, vector<128x128xbf16>
    %cst_8 = arith.constant dense<0.000000e+00> : vector<512x128xf32>
    %15 = tpu.matmul %13, %14, %cst_8 {dimension_numbers = #tpu.dot_dimension_numbers<[1], [0], [0], [1], [0, 0, 1, 1], [], []>} : vector<512x128xbf16>, vector<128x128xbf16>, vector<512x128xf32> -> vector<512x128xf32>
    %16 = arith.truncf %15 : vector<512x128xf32> to vector<512x128xbf16>
    %c0_9 = arith.constant 0 : index
    %c0_10 = arith.constant 0 : index
    %17 = vector.load %arg5[%c0_9, %c0_10] : memref<512x128xbf16, #tpu.memory_space<vmem>>, vector<512x128xbf16>
    tpu.vector_store %arg5[%c0_9, %c0_10], %16 {strides = array<i32>} : memref<512x128xbf16, #tpu.memory_space<vmem>>, vector<512x128xbf16>,
    %c0_11 = arith.constant 0 : index
    %c0_12 = arith.constant 0 : index
    %18 = vector.load %arg6[%c0_11, %c0_12] : memref<1x128xf32, #tpu.memory_space<vmem>>, vector<1x128xf32>
    %cst_13 = arith.constant dense<0.000000e+00> : vector<128xf32>
    %19 = vector.multi_reduction <add>, %15, %cst_13 [0] : vector<512x128xf32> to vector<128xf32>
    %20 = vector.shape_cast %19 : vector<128xf32> to vector<1x128xf32>
    %21 = arith.addf %18, %20 : vector<1x128xf32>
    %c0_14 = arith.constant 0 : index
    %c0_15 = arith.constant 0 : index
    %22 = vector.load %arg6[%c0_14, %c0_15] : memref<1x128xf32, #tpu.memory_space<vmem>>, vector<1x128xf32>
    tpu.vector_store %arg6[%c0_14, %c0_15], %21 {strides = array<i32>} : memref<1x128xf32, #tpu.memory_space<vmem>>, vector<1x128xf32>,
    %c0_16 = arith.constant 0 : index
    %c0_17 = arith.constant 0 : index
    %23 = vector.load %arg7[%c0_16, %c0_17] : memref<1x128xf32, #tpu.memory_space<vmem>>, vector<1x128xf32>
    %24 = arith.mulf %15, %15 : vector<512x128xf32>
    %cst_18 = arith.constant dense<0.000000e+00> : vector<128xf32>
    %25 = vector.multi_reduction <add>, %24, %cst_18 [0] : vector<512x128xf32> to vector<128xf32>
    %26 = vector.shape_cast %25 : vector<128xf32> to vector<1x128xf32>
    %27 = arith.addf %23, %26 : vector<1x128xf32>
    %c0_19 = arith.constant 0 : index
    %c0_20 = arith.constant 0 : index
    %28 = vector.load %arg7[%c0_19, %c0_20] : memref<1x128xf32, #tpu.memory_space<vmem>>, vector<1x128xf32>
    tpu.vector_store %arg7[%c0_19, %c0_20], %27 {strides = array<i32>} : memref<1x128xf32, #tpu.memory_space<vmem>>, vector<1x128xf32>,
    return
  }
  func.func @transform_0(%arg0: i32) -> (i32, i32) {
    %c0_i32 = arith.constant 0 : i32
    %c0_i32_0 = arith.constant 0 : i32
    return %arg0, %c0_i32 : i32, i32
  }
  func.func @transform_1(%arg0: i32) -> (i32, i32) {
    %c0_i32 = arith.constant 0 : i32
    %c0_i32_0 = arith.constant 0 : i32
    %c0_i32_1 = arith.constant 0 : i32
    return %c0_i32, %c0_i32_0 : i32, i32
  }
  func.func @transform_2(%arg0: i32) -> (i32, i32) {
    %c0_i32 = arith.constant 0 : i32
    %c0_i32_0 = arith.constant 0 : i32
    %c0_i32_1 = arith.constant 0 : i32
    return %c0_i32, %c0_i32_0 : i32, i32
  }
  func.func @transform_3(%arg0: i32) -> (i32, i32) {
    %c0_i32 = arith.constant 0 : i32
    %c0_i32_0 = arith.constant 0 : i32
    %c0_i32_1 = arith.constant 0 : i32
    return %c0_i32, %c0_i32_0 : i32, i32
  }
  func.func @transform_4(%arg0: i32) -> (i32, i32) {
    %c0_i32 = arith.constant 0 : i32
    %c0_i32_0 = arith.constant 0 : i32
    return %arg0, %c0_i32 : i32, i32
  }
  func.func @transform_5(%arg0: i32) -> (i32, i32) {
    %c0_i32 = arith.constant 0 : i32
    %c0_i32_0 = arith.constant 0 : i32
    %c0_i32_1 = arith.constant 0 : i32
    return %c0_i32, %c0_i32_0 : i32, i32
  }
  func.func @transform_6(%arg0: i32) -> (i32, i32) {
    %c0_i32 = arith.constant 0 : i32
    %c0_i32_0 = arith.constant 0 : i32
    %c0_i32_1 = arith.constant 0 : i32
    return %c0_i32, %c0_i32_0 : i32, i32
  }
}

</mosaic_0001>

<bundles_post_ra>
// kernel: btnk_forward.6
= control target key start
LH: loop header
LB: loop body
LE: loop exit
PB: predicated region body
PF: predicated region fallthrough
CT: control target
= control target key end

     0   :  { %s2086_s3 = inlined_call_operand.vmem [shape: bf16[128,128], index: 3, kind: input, shape index: {}]   ;;  %s2087_s1 = inlined_call_operand.vmem [shape: f32[1,128], index: 1, kind: input, shape index: {}]   ;;  %s2088_s2 = inlined_call_operand.vmem [shape: f32[1,128], index: 2, kind: input, shape index: {}]   ;;  %s2089_s0 = inlined_call_operand.vmem [shape: bf16[512,128], index: 0, kind: input, shape index: {}]   ;;  %s2090_s4 = inlined_call_operand.vmem [shape: bf16[512,128], index: 4, kind: output, shape index: {0}]   ;;  %s2091_s5 = inlined_call_operand.vmem [shape: f32[1,128], index: 5, kind: output, shape index: {1}]   ;;  %s2092_s6 = inlined_call_operand.vmem [shape: f32[1,128], index: 6, kind: output, shape index: {2}]  }
   0x1   :  { %v1006_v0 = vld [vmem:[%s2086_s3 + $0x38] sm:$0xff]  ;;  %v1005_v1 = vld [vmem:[%s2086_s3 + $0x30] sm:$0xff]  ;;  %v1004_v2 = vld [vmem:[%s2086_s3 + $0x28] sm:$0xff] }
   0x2   :  { %450 = vmatpush.bf16.msra.mxu0 %v1006_v0  ;;  %1357 = vmatpush.bf16.msra.mxu1 %v1006_v0  ;;  %v1003_v3 = vld [vmem:[%s2086_s3 + $0x20] sm:$0xff]  ;;  %v1002_v8 = vld [vmem:[%s2086_s3 + $0x18] sm:$0xff]  ;;  %v1001_v17 = vld [vmem:[%s2086_s3 + $0x10] sm:$0xff] }
   0x3   :  { %1358 = vmatpush.bf16.msra.mxu2 %v1006_v0  ;;  %1359 = vmatpush.bf16.msra.mxu3 %v1006_v0  ;;  %v1008_v4 = vld [vmem:[%s2089_s0] sm:$0xff]   ;;  %v1000_v22 = vld [vmem:[%s2086_s3 + $0x8] sm:$0xff]  ;;  %v1296_v47 = vld [vmem:[%s2089_s0 + $0x10] sm:$0xff]  }
   0x4   :  { %v1009_v5 = vunpack.c.l.bf16 %v1008_v4  ;;  %v1010_v6 = vunpack.c.h.bf16 %v1008_v4  ;;  %v1438_v7 = vld [vmem:[%s2087_s1] ss:$0 sm:$0xff]  ;;  %v1295_v25 = vld [vmem:[%s2089_s0 + $0x8] sm:$0xff]   ;;  %v1017_v54 = vunpack.c.l.bf16 %v1296_v47  ;;  %v1018_v55 = vunpack.c.h.bf16 %v1296_v47  ;;  %v1304_v60 = vld [vmem:[%s2089_s0 + $0x50] sm:$0xff]  }
   0x5   :  { %v1302_v9 = vld [vmem:[%s2089_s0 + $0x40] sm:$0xff]   ;;  %v1013_v29 = vunpack.c.l.bf16 %v1295_v25  ;;  %v1014_v30 = vunpack.c.h.bf16 %v1295_v25  ;;  %v1303_v33 = vld [vmem:[%s2089_s0 + $0x48] sm:$0xff]   ;;  %v1049_v63 = vunpack.c.l.bf16 %v1304_v60  ;;  %v1050_v0 = vunpack.c.h.bf16 %v1304_v60 }
   0x6   :  { %451 = vmatpush.bf16.msra.mxu0 %v1005_v1  ;;  %1360 = vmatpush.bf16.msra.mxu1 %v1005_v1  ;;  %v1041_v10 = vunpack.c.l.bf16 %v1302_v9  ;;  %v1042_v11 = vunpack.c.h.bf16 %v1302_v9  ;;  %v158_v12 = vmul.f32 %v1438_v7, %v1009_v5  ;;  %v159_v13 = vmul.f32 %v1438_v7, %v1010_v6  ;;  %v1451_v14 = vld [vmem:[%s2088_s2] ss:$0 sm:$0xff] }
   0x7   :  { %1361 = vmatpush.bf16.msra.mxu2 %v1005_v1  ;;  %1362 = vmatpush.bf16.msra.mxu3 %v1005_v1  ;;  %v999_v28 = vld [vmem:[%s2086_s3] sm:$0xff]  ;;  %v1045_v34 = vunpack.c.l.bf16 %v1303_v33  ;;  %v1046_v35 = vunpack.c.h.bf16 %v1303_v33  ;;  %v160_v36 = vmul.f32 %v1438_v7, %v1013_v29  ;;  %v161_v37 = vmul.f32 %v1438_v7, %v1014_v30 }
   0x8   :  { %v174_v15 = vmul.f32 %v1438_v7, %v1041_v10  ;;  %v175_v16 = vmul.f32 %v1438_v7, %v1042_v11  ;;  %v226_v18 = vadd.f32 %v1451_v14, %v158_v12  ;;  %v227_v19 = vadd.f32 %v1451_v14, %v159_v13  ;;  %v1310_v46 = vld [vmem:[%s2089_s0 + $0x80] sm:$0xff]   ;;  %v1311_v13 = vld [vmem:[%s2089_s0 + $0x88] sm:$0xff]  }
   0x9   :  { %v176_v38 = vmul.f32 %v1438_v7, %v1045_v34  ;;  %v177_v39 = vmul.f32 %v1438_v7, %v1046_v35  ;;  %v228_v40 = vadd.f32 %v1451_v14, %v160_v36  ;;  %v229_v41 = vadd.f32 %v1451_v14, %v161_v37  ;;  %v1318_v47 = vld [vmem:[%s2089_s0 + $0xc0] sm:$0xff]  }
   0xa   :  { %452 = vmatpush.bf16.msra.mxu0 %v1004_v2  ;;  %1363 = vmatpush.bf16.msra.mxu1 %v1004_v2  ;;  %v242_v20 = vadd.f32 %v1451_v14, %v174_v15  ;;  %v243_v21 = vadd.f32 %v1451_v14, %v175_v16  ;;  %v290_v23 = vmax.f32 %v226_v18, 0.0  ;;  %v291_v24 = vmax.f32 %v227_v19, 0.0  ;;  %v1297_v15 = vld [vmem:[%s2089_s0 + $0x18] sm:$0xff]  }
   0xb   :  { %1364 = vmatpush.bf16.msra.mxu2 %v1004_v2  ;;  %1365 = vmatpush.bf16.msra.mxu3 %v1004_v2  ;;  %v244_v42 = vadd.f32 %v1451_v14, %v176_v38  ;;  %v245_v43 = vadd.f32 %v1451_v14, %v177_v39  ;;  %v292_v44 = vmax.f32 %v228_v40, 0.0  ;;  %v293_v45 = vmax.f32 %v229_v41, 0.0 }
   0xc   :  { %v306_v26 = vmax.f32 %v242_v20, 0.0  ;;  %v307_v27 = vmax.f32 %v243_v21, 0.0  ;;  %v354_v31 = vpack.c.bf16 %v291_v24, %v290_v23  ;;  %v1073_v50 = vunpack.c.l.bf16 %v1310_v46 }
   0xd   :  { %v308_v48 = vmax.f32 %v244_v42, 0.0  ;;  %v309_v49 = vmax.f32 %v245_v43, 0.0  ;;  %v1074_v51 = vunpack.c.h.bf16 %v1310_v46  ;;  %v355_v56 = vpack.c.bf16 %v293_v45, %v292_v44  ;;  %v1312_v46 = vld [vmem:[%s2089_s0 + $0x90] sm:$0xff]  }
   0xe   :  { %453 = vmatpush.bf16.msra.mxu0 %v1003_v3  ;;  %1366 = vmatpush.bf16.msra.mxu1 %v1003_v3  ;;  %v362_v32 = vpack.c.bf16 %v307_v27, %v306_v26  ;;  %v190_v52 = vmul.f32 %v1438_v7, %v1073_v50  ;;  %v162_v1 = vmul.f32 %v1438_v7, %v1017_v54  ;;  %v1077_v18 = vunpack.c.l.bf16 %v1311_v13 }
   0xf   :  { %1367 = vmatpush.bf16.msra.mxu2 %v1003_v3  ;;  %1368 = vmatpush.bf16.msra.mxu3 %v1003_v3  ;;  %v191_v53 = vmul.f32 %v1438_v7, %v1074_v51  ;;  %v363_v57 = vpack.c.bf16 %v309_v49, %v308_v48  ;;  %v163_v2 = vmul.f32 %v1438_v7, %v1018_v55  ;;  %v1078_v19 = vunpack.c.h.bf16 %v1311_v13  ;;  %v1298_v48 = vld [vmem:[%s2089_s0 + $0x20] sm:$0xff]  }
  0x10   :  { %v258_v58 = vadd.f32 %v1451_v14, %v190_v52  ;;  %v178_v4 = vmul.f32 %v1438_v7, %v1049_v63  ;;  %v179_v5 = vmul.f32 %v1438_v7, %v1050_v0  ;;  %v230_v6 = vadd.f32 %v1451_v14, %v162_v1  ;;  %v1306_v1 = vld [vmem:[%s2089_s0 + $0x60] sm:$0xff]  }
  0x11   :  { %v259_v59 = vadd.f32 %v1451_v14, %v191_v53  ;;  %v192_v20 = vmul.f32 %v1438_v7, %v1077_v18  ;;  %v193_v21 = vmul.f32 %v1438_v7, %v1078_v19  ;;  %v1022_v23 = vunpack.c.h.bf16 %v1297_v15 }
  0x12   :  { %454 = vmatpush.bf16.msra.mxu0 %v1002_v8  ;;  %1369 = vmatpush.bf16.msra.mxu1 %v1002_v8  ;;  %v322_v61 = vmax.f32 %v258_v58, 0.0  ;;  %v246_v9 = vadd.f32 %v1451_v14, %v178_v4  ;;  %v247_v10 = vadd.f32 %v1451_v14, %v179_v5  ;;  %v294_v11 = vmax.f32 %v230_v6, 0.0 }
  0x13   :  { %1370 = vmatpush.bf16.msra.mxu2 %v1002_v8  ;;  %1371 = vmatpush.bf16.msra.mxu3 %v1002_v8  ;;  %v323_v62 = vmax.f32 %v259_v59, 0.0  ;;  %v231_v8 = vadd.f32 %v1451_v14, %v163_v2  ;;  %v260_v26 = vadd.f32 %v1451_v14, %v192_v20  ;;  %v261_v27 = vadd.f32 %v1451_v14, %v193_v21 }
  0x14   :  { %v310_v16 = vmax.f32 %v246_v9, 0.0  ;;  %v165_v34 = vmul.f32 %v1438_v7, %v1022_v23  ;;  %v1081_v49 = vunpack.c.l.bf16 %v1312_v46  ;;  %v1082_v50 = vunpack.c.h.bf16 %v1312_v46 }
  0x15   :  { %v370_v3 = vpack.c.bf16 %v323_v62, %v322_v61  ;;  %v295_v12 = vmax.f32 %v231_v8, 0.0  ;;  %v324_v29 = vmax.f32 %v260_v26, 0.0  ;;  %v325_v30 = vmax.f32 %v261_v27, 0.0  ;;  %v1299_v26 = vld [vmem:[%s2089_s0 + $0x28] sm:$0xff]  }
  0x16   :  { %455 = vmatpush.bf16.msra.mxu0 %v1001_v17  ;;  %1372 = vmatpush.bf16.msra.mxu1 %v1001_v17  ;;  %v233_v39 = vadd.f32 %v1451_v14, %v165_v34  ;;  %v1105_v51 = vunpack.c.l.bf16 %v1318_v47  ;;  %v1106_v52 = vunpack.c.h.bf16 %v1318_v47  ;;  %v194_v53 = vmul.f32 %v1438_v7, %v1081_v49 }
  0x17   :  { %1373 = vmatpush.bf16.msra.mxu2 %v1001_v17  ;;  %1374 = vmatpush.bf16.msra.mxu3 %v1001_v17  ;;  %v311_v17 = vmax.f32 %v247_v10, 0.0  ;;  %v356_v24 = vpack.c.bf16 %v295_v12, %v294_v11  ;;  %v371_v35 = vpack.c.bf16 %v325_v30, %v324_v29  ;;  %v195_v54 = vmul.f32 %v1438_v7, %v1082_v50 }
  0x18   :  { %v297_v43 = vmax.f32 %v233_v39, 0.0  ;;  %v206_v55 = vmul.f32 %v1438_v7, %v1105_v51  ;;  %v1025_v58 = vunpack.c.l.bf16 %v1298_v48  ;;  %v1026_v59 = vunpack.c.h.bf16 %v1298_v48 }
  0x19   :  { %v364_v25 = vpack.c.bf16 %v311_v17, %v310_v16  ;;  %v262_v61 = vadd.f32 %v1451_v14, %v194_v53  ;;  %v263_v62 = vadd.f32 %v1451_v14, %v195_v54  ;;  %v1057_v9 = vunpack.c.l.bf16 %v1306_v1 }
  0x1a   :  { %456 = vmatpush.bf16.msra.mxu0 %v1000_v22  ;;  %1375 = vmatpush.bf16.msra.mxu1 %v1000_v22  ;;  %v274_v63 = vadd.f32 %v1451_v14, %v206_v55  ;;  %v166_v6 = vmul.f32 %v1438_v7, %v1025_v58  ;;  %v167_v8 = vmul.f32 %v1438_v7, %v1026_v59  ;;  %v1058_v10 = vunpack.c.h.bf16 %v1306_v1  ;;  %v1320_v1 = vld [vmem:[%s2089_s0 + $0xd0] sm:$0xff]  }
  0x1b   :  { %1376 = vmatpush.bf16.msra.mxu2 %v1000_v22  ;;  %1377 = vmatpush.bf16.msra.mxu3 %v1000_v22  ;;  %v1021_v22 = vunpack.c.l.bf16 %v1297_v15  ;;  %v326_v2 = vmax.f32 %v262_v61, 0.0  ;;  %v182_v13 = vmul.f32 %v1438_v7, %v1057_v9 }
  0x1c   :  { %v338_v4 = vmax.f32 %v274_v63, 0.0  ;;  %v183_v15 = vmul.f32 %v1438_v7, %v1058_v10  ;;  %v234_v16 = vadd.f32 %v1451_v14, %v166_v6  ;;  %v235_v17 = vadd.f32 %v1451_v14, %v167_v8 }
  0x1d   :  { %v164_v33 = vmul.f32 %v1438_v7, %v1021_v22  ;;  %v250_v18 = vadd.f32 %v1451_v14, %v182_v13  ;;  %v1114_v6 = vunpack.c.h.bf16 %v1320_v1 }
  0x1e   :  { %457 = vmatpush.bf16.msra.mxu0 %v999_v28  ;;  %1378 = vmatpush.bf16.msra.mxu1 %v999_v28  ;;  %v251_v19 = vadd.f32 %v1451_v14, %v183_v15  ;;  %v298_v20 = vmax.f32 %v234_v16, 0.0  ;;  %v299_v21 = vmax.f32 %v235_v17, 0.0 }
  0x1f   :  { %1379 = vmatpush.bf16.msra.mxu2 %v999_v28  ;;  %1380 = vmatpush.bf16.msra.mxu3 %v999_v28  ;;  %v1305_v28 = vld [vmem:[%s2089_s0 + $0x58] sm:$0xff]   ;;  %v232_v38 = vadd.f32 %v1451_v14, %v164_v33  ;;  %v314_v22 = vmax.f32 %v250_v18, 0.0 }
  0x20   :  { %v315_v23 = vmax.f32 %v251_v19, 0.0 }
  0x21   :  { %458 = vmatmul.bf16.vlgmr.msra.gmra.mxu0 %v354_v31  ;;  %498 = vmatmul.bf16.vlgmr.msra.gmra.mxu1 %v362_v32  ;;  %v1053_v31 = vunpack.c.l.bf16 %v1305_v28  ;;  %v1054_v32 = vunpack.c.h.bf16 %v1305_v28  ;;  %v296_v42 = vmax.f32 %v232_v38, 0.0 }
  0x22   :  { %538 = vmatmul.bf16.vlgmr.msra.gmra.mxu2 %v370_v3  ;;  %v327_v3 = vmax.f32 %v263_v62, 0.0  ;;  %v366_v38 = vpack.c.bf16 %v315_v23, %v314_v22 }
  0x23   :  { %v180_v36 = vmul.f32 %v1438_v7, %v1053_v31  ;;  %v181_v37 = vmul.f32 %v1438_v7, %v1054_v32 }
  0x24   :  { %v372_v11 = vpack.c.bf16 %v327_v3, %v326_v2  ;;  %v1300_v2 = vld [vmem:[%s2089_s0 + $0x30] sm:$0xff]  }
  0x25   :  { %v248_v40 = vadd.f32 %v1451_v14, %v180_v36  ;;  %v249_v41 = vadd.f32 %v1451_v14, %v181_v37  ;;  %v1029_v36 = vunpack.c.l.bf16 %v1299_v26  ;;  %v1030_v37 = vunpack.c.h.bf16 %v1299_v26 }
  0x26   :  { %v1033_v13 = vunpack.c.l.bf16 %v1300_v2  ;;  %v1034_v15 = vunpack.c.h.bf16 %v1300_v2 }
  0x27   :  { %v312_v44 = vmax.f32 %v248_v40, 0.0  ;;  %v313_v45 = vmax.f32 %v249_v41, 0.0  ;;  %v168_v48 = vmul.f32 %v1438_v7, %v1029_v36  ;;  %v169_v49 = vmul.f32 %v1438_v7, %v1030_v37 }
  0x28   :  { %v170_v26 = vmul.f32 %v1438_v7, %v1033_v13 }
  0x29   :  { %v365_v60 = vpack.c.bf16 %v313_v45, %v312_v44 }
  0x31   :  { %463 = vmatmul.bf16.gmra.mxu0 %v355_v56  ;;  %503 = vmatmul.bf16.gmra.mxu1 %v363_v57  ;;  %v207_v56 = vmul.f32 %v1438_v7, %v1106_v52  ;;  %v357_v57 = vpack.c.bf16 %v297_v43, %v296_v42  ;;  %v1307_v43 = vld [vmem:[%s2089_s0 + $0x68] sm:$0xff]  }
  0x32   :  { %543 = vmatmul.bf16.gmra.mxu2 %v371_v35  ;;  %v358_v35 = vpack.c.bf16 %v299_v21, %v298_v20  ;;  %v1061_v50 = vunpack.c.l.bf16 %v1307_v43  ;;  %v1062_v51 = vunpack.c.h.bf16 %v1307_v43  ;;  %v1308_v21 = vld [vmem:[%s2089_s0 + $0x70] sm:$0xff]   ;;  %v1321_v43 = vld [vmem:[%s2089_s0 + $0xd8] sm:$0xff]  }
  0x33   :  { %v275_v0 = vadd.f32 %v1451_v14, %v207_v56  ;;  %v236_v56 = vadd.f32 %v1451_v14, %v168_v48  ;;  %v1118_v48 = vunpack.c.h.bf16 %v1321_v43 }
  0x34   :  { %v184_v54 = vmul.f32 %v1438_v7, %v1061_v50  ;;  %v185_v55 = vmul.f32 %v1438_v7, %v1062_v51 }
  0x35   :  { %v339_v5 = vmax.f32 %v275_v0, 0.0  ;;  %v1314_v0 = vld [vmem:[%s2089_s0 + $0xa0] sm:$0xff]  }
  0x36   :  { %v252_v58 = vadd.f32 %v1451_v14, %v184_v54  ;;  %v253_v59 = vadd.f32 %v1451_v14, %v185_v55  ;;  %v1089_v3 = vunpack.c.l.bf16 %v1314_v0 }
  0x37   :  { %v378_v12 = vpack.c.bf16 %v339_v5, %v338_v4  ;;  %v1090_v4 = vunpack.c.h.bf16 %v1314_v0  ;;  %v1113_v5 = vunpack.c.l.bf16 %v1320_v1 }
  0x38   :  { %v316_v62 = vmax.f32 %v252_v58, 0.0  ;;  %v317_v63 = vmax.f32 %v253_v59, 0.0  ;;  %v198_v8 = vmul.f32 %v1438_v7, %v1089_v3 }
  0x39   :  { %578 = vmatmul.bf16.vlgmr.msra.gmra.mxu3 %v378_v12  ;;  %v199_v9 = vmul.f32 %v1438_v7, %v1090_v4  ;;  %v210_v10 = vmul.f32 %v1438_v7, %v1113_v5 }
  0x3a   :  { %v367_v16 = vpack.c.bf16 %v317_v63, %v316_v62  ;;  %v266_v17 = vadd.f32 %v1451_v14, %v198_v8 }
  0x3b   :  { %v267_v18 = vadd.f32 %v1451_v14, %v199_v9  ;;  %v278_v19 = vadd.f32 %v1451_v14, %v210_v10 }
  0x3c   :  { %v330_v22 = vmax.f32 %v266_v17, 0.0 }
  0x3d   :  { %v331_v23 = vmax.f32 %v267_v18, 0.0 }
  0x41   :  { %468 = vmatmul.bf16.gmra.mxu0 %v356_v24  ;;  %508 = vmatmul.bf16.gmra.mxu1 %v364_v25  ;;  %v1313_v24 = vld [vmem:[%s2089_s0 + $0x98] sm:$0xff]   ;;  %v1319_v25 = vld [vmem:[%s2089_s0 + $0xc8] sm:$0xff]  }
  0x42   :  { %548 = vmatmul.bf16.gmra.mxu2 %v372_v11  ;;  %v1085_v27 = vunpack.c.l.bf16 %v1313_v24  ;;  %v1086_v28 = vunpack.c.h.bf16 %v1313_v24  ;;  %v1109_v29 = vunpack.c.l.bf16 %v1319_v25  ;;  %v1110_v30 = vunpack.c.h.bf16 %v1319_v25 }
  0x43   :  { %v211_v11 = vmul.f32 %v1438_v7, %v1114_v6  ;;  %v342_v24 = vmax.f32 %v278_v19, 0.0 }
  0x44   :  { %v196_v31 = vmul.f32 %v1438_v7, %v1085_v27  ;;  %v197_v32 = vmul.f32 %v1438_v7, %v1086_v28  ;;  %v208_v33 = vmul.f32 %v1438_v7, %v1109_v29  ;;  %v209_v34 = vmul.f32 %v1438_v7, %v1110_v30 }
  0x45   :  { %v279_v20 = vadd.f32 %v1451_v14, %v211_v11  ;;  %v171_v27 = vmul.f32 %v1438_v7, %v1034_v15  ;;  %v1065_v28 = vunpack.c.l.bf16 %v1308_v21  ;;  %v1066_v29 = vunpack.c.h.bf16 %v1308_v21  ;;  %v1322_v21 = vld [vmem:[%s2089_s0 + $0xe0] sm:$0xff]  }
  0x46   :  { %v264_v39 = vadd.f32 %v1451_v14, %v196_v31  ;;  %v265_v40 = vadd.f32 %v1451_v14, %v197_v32  ;;  %v276_v41 = vadd.f32 %v1451_v14, %v208_v33  ;;  %v277_v42 = vadd.f32 %v1451_v14, %v209_v34 }
  0x47   :  { %v343_v25 = vmax.f32 %v279_v20, 0.0  ;;  %v374_v30 = vpack.c.bf16 %v331_v23, %v330_v22  ;;  %v186_v32 = vmul.f32 %v1438_v7, %v1065_v28  ;;  %v187_v33 = vmul.f32 %v1438_v7, %v1066_v29  ;;  %v1316_v20 = vld [vmem:[%s2089_s0 + $0xb0] sm:$0xff]  }
  0x48   :  { %v328_v44 = vmax.f32 %v264_v39, 0.0  ;;  %v329_v45 = vmax.f32 %v265_v40, 0.0  ;;  %v340_v46 = vmax.f32 %v276_v41, 0.0  ;;  %v341_v47 = vmax.f32 %v277_v42, 0.0  ;;  %v1315_v42 = vld [vmem:[%s2089_s0 + $0xa8] sm:$0xff]  }
  0x49   :  { %v380_v31 = vpack.c.bf16 %v343_v25, %v342_v24  ;;  %v238_v34 = vadd.f32 %v1451_v14, %v170_v26  ;;  %v254_v36 = vadd.f32 %v1451_v14, %v186_v32  ;;  %v255_v37 = vadd.f32 %v1451_v14, %v187_v33 }
  0x4a   :  { %v373_v52 = vpack.c.bf16 %v329_v45, %v328_v44  ;;  %v379_v53 = vpack.c.bf16 %v341_v47, %v340_v46  ;;  %v1301_v44 = vld [vmem:[%s2089_s0 + $0x38] sm:$0xff]   ;;  %v1093_v45 = vunpack.c.l.bf16 %v1315_v42  ;;  %v1094_v46 = vunpack.c.h.bf16 %v1315_v42 }
  0x4b   :  { %v318_v40 = vmax.f32 %v254_v36, 0.0  ;;  %v319_v41 = vmax.f32 %v255_v37, 0.0  ;;  %v1117_v47 = vunpack.c.l.bf16 %v1321_v43  ;;  %v1037_v54 = vunpack.c.l.bf16 %v1301_v44  ;;  %v1317_v42 = vld [vmem:[%s2089_s0 + $0xb8] sm:$0xff]   ;;  %v1323_v43 = vld [vmem:[%s2089_s0 + $0xe8] sm:$0xff]  }
  0x4c   :  { %583 = vmatmul.bf16.gmra.mxu3 %v379_v53  ;;  %v201_v50 = vmul.f32 %v1438_v7, %v1094_v46  ;;  %v1038_v55 = vunpack.c.h.bf16 %v1301_v44  ;;  %v1097_v22 = vunpack.c.l.bf16 %v1316_v20  ;;  %v1098_v23 = vunpack.c.h.bf16 %v1316_v20 }
  0x4d   :  { %v212_v51 = vmul.f32 %v1438_v7, %v1117_v47  ;;  %v172_v2 = vmul.f32 %v1438_v7, %v1037_v54  ;;  %v1121_v24 = vunpack.c.l.bf16 %v1322_v21  ;;  %v1122_v25 = vunpack.c.h.bf16 %v1322_v21 }
  0x4e   :  { %v269_v58 = vadd.f32 %v1451_v14, %v201_v50  ;;  %v173_v3 = vmul.f32 %v1438_v7, %v1038_v55  ;;  %v202_v26 = vmul.f32 %v1438_v7, %v1097_v22  ;;  %v1101_v44 = vunpack.c.l.bf16 %v1317_v42 }
  0x4f   :  { %v280_v59 = vadd.f32 %v1451_v14, %v212_v51  ;;  %v240_v11 = vadd.f32 %v1451_v14, %v172_v2  ;;  %v214_v28 = vmul.f32 %v1438_v7, %v1121_v24  ;;  %v215_v29 = vmul.f32 %v1438_v7, %v1122_v25 }
  0x50   :  { %v333_v63 = vmax.f32 %v269_v58, 0.0  ;;  %v270_v32 = vadd.f32 %v1451_v14, %v202_v26  ;;  %v1125_v46 = vunpack.c.l.bf16 %v1323_v43  ;;  %v1126_v47 = vunpack.c.h.bf16 %v1323_v43 }
  0x51   :  { %473 = vmatmul.bf16.gmra.mxu0 %v357_v57  ;;  %513 = vmatmul.bf16.gmra.mxu1 %v365_v60  ;;  %v237_v57 = vadd.f32 %v1451_v14, %v169_v49  ;;  %v300_v60 = vmax.f32 %v236_v56, 0.0  ;;  %v200_v49 = vmul.f32 %v1438_v7, %v1093_v45  ;;  %v368_v56 = vpack.c.bf16 %v319_v41, %v318_v40 }
  0x52   :  { %553 = vmatmul.bf16.gmra.mxu2 %v373_v52  ;;  %v213_v52 = vmul.f32 %v1438_v7, %v1118_v48  ;;  %v344_v0 = vmax.f32 %v280_v59, 0.0  ;;  %v334_v36 = vmax.f32 %v270_v32, 0.0  ;;  %v1102_v45 = vunpack.c.h.bf16 %v1317_v42  ;;  %v1325_v32 = vld [vmem:[%s2089_s0 + $0xf8] sm:$0xff]  }
  0x53   :  { %v301_v61 = vmax.f32 %v237_v57, 0.0  ;;  %v268_v57 = vadd.f32 %v1451_v14, %v200_v49  ;;  %v204_v48 = vmul.f32 %v1438_v7, %v1101_v44  ;;  %v216_v50 = vmul.f32 %v1438_v7, %v1125_v46 }
  0x54   :  { %v205_v49 = vmul.f32 %v1438_v7, %v1102_v45  ;;  %v217_v51 = vmul.f32 %v1438_v7, %v1126_v47 }
  0x55   :  { %v359_v12 = vpack.c.bf16 %v301_v61, %v300_v60  ;;  %v281_v60 = vadd.f32 %v1451_v14, %v213_v52  ;;  %v1309_v61 = vld [vmem:[%s2089_s0 + $0x78] sm:$0xff]   ;;  %v332_v62 = vmax.f32 %v268_v57, 0.0  ;;  %v272_v52 = vadd.f32 %v1451_v14, %v204_v48 }
  0x56   :  { %v1069_v4 = vunpack.c.l.bf16 %v1309_v61  ;;  %v1070_v5 = vunpack.c.h.bf16 %v1309_v61  ;;  %v284_v54 = vadd.f32 %v1451_v14, %v216_v50  ;;  %v285_v55 = vadd.f32 %v1451_v14, %v217_v51 }
  0x57   :  { %v345_v1 = vmax.f32 %v281_v60, 0.0  ;;  %v375_v6 = vpack.c.bf16 %v333_v63, %v332_v62  ;;  %v336_v58 = vmax.f32 %v272_v52, 0.0 }
  0x58   :  { %v188_v9 = vmul.f32 %v1438_v7, %v1069_v4  ;;  %v189_v10 = vmul.f32 %v1438_v7, %v1070_v5  ;;  %v348_v60 = vmax.f32 %v284_v54, 0.0  ;;  %v349_v61 = vmax.f32 %v285_v55, 0.0 }
  0x59   :  { %v381_v8 = vpack.c.bf16 %v345_v1, %v344_v0 }
  0x5a   :  { %v256_v13 = vadd.f32 %v1451_v14, %v188_v9  ;;  %v257_v15 = vadd.f32 %v1451_v14, %v189_v10  ;;  %v383_v63 = vpack.c.bf16 %v349_v61, %v348_v60 }
  0x5c   :  { %588 = vmatmul.bf16.gmra.mxu3 %v380_v31  ;;  %v320_v18 = vmax.f32 %v256_v13, 0.0  ;;  %v321_v19 = vmax.f32 %v257_v15, 0.0 }
  0x5e   :  { %v369_v31 = vpack.c.bf16 %v321_v19, %v320_v18 }
  0x61   :  { %478 = vmatmul.bf16.gmra.mxu0 %v358_v35  ;;  %518 = vmatmul.bf16.gmra.mxu1 %v366_v38  ;;  %v239_v35 = vadd.f32 %v1451_v14, %v171_v27  ;;  %v302_v38 = vmax.f32 %v238_v34, 0.0  ;;  %v203_v27 = vmul.f32 %v1438_v7, %v1098_v23  ;;  %v282_v34 = vadd.f32 %v1451_v14, %v214_v28 }
  0x62   :  { %558 = vmatmul.bf16.gmra.mxu2 %v374_v30 }
  0x63   :  { %v303_v39 = vmax.f32 %v239_v35, 0.0  ;;  %v271_v33 = vadd.f32 %v1451_v14, %v203_v27  ;;  %v283_v35 = vadd.f32 %v1451_v14, %v215_v29 }
  0x65   :  { %v360_v53 = vpack.c.bf16 %v303_v39, %v302_v38  ;;  %v335_v37 = vmax.f32 %v271_v33, 0.0  ;;  %v346_v38 = vmax.f32 %v282_v34, 0.0  ;;  %v347_v39 = vmax.f32 %v283_v35, 0.0 }
  0x66   :  { %v1133_v34 = vunpack.c.l.bf16 %v1325_v32  ;;  %v1134_v35 = vunpack.c.h.bf16 %v1325_v32 }
  0x67   :  { %v376_v40 = vpack.c.bf16 %v335_v37, %v334_v36  ;;  %v382_v41 = vpack.c.bf16 %v347_v39, %v346_v38 }
  0x68   :  { %v220_v36 = vmul.f32 %v1438_v7, %v1133_v34  ;;  %v221_v37 = vmul.f32 %v1438_v7, %v1134_v35 }
  0x6a   :  { %v288_v38 = vadd.f32 %v1451_v14, %v220_v36  ;;  %v289_v39 = vadd.f32 %v1451_v14, %v221_v37 }
  0x6c   :  { %593 = vmatmul.bf16.gmra.mxu3 %v381_v8  ;;  %v1324_v8 = vld [vmem:[%s2089_s0 + $0xf0] sm:$0xff]   ;;  %v352_v45 = vmax.f32 %v288_v38, 0.0  ;;  %v353_v47 = vmax.f32 %v289_v39, 0.0 }
  0x6d   :  { %v1129_v10 = vunpack.c.l.bf16 %v1324_v8 }
  0x71   :  { %483 = vmatmul.bf16.gmra.mxu0 %v359_v12  ;;  %523 = vmatmul.bf16.gmra.mxu1 %v367_v16  ;;  %v241_v12 = vadd.f32 %v1451_v14, %v173_v3  ;;  %v304_v16 = vmax.f32 %v240_v11, 0.0  ;;  %v1130_v11 = vunpack.c.h.bf16 %v1324_v8 }
  0x72   :  { %563 = vmatmul.bf16.gmra.mxu2 %v375_v6 }
  0x73   :  { %v305_v17 = vmax.f32 %v241_v12, 0.0  ;;  %v218_v12 = vmul.f32 %v1438_v7, %v1129_v10  ;;  %v219_v13 = vmul.f32 %v1438_v7, %v1130_v11  ;;  %v385_v7 = vpack.c.bf16 %v353_v47, %v352_v45 }
  0x75   :  { %v361_v30 = vpack.c.bf16 %v305_v17, %v304_v16  ;;  %v286_v15 = vadd.f32 %v1451_v14, %v218_v12  ;;  %v287_v16 = vadd.f32 %v1451_v14, %v219_v13 }
  0x77   :  { %v350_v21 = vmax.f32 %v286_v15, 0.0  ;;  %v351_v22 = vmax.f32 %v287_v16, 0.0 }
  0x79   :  { %v384_v24 = vpack.c.bf16 %v351_v22, %v350_v21 }
  0x7c   :  { %598 = vmatmul.bf16.gmra.mxu3 %v382_v41 }
  0x81   :  { %488 = vmatmul.bf16.gmra.mxu0 %v360_v53  ;;  %528 = vmatmul.bf16.gmra.mxu1 %v368_v56  ;;  %v273_v53 = vadd.f32 %v1451_v14, %v205_v49 }
  0x82   :  { %568 = vmatmul.bf16.gmra.mxu2 %v376_v40 }
  0x83   :  { %v337_v59 = vmax.f32 %v273_v53, 0.0 }
  0x85   :  { %v377_v62 = vpack.c.bf16 %v337_v59, %v336_v58 }
  0x8c   :  { %603 = vmatmul.bf16.gmra.mxu3 %v383_v63 }
  0x91   :  { %493 = vmatmul.bf16.gmra.mxu0 %v361_v30  ;;  %533 = vmatmul.bf16.gmra.mxu1 %v369_v31 }
  0x92   :  { %573 = vmatmul.bf16.gmra.mxu2 %v377_v62 }
  0x9c   :  { %608 = vmatmul.bf16.gmra.mxu3 %v384_v24 }
  0x9e   :  { %v459_v56 = vpop.f32.mrf.mxu0  ;;  %v1664_v57 = vpop.f32.mrf.mxu1 }
  0x9f   :  { %v820_v0 = vmul.f32 %v459_v56, %v459_v56 }
  0xa5   :  { %v1689_v31 = vpop.f32.mrf.mxu2 }
  0xa6   :  { %v461_v1 = vpop.f32.mrf.mxu0  ;;  %v1666_v2 = vpop.f32.mrf.mxu1 }
  0xa7   :  { %v1138_v3 = vpack.c.bf16 %v461_v1, %v459_v56  ;;  %v748_v4 = vadd.f32 %v461_v1, %v459_v56  ;;  %v821_v5 = vmul.f32 %v461_v1, %v461_v1  ;;  %v1178_v6 = vpack.c.bf16 %v1666_v2, %v1664_v57 }
  0xa9   :  { %1139 = vst [vmem:[%s2090_s4] sm:$0xff] %v1138_v3   ;;  %v884_v9 = vadd.f32 %v821_v5, %v820_v0 }
  0xaa   :  { %1333 = vst [vmem:[%s2090_s4 + $0x40] sm:$0xff] %v1178_v6  }
  0xac   :  { %613 = vmatmul.bf16.gmra.mxu3 %v385_v7 }
  0xad   :  { %v1708_v44 = vpop.f32.mrf.mxu2 }
  0xae   :  { %v464_v17 = vpop.f32.mrf.mxu0  ;;  %v1683_v18 = vpop.f32.mrf.mxu1  ;;  %v1218_v46 = vpack.c.bf16 %v1708_v44, %v1689_v31 }
  0xaf   :  { %v749_v19 = vadd.f32 %v748_v4, %v464_v17  ;;  %v822_v20 = vmul.f32 %v464_v17, %v464_v17 }
  0xb0   :  { %1341 = vst [vmem:[%s2090_s4 + $0x80] sm:$0xff] %v1218_v46  }
  0xb1   :  { %v885_v23 = vadd.f32 %v884_v9, %v822_v20 }
  0xb5   :  { %v1721_v52 = vpop.f32.mrf.mxu2 }
  0xb6   :  { %v466_v25 = vpop.f32.mrf.mxu0  ;;  %v1685_v26 = vpop.f32.mrf.mxu1 }
  0xb7   :  { %v1143_v27 = vpack.c.bf16 %v466_v25, %v464_v17  ;;  %v750_v28 = vadd.f32 %v749_v19, %v466_v25  ;;  %v823_v29 = vmul.f32 %v466_v25, %v466_v25  ;;  %v1183_v30 = vpack.c.bf16 %v1685_v26, %v1683_v18 }
  0xb9   :  { %1326 = vst [vmem:[%s2090_s4 + $0x8] sm:$0xff] %v1143_v27   ;;  %v886_v33 = vadd.f32 %v885_v23, %v823_v29 }
  0xba   :  { %1334 = vst [vmem:[%s2090_s4 + $0x48] sm:$0xff] %v1183_v30  }
  0xbc   :  { %v1744_v63 = vpop.f32.mrf.mxu3 }
  0xbd   :  { %v1731_v55 = vpop.f32.mrf.mxu2 }
  0xbe   :  { %v469_v40 = vpop.f32.mrf.mxu0  ;;  %v1704_v41 = vpop.f32.mrf.mxu1  ;;  %v1223_v56 = vpack.c.bf16 %v1731_v55, %v1721_v52 }
  0xbf   :  { %v1706_v42 = vadd.f32 %v750_v28, %v469_v40  ;;  %v824_v43 = vmul.f32 %v469_v40, %v469_v40 }
  0xc0   :  { %1342 = vst [vmem:[%s2090_s4 + $0x88] sm:$0xff] %v1223_v56  }
  0xc1   :  { %v1712_v48 = vadd.f32 %v886_v33, %v824_v43 }
  0xc4   :  { %v1756_v4 = vpop.f32.mrf.mxu3 }
  0xc5   :  { %v1742_v62 = vpop.f32.mrf.mxu2  ;;  %v1258_v6 = vpack.c.bf16 %v1756_v4, %v1744_v63 }
  0xc6   :  { %v471_v14 = vpop.f32.mrf.mxu0  ;;  %v1717_v49 = vpop.f32.mrf.mxu1 }
  0xc7   :  { %v1148_v50 = vpack.c.bf16 %v471_v14, %v469_v40  ;;  %v1188_v51 = vpack.c.bf16 %v1717_v49, %v1704_v41  ;;  %1349 = vst [vmem:[%s2090_s4 + $0xc0] sm:$0xff] %v1258_v6   ;;  %v825_v34 = vmul.f32 %v471_v14, %v471_v14  ;;  %v752_v38 = vadd.f32 %v1706_v42, %v471_v14 }
  0xc9   :  { %1327 = vst [vmem:[%s2090_s4 + $0x10] sm:$0xff] %v1148_v50   ;;  %v888_v39 = vadd.f32 %v1712_v48, %v825_v34 }
  0xca   :  { %1335 = vst [vmem:[%s2090_s4 + $0x50] sm:$0xff] %v1188_v51  }
  0xcd   :  { %v1754_v3 = vpop.f32.mrf.mxu2 }
  0xce   :  { %v474_v53 = vpop.f32.mrf.mxu0  ;;  %v1729_v54 = vpop.f32.mrf.mxu1  ;;  %v1228_v5 = vpack.c.bf16 %v1754_v3, %v1742_v62 }
  0xcf   :  { %v1774_v13 = vpop.f32.mrf.mxu3  ;;  %v826_v37 = vmul.f32 %v474_v53, %v474_v53  ;;  %v753_v43 = vadd.f32 %v752_v38, %v474_v53 }
  0xd0   :  { %1343 = vst [vmem:[%s2090_s4 + $0x90] sm:$0xff] %v1228_v5  }
  0xd1   :  { %v889_v45 = vadd.f32 %v888_v39, %v826_v37 }
  0xd5   :  { %v1772_v12 = vpop.f32.mrf.mxu2 }
  0xd6   :  { %v476_v58 = vpop.f32.mrf.mxu0  ;;  %v1738_v59 = vpop.f32.mrf.mxu1 }
  0xd7   :  { %v1153_v60 = vpack.c.bf16 %v476_v58, %v474_v53  ;;  %v1193_v61 = vpack.c.bf16 %v1738_v59, %v1729_v54  ;;  %v1786_v19 = vpop.f32.mrf.mxu3  ;;  %v827_v40 = vmul.f32 %v476_v58, %v476_v58  ;;  %v754_v50 = vadd.f32 %v753_v43, %v476_v58 }
  0xd8   :  { %v1263_v21 = vpack.c.bf16 %v1786_v19, %v1774_v13 }
  0xd9   :  { %1328 = vst [vmem:[%s2090_s4 + $0x18] sm:$0xff] %v1153_v60   ;;  %v890_v14 = vadd.f32 %v889_v45, %v827_v40 }
  0xda   :  { %1336 = vst [vmem:[%s2090_s4 + $0x58] sm:$0xff] %v1193_v61  }
  0xdb   :  { %1350 = vst [vmem:[%s2090_s4 + $0xc8] sm:$0xff] %v1263_v21  }
  0xdd   :  { %v1784_v17 = vpop.f32.mrf.mxu2 }
  0xde   :  { %v479_v0 = vpop.f32.mrf.mxu0  ;;  %v1752_v1 = vpop.f32.mrf.mxu1  ;;  %v1233_v20 = vpack.c.bf16 %v1784_v17, %v1772_v12 }
  0xdf   :  { %v1804_v28 = vpop.f32.mrf.mxu3  ;;  %v828_v46 = vmul.f32 %v479_v0, %v479_v0  ;;  %v755_v5 = vadd.f32 %v754_v50, %v479_v0 }
  0xe0   :  { %1344 = vst [vmem:[%s2090_s4 + $0x98] sm:$0xff] %v1233_v20  }
  0xe1   :  { %v891_v48 = vadd.f32 %v890_v14, %v828_v46 }
  0xe5   :  { %v1802_v27 = vpop.f32.mrf.mxu2 }
  0xe6   :  { %v481_v8 = vpop.f32.mrf.mxu0  ;;  %v1768_v9 = vpop.f32.mrf.mxu1 }
  0xe7   :  { %v1158_v10 = vpack.c.bf16 %v481_v8, %v479_v0  ;;  %v1198_v11 = vpack.c.bf16 %v1768_v9, %v1752_v1  ;;  %v1816_v33 = vpop.f32.mrf.mxu3  ;;  %v829_v61 = vmul.f32 %v481_v8, %v481_v8  ;;  %v756_v58 = vadd.f32 %v755_v5, %v481_v8 }
  0xe8   :  { %v1268_v36 = vpack.c.bf16 %v1816_v33, %v1804_v28 }
  0xe9   :  { %1329 = vst [vmem:[%s2090_s4 + $0x20] sm:$0xff] %v1158_v10   ;;  %v892_v6 = vadd.f32 %v891_v48, %v829_v61 }
  0xea   :  { %1337 = vst [vmem:[%s2090_s4 + $0x60] sm:$0xff] %v1198_v11  }
  0xeb   :  { %1351 = vst [vmem:[%s2090_s4 + $0xd0] sm:$0xff] %v1268_v36  }
  0xed   :  { %v1814_v32 = vpop.f32.mrf.mxu2 }
  0xee   :  { %v484_v15 = vpop.f32.mrf.mxu0  ;;  %v1782_v16 = vpop.f32.mrf.mxu1  ;;  %v1238_v35 = vpack.c.bf16 %v1814_v32, %v1802_v27 }
  0xef   :  { %v1836_v42 = vpop.f32.mrf.mxu3  ;;  %v830_v53 = vmul.f32 %v484_v15, %v484_v15  ;;  %v757_v11 = vadd.f32 %v756_v58, %v484_v15 }
  0xf0   :  { %1345 = vst [vmem:[%s2090_s4 + $0xa0] sm:$0xff] %v1238_v35  }
  0xf1   :  { %v893_v20 = vadd.f32 %v892_v6, %v830_v53  ;;  %v837_v6 = vmul.f32 %v1666_v2, %v1666_v2 }
  0xf5   :  { %v1834_v60 = vpop.f32.mrf.mxu2 }
  0xf6   :  { %v486_v22 = vpop.f32.mrf.mxu0  ;;  %v1798_v23 = vpop.f32.mrf.mxu1 }
  0xf7   :  { %v1163_v24 = vpack.c.bf16 %v486_v22, %v484_v15  ;;  %v1203_v25 = vpack.c.bf16 %v1798_v23, %v1782_v16  ;;  %v831_v10 = vmul.f32 %v486_v22, %v486_v22  ;;  %v758_v0 = vadd.f32 %v757_v11, %v486_v22  ;;  %v1848_v35 = vpop.f32.mrf.mxu3 }
  0xf8   :  { %v1273_v8 = vpack.c.bf16 %v1848_v35, %v1836_v42 }
  0xf9   :  { %1330 = vst [vmem:[%s2090_s4 + $0x28] sm:$0xff] %v1163_v24   ;;  %v894_v36 = vadd.f32 %v893_v20, %v831_v10  ;;  %v838_v20 = vmul.f32 %v1683_v18, %v1683_v18 }
  0xfa   :  { %1338 = vst [vmem:[%s2090_s4 + $0x68] sm:$0xff] %v1203_v25  }
  0xfb   :  { %1352 = vst [vmem:[%s2090_s4 + $0xd8] sm:$0xff] %v1273_v8  }
  0xfd   :  { %v1846_v34 = vpop.f32.mrf.mxu2 }
  0xfe   :  { %v489_v29 = vpop.f32.mrf.mxu0  ;;  %v1812_v30 = vpop.f32.mrf.mxu1  ;;  %v1243_v38 = vpack.c.bf16 %v1846_v34, %v1834_v60 }
  0xff   :  { %v832_v21 = vmul.f32 %v489_v29, %v489_v29  ;;  %v759_v39 = vadd.f32 %v758_v0, %v489_v29  ;;  %v1866_v48 = vpop.f32.mrf.mxu3 }
 0x100   :  { %1346 = vst [vmem:[%s2090_s4 + $0xa8] sm:$0xff] %v1243_v38  }
 0x101   :  { %v895_v15 = vadd.f32 %v894_v36, %v832_v21 }
 0x105   :  { %v1864_v5 = vpop.f32.mrf.mxu2 }
 0x106   :  { %v491_v47 = vpop.f32.mrf.mxu0  ;;  %v1830_v7 = vpop.f32.mrf.mxu1 }
 0x107   :  { %v1168_v51 = vpack.c.bf16 %v491_v47, %v489_v29  ;;  %v1208_v56 = vpack.c.bf16 %v1830_v7, %v1812_v30  ;;  %v833_v37 = vmul.f32 %v491_v47, %v491_v47  ;;  %v760_v22 = vadd.f32 %v759_v39, %v491_v47  ;;  %v1888_v38 = vpop.f32.mrf.mxu3 }
 0x108   :  { %v836_v47 = vmul.f32 %v1664_v57, %v1664_v57  ;;  %v1278_v8 = vpack.c.bf16 %v1888_v38, %v1866_v48 }
 0x109   :  { %1331 = vst [vmem:[%s2090_s4 + $0x30] sm:$0xff] %v1168_v51   ;;  %v896_v43 = vadd.f32 %v895_v15, %v833_v37 }
 0x10a   :  { %1339 = vst [vmem:[%s2090_s4 + $0x70] sm:$0xff] %v1208_v56  }
 0x10b   :  { %1353 = vst [vmem:[%s2090_s4 + $0xe0] sm:$0xff] %v1278_v8   ;;  %v849_v8 = vmul.f32 %v1830_v7, %v1830_v7 }
 0x10d   :  { %v1886_v37 = vpop.f32.mrf.mxu2 }
 0x10e   :  { %v494_v24 = vpop.f32.mrf.mxu0  ;;  %v1844_v25 = vpop.f32.mrf.mxu1 }
 0x10f   :  { %v834_v40 = vmul.f32 %v494_v24, %v494_v24  ;;  %v761_v45 = vadd.f32 %v760_v22, %v494_v24 }
 0x111   :  { %v897_v46 = vadd.f32 %v896_v43, %v834_v40  ;;  %v842_v43 = vmul.f32 %v1729_v54, %v1729_v54 }
 0x116   :  { %v496_v50 = vpop.f32.mrf.mxu0  ;;  %v1860_v51 = vpop.f32.mrf.mxu1 }
 0x117   :  { %v1173_v56 = vpack.c.bf16 %v496_v50, %v494_v24  ;;  %v762_v14 = vadd.f32 %v761_v45, %v496_v50  ;;  %v835_v29 = vmul.f32 %v496_v50, %v496_v50  ;;  %v1213_v61 = vpack.c.bf16 %v1860_v51, %v1844_v25 }
 0x119   :  { %1332 = vst [vmem:[%s2090_s4 + $0x38] sm:$0xff] %v1173_v56   ;;  %v763_v53 = vadd.f32 %v762_v14, %v1664_v57  ;;  %v898_v58 = vadd.f32 %v897_v46, %v835_v29  ;;  %v839_v57 = vmul.f32 %v1685_v26, %v1685_v26  ;;  %v843_v46 = vmul.f32 %v1738_v59, %v1738_v59  ;;  %v1912_v14 = vpop.f32.mrf.mxu2 }
 0x11a   :  { %1340 = vst [vmem:[%s2090_s4 + $0x78] sm:$0xff] %v1213_v61   ;;  %v844_v29 = vmul.f32 %v1752_v1, %v1752_v1 }
 0x11b   :  { %v764_v10 = vadd.f32 %v763_v53, %v1666_v2  ;;  %v899_v11 = vadd.f32 %v898_v58, %v836_v47  ;;  %v1248_v2 = vpack.c.bf16 %v1886_v37, %v1864_v5  ;;  %v845_v53 = vmul.f32 %v1768_v9, %v1768_v9 }
 0x11d   :  { %v765_v21 = vadd.f32 %v764_v10, %v1683_v18  ;;  %v900_v24 = vadd.f32 %v899_v11, %v837_v6  ;;  %v840_v18 = vmul.f32 %v1704_v41, %v1704_v41  ;;  %1347 = vst [vmem:[%s2090_s4 + $0xb0] sm:$0xff] %v1248_v2   ;;  %v847_v11 = vmul.f32 %v1798_v23, %v1798_v23 }
 0x11f   :  { %v766_v0 = vadd.f32 %v765_v21, %v1685_v26  ;;  %v901_v36 = vadd.f32 %v900_v24, %v838_v20  ;;  %v841_v26 = vmul.f32 %v1717_v49, %v1717_v49 }
 0x121   :  { %v767_v39 = vadd.f32 %v766_v0, %v1704_v41  ;;  %v902_v15 = vadd.f32 %v901_v36, %v839_v57 }
 0x123   :  { %v768_v40 = vadd.f32 %v767_v39, %v1717_v49  ;;  %v903_v22 = vadd.f32 %v902_v15, %v840_v18  ;;  %v1914_v49 = vpop.f32.mrf.mxu3 }
 0x125   :  { %v904_v45 = vadd.f32 %v903_v22, %v841_v26  ;;  %v769_v41 = vadd.f32 %v768_v40, %v1729_v54  ;;  %v851_v40 = vmul.f32 %v1860_v51, %v1860_v51 }
 0x127   :  { %v770_v50 = vadd.f32 %v769_v41, %v1738_v59  ;;  %v905_v56 = vadd.f32 %v904_v45, %v842_v43  ;;  %v846_v59 = vmul.f32 %v1782_v16, %v1782_v16  ;;  %v853_v41 = vmul.f32 %v1708_v44, %v1708_v44 }
 0x129   :  { %v771_v61 = vadd.f32 %v770_v50, %v1752_v1  ;;  %v906_v47 = vadd.f32 %v905_v56, %v843_v46  ;;  %v1928_v1 = vpop.f32.mrf.mxu2  ;;  %v854_v50 = vmul.f32 %v1721_v52, %v1721_v52 }
 0x12b   :  { %v772_v54 = vadd.f32 %v771_v61, %v1768_v9  ;;  %v907_v58 = vadd.f32 %v906_v47, %v844_v29  ;;  %v1930_v24 = vpop.f32.mrf.mxu3  ;;  %v1253_v9 = vpack.c.bf16 %v1928_v1, %v1912_v14  ;;  %v855_v29 = vmul.f32 %v1731_v55, %v1731_v55 }
 0x12c   :  { %v1283_v57 = vpack.c.bf16 %v1930_v24, %v1914_v49 }
 0x12d   :  { %v773_v6 = vadd.f32 %v772_v54, %v1782_v16  ;;  %v908_v10 = vadd.f32 %v907_v58, %v845_v53  ;;  %v848_v16 = vmul.f32 %v1812_v30, %v1812_v30  ;;  %1348 = vst [vmem:[%s2090_s4 + $0xb8] sm:$0xff] %v1253_v9  }
 0x12e   :  { %1354 = vst [vmem:[%s2090_s4 + $0xe8] sm:$0xff] %v1283_v57   ;;  %v860_v57 = vmul.f32 %v1802_v27, %v1802_v27 }
 0x12f   :  { %v774_v20 = vadd.f32 %v773_v6, %v1798_v23  ;;  %v909_v21 = vadd.f32 %v908_v10, %v846_v59  ;;  %v858_v6 = vmul.f32 %v1772_v12, %v1772_v12 }
 0x131   :  { %v775_v0 = vadd.f32 %v774_v20, %v1812_v30  ;;  %v910_v36 = vadd.f32 %v909_v21, %v847_v11  ;;  %v850_v30 = vmul.f32 %v1844_v25, %v1844_v25 }
 0x133   :  { %v911_v23 = vadd.f32 %v910_v36, %v848_v16  ;;  %v776_v2 = vadd.f32 %v775_v0, %v1830_v7  ;;  %v1954_v22 = vpop.f32.mrf.mxu3  ;;  %v852_v7 = vmul.f32 %v1689_v31, %v1689_v31  ;;  %v861_v16 = vmul.f32 %v1814_v32, %v1814_v32 }
 0x135   :  { %v912_v18 = vadd.f32 %v911_v23, %v849_v8  ;;  %v777_v39 = vadd.f32 %v776_v2, %v1844_v25  ;;  %v862_v23 = vmul.f32 %v1834_v60, %v1834_v60 }
 0x137   :  { %v913_v15 = vadd.f32 %v912_v18, %v850_v30  ;;  %v778_v26 = vadd.f32 %v777_v39, %v1860_v51  ;;  %v863_v18 = vmul.f32 %v1846_v34, %v1846_v34 }
 0x139   :  { %v779_v43 = vadd.f32 %v778_v26, %v1689_v31  ;;  %v914_v45 = vadd.f32 %v913_v15, %v851_v40  ;;  %v864_v26 = vmul.f32 %v1864_v5, %v1864_v5 }
 0x13b   :  { %v780_v46 = vadd.f32 %v779_v43, %v1708_v44  ;;  %v915_v25 = vadd.f32 %v914_v45, %v852_v7  ;;  %v1968_v31 = vpop.f32.mrf.mxu3  ;;  %v856_v44 = vmul.f32 %v1742_v62, %v1742_v62  ;;  %v866_v45 = vmul.f32 %v1912_v14, %v1912_v14 }
 0x13c   :  { %v1288_v53 = vpack.c.bf16 %v1968_v31, %v1954_v22 }
 0x13d   :  { %v781_v56 = vadd.f32 %v780_v46, %v1721_v52  ;;  %v916_v51 = vadd.f32 %v915_v25, %v853_v41  ;;  %v857_v52 = vmul.f32 %v1754_v3, %v1754_v3  ;;  %v1384_v25 = vmov 0.0  }
 0x13e   :  { %1355 = vst [vmem:[%s2090_s4 + $0xf0] sm:$0xff] %v1288_v53  }
 0x13f   :  { %v782_v61 = vadd.f32 %v781_v56, %v1731_v55  ;;  %v917_v47 = vadd.f32 %v916_v51, %v854_v50  ;;  %24 = vst [vmem:[%s2091_s5] sm:$0x1] %v1384_v25 }
 0x140   :  { %25 = vst [vmem:[%s2092_s6] sm:$0x1] %v1384_v25 }
 0x141   :  { %v783_v54 = vadd.f32 %v782_v61, %v1742_v62  ;;  %v918_v58 = vadd.f32 %v917_v47, %v855_v29  ;;  %v859_v62 = vmul.f32 %v1784_v17, %v1784_v17  ;;  %v870_v29 = vmul.f32 %v1774_v13, %v1774_v13 }
 0x143   :  { %v784_v55 = vadd.f32 %v783_v54, %v1754_v3  ;;  %v919_v59 = vadd.f32 %v918_v58, %v856_v44  ;;  %v1987_v9 = vpop.f32.mrf.mxu3  ;;  %v872_v54 = vmul.f32 %v1804_v28, %v1804_v28 }
 0x145   :  { %v920_v10 = vadd.f32 %v919_v59, %v857_v52  ;;  %v785_v11 = vadd.f32 %v784_v55, %v1772_v12 }
 0x147   :  { %v786_v20 = vadd.f32 %v785_v11, %v1784_v17  ;;  %v921_v21 = vadd.f32 %v920_v10, %v858_v6 }
 0x149   :  { %v787_v3 = vadd.f32 %v786_v20, %v1802_v27  ;;  %v922_v0 = vadd.f32 %v921_v21, %v859_v62 }
 0x14b   :  { %v788_v36 = vadd.f32 %v787_v3, %v1814_v32  ;;  %v923_v12 = vadd.f32 %v922_v0, %v860_v57  ;;  %v2001_v27 = vpop.f32.mrf.mxu3 }
 0x14c   :  { %v1293_v30 = vpack.c.bf16 %v2001_v27, %v1987_v9 }
 0x14d   :  { %v789_v17 = vadd.f32 %v788_v36, %v1834_v60  ;;  %v924_v2 = vadd.f32 %v923_v12, %v861_v16  ;;  %v879_v36 = vmul.f32 %v1930_v24, %v1930_v24 }
 0x14e   :  { %1356 = vst [vmem:[%s2090_s4 + $0xf8] sm:$0xff] %v1293_v30  }
 0x14f   :  { %v790_v8 = vadd.f32 %v789_v17, %v1846_v34  ;;  %v925_v39 = vadd.f32 %v924_v2, %v862_v23  ;;  %v865_v34 = vmul.f32 %v1886_v37, %v1886_v37  ;;  %v880_v17 = vmul.f32 %v1954_v22, %v1954_v22 }
 0x151   :  { %v926_v15 = vadd.f32 %v925_v39, %v863_v18  ;;  %v791_v32 = vadd.f32 %v790_v8, %v1864_v5  ;;  %v867_v5 = vmul.f32 %v1928_v1, %v1928_v1  ;;  %v881_v8 = vmul.f32 %v1968_v31, %v1968_v31 }
 0x152   :  { %v882_v39 = vmul.f32 %v1987_v9, %v1987_v9 }
 0x153   :  { %v927_v60 = vadd.f32 %v926_v15, %v864_v26  ;;  %v792_v40 = vadd.f32 %v791_v32, %v1886_v37  ;;  %v868_v37 = vmul.f32 %v1744_v63, %v1744_v63  ;;  %v883_v15 = vmul.f32 %v2001_v27, %v2001_v27 }
 0x155   :  { %v928_v7 = vadd.f32 %v927_v60, %v865_v34  ;;  %v793_v43 = vadd.f32 %v792_v40, %v1912_v14  ;;  %v869_v14 = vmul.f32 %v1756_v4, %v1756_v4 }
 0x157   :  { %v929_v41 = vadd.f32 %v928_v7, %v866_v45  ;;  %v794_v46 = vadd.f32 %v793_v43, %v1928_v1 }
 0x159   :  { %v795_v50 = vadd.f32 %v794_v46, %v1744_v63  ;;  %v930_v56 = vadd.f32 %v929_v41, %v867_v5  ;;  %v871_v63 = vmul.f32 %v1786_v19, %v1786_v19 }
 0x15b   :  { %v796_v1 = vadd.f32 %v795_v50, %v1756_v4  ;;  %v931_v51 = vadd.f32 %v930_v56, %v868_v37  ;;  %v873_v4 = vmul.f32 %v1816_v33, %v1816_v33 }
 0x15d   :  { %v797_v61 = vadd.f32 %v796_v1, %v1774_v13  ;;  %v932_v47 = vadd.f32 %v931_v51, %v869_v14  ;;  %v874_v13 = vmul.f32 %v1836_v42, %v1836_v42 }
 0x15f   :  { %v798_v53 = vadd.f32 %v797_v61, %v1786_v19  ;;  %v933_v44 = vadd.f32 %v932_v47, %v870_v29  ;;  %v875_v19 = vmul.f32 %v1848_v35, %v1848_v35 }
 0x161   :  { %v799_v58 = vadd.f32 %v798_v53, %v1804_v28  ;;  %v934_v52 = vadd.f32 %v933_v44, %v871_v63  ;;  %v876_v28 = vmul.f32 %v1866_v48, %v1866_v48 }
 0x163   :  { %v800_v55 = vadd.f32 %v799_v58, %v1816_v33  ;;  %v935_v59 = vadd.f32 %v934_v52, %v872_v54  ;;  %v877_v33 = vmul.f32 %v1888_v38, %v1888_v38 }
 0x165   :  { %v936_v6 = vadd.f32 %v935_v59, %v873_v4  ;;  %v801_v10 = vadd.f32 %v800_v55, %v1836_v42  ;;  %v878_v42 = vmul.f32 %v1914_v49, %v1914_v49 }
 0x167   :  { %v802_v11 = vadd.f32 %v801_v10, %v1848_v35  ;;  %v937_v62 = vadd.f32 %v936_v6, %v874_v13 }
 0x169   :  { %v803_v20 = vadd.f32 %v802_v11, %v1866_v48  ;;  %v938_v21 = vadd.f32 %v937_v62, %v875_v19 }
 0x16b   :  { %v804_v57 = vadd.f32 %v803_v20, %v1888_v38  ;;  %v939_v3 = vadd.f32 %v938_v21, %v876_v28 }
 0x16d   :  { %v805_v0 = vadd.f32 %v804_v57, %v1914_v49  ;;  %v940_v16 = vadd.f32 %v939_v3, %v877_v33 }
 0x16f   :  { %v806_v35 = vadd.f32 %v805_v0, %v1930_v24  ;;  %v941_v12 = vadd.f32 %v940_v16, %v878_v42 }
 0x171   :  { %v942_v48 = vadd.f32 %v941_v12, %v879_v36  ;;  %v807_v23 = vadd.f32 %v806_v35, %v1954_v22 }
 0x173   :  { %v943_v38 = vadd.f32 %v942_v48, %v880_v17  ;;  %v808_v2 = vadd.f32 %v807_v23, %v1968_v31 }
 0x175   :  { %v944_v49 = vadd.f32 %v943_v38, %v881_v8  ;;  %v809_v18 = vadd.f32 %v808_v2, %v1987_v9  ;;  %v747_v9 = vld [vmem:[%s2091_s5] sm:$0x1] }
 0x177   :  { %v945_v24 = vadd.f32 %v944_v49, %v882_v39  ;;  %v810_v30 = vadd.f32 %v809_v18, %v2001_v27  ;;  %v819_v27 = vld [vmem:[%s2092_s6] sm:$0x1] }
 0x179   :  { %v811_v32 = vrot.slane %v810_v30, 4  ;;  %v946_v22 = vadd.f32 %v945_v24, %v883_v15 }
 0x17b   :  { %v812_v26 = vadd.f32 %v811_v32, %v810_v30  ;;  %v947_v60 = vrot.slane %v946_v22, 4 }
 0x17d   :  { %v813_v40 = vrot.slane %v812_v26, 2  ;;  %v948_v34 = vadd.f32 %v947_v60, %v946_v22 }
 0x17f   :  { %v814_v7 = vadd.f32 %v813_v40, %v812_v26  ;;  %v949_v31 = vrot.slane %v948_v34, 2 }
 0x181   :  { %v815_v43 = vrot.slane %v814_v7, 1  ;;  %v950_v45 = vadd.f32 %v949_v31, %v948_v34 }
 0x183   :  { %v816_v41 = vadd.f32 %v815_v43, %v814_v7  ;;  %v951_v46 = vrot.slane %v950_v45, 1 }
 0x185   :  { %v817_v5 = vadd.f32 %v816_v41, %v747_v9  ;;  %v952_v25 = vadd.f32 %v951_v46, %v950_v45 }
 0x187   :  { %818 = vst [vmem:[%s2091_s5] sm:$0x1] %v817_v5  ;;  %v953_v37 = vadd.f32 %v952_v25, %v819_v27 }
 0x189   :  { %954 = vst [vmem:[%s2092_s6] sm:$0x1] %v953_v37 }

// kernel: btnk_forward.7
= control target key start
LH: loop header
LB: loop body
LE: loop exit
PB: predicated region body
PF: predicated region fallthrough
CT: control target
= control target key end

     0   :  { %s1788_s0 = inlined_call_operand.vmem [shape: bf16[512,128], index: 0, kind: input, shape index: {}]   ;;  %s1789_s1 = inlined_call_operand.vmem [shape: f32[1,128], index: 1, kind: input, shape index: {}]   ;;  %s1790_s2 = inlined_call_operand.vmem [shape: f32[1,128], index: 2, kind: input, shape index: {}]   ;;  %s1791_s3 = inlined_call_operand.vmem [shape: bf16[512,128], index: 3, kind: input, shape index: {}]   ;;  %s1792_s4 = inlined_call_operand.vmem [shape: f32[1,128], index: 4, kind: input, shape index: {}]   ;;  %s1793_s5 = inlined_call_operand.vmem [shape: f32[1,128], index: 5, kind: input, shape index: {}]   ;;  %s1794_s6 = inlined_call_operand.vmem [shape: f32[512,128], index: 6, kind: output, shape index: {}]  }
   0x1   :  { %v748_v0 = vld [vmem:[%s1788_s0] sm:$0xff]   ;;  %v1003_v12 = vld [vmem:[%s1788_s0 + $0x8] sm:$0xff]   ;;  %v1004_v18 = vld [vmem:[%s1788_s0 + $0x10] sm:$0xff]  }
   0x2   :  { %v1114_v1 = vld [vmem:[%s1789_s1] ss:$0 sm:$0xff]  ;;  %v749_v2 = vunpack.c.l.bf16 %v748_v0  ;;  %v750_v5 = vunpack.c.h.bf16 %v748_v0  ;;  %v1034_v13 = vld [vmem:[%s1791_s3 + $0x8] sm:$0xff]   ;;  %v753_v16 = vunpack.c.l.bf16 %v1003_v12  ;;  %v1035_v19 = vld [vmem:[%s1791_s3 + $0x10] sm:$0xff]   ;;  %v754_v22 = vunpack.c.h.bf16 %v1003_v12 }
   0x3   :  { %v1119_v3 = vld [vmem:[%s1790_s2] ss:$0 sm:$0xff]  ;;  %v881_v17 = vunpack.c.l.bf16 %v1034_v13  ;;  %v882_v23 = vunpack.c.h.bf16 %v1034_v13  ;;  %v757_v30 = vunpack.c.l.bf16 %v1004_v18  ;;  %v885_v31 = vunpack.c.l.bf16 %v1035_v19  ;;  %v1005_v40 = vld [vmem:[%s1788_s0 + $0x18] sm:$0xff]   ;;  %v1007_v12 = vld [vmem:[%s1788_s0 + $0x28] sm:$0xff]  }
   0x4   :  { %v876_v4 = vld [vmem:[%s1791_s3] sm:$0xff]   ;;  %v155_v9 = vmul.f32 %v1114_v1, %v749_v2  ;;  %v156_v11 = vmul.f32 %v1114_v1, %v750_v5  ;;  %v157_v26 = vmul.f32 %v1114_v1, %v753_v16  ;;  %v158_v28 = vmul.f32 %v1114_v1, %v754_v22  ;;  %v1036_v41 = vld [vmem:[%s1791_s3 + $0x18] sm:$0xff]  }
   0x5   :  { %v877_v6 = vunpack.c.l.bf16 %v876_v4  ;;  %v1127_v7 = vld [vmem:[%s1792_s4] ss:$0 sm:$0xff]  ;;  %v878_v8 = vunpack.c.h.bf16 %v876_v4  ;;  %v159_v38 = vmul.f32 %v1114_v1, %v757_v30  ;;  %v758_v45 = vunpack.c.h.bf16 %v1004_v18  ;;  %v1008_v30 = vld [vmem:[%s1788_s0 + $0x30] sm:$0xff]  }
   0x6   :  { %v1133_v10 = vld [vmem:[%s1793_s5] ss:$0 sm:$0xff]  ;;  %v223_v20 = vadd.f32 %v1119_v3, %v155_v9  ;;  %v224_v21 = vadd.f32 %v1119_v3, %v156_v11  ;;  %v421_v27 = vmul.f32 %v1127_v7, %v881_v17  ;;  %v422_v29 = vmul.f32 %v1127_v7, %v882_v23 }
   0x7   :  { %v419_v14 = vmul.f32 %v1127_v7, %v877_v6  ;;  %v420_v15 = vmul.f32 %v1127_v7, %v878_v8  ;;  %v225_v34 = vadd.f32 %v1119_v3, %v157_v26  ;;  %v226_v36 = vadd.f32 %v1119_v3, %v158_v28  ;;  %v1006_v54 = vld [vmem:[%s1788_s0 + $0x20] sm:$0xff]  }
   0x8   :  { %v489_v35 = vadd.f32 %v1133_v10, %v421_v27  ;;  %v490_v37 = vadd.f32 %v1133_v10, %v422_v29  ;;  %v423_v39 = vmul.f32 %v1127_v7, %v885_v31  ;;  %v227_v47 = vadd.f32 %v1119_v3, %v159_v38  ;;  %v1037_v59 = vld [vmem:[%s1791_s3 + $0x20] sm:$0xff]  }
   0x9   :  { %v487_v24 = vadd.f32 %v1133_v10, %v419_v14  ;;  %v488_v25 = vadd.f32 %v1133_v10, %v420_v15  ;;  %v886_v49 = vunpack.c.h.bf16 %v1035_v19  ;;  %v160_v51 = vmul.f32 %v1114_v1, %v758_v45 }
   0xa   :  { %v553_v44 = vadd.f32 %v489_v35, %v225_v34  ;;  %v554_v46 = vadd.f32 %v490_v37, %v226_v36  ;;  %v491_v48 = vadd.f32 %v1133_v10, %v423_v39  ;;  %v761_v52 = vunpack.c.l.bf16 %v1005_v40  ;;  %v1039_v35 = vld [vmem:[%s1791_s3 + $0x30] sm:$0xff]  }
   0xb   :  { %v551_v32 = vadd.f32 %v487_v24, %v223_v20  ;;  %v552_v33 = vadd.f32 %v488_v25, %v224_v21  ;;  %v889_v53 = vunpack.c.l.bf16 %v1036_v41  ;;  %v424_v57 = vmul.f32 %v1127_v7, %v886_v49  ;;  %v1038_v21 = vld [vmem:[%s1791_s3 + $0x28] sm:$0xff]  }
   0xc   :  { %v617_v50 = vmax.f32 %v553_v44, 0.0  ;;  %v618_v55 = vmax.f32 %v554_v46, 0.0  ;;  %v555_v56 = vadd.f32 %v491_v48, %v227_v47  ;;  %v762_v58 = vunpack.c.h.bf16 %v1005_v40  ;;  %v1009_v48 = vld [vmem:[%s1788_s0 + $0x38] sm:$0xff]  }
   0xd   :  { %v615_v42 = vmax.f32 %v551_v32, 0.0  ;;  %v616_v43 = vmax.f32 %v552_v33, 0.0  ;;  %v228_v60 = vadd.f32 %v1119_v3, %v160_v51  ;;  %v161_v61 = vmul.f32 %v1114_v1, %v761_v52 }
   0xe   :  { %681 = vst [vmem:[%s1794_s6 + $0x10] sm:$0xff] %v617_v50  ;;  %v425_v62 = vmul.f32 %v1127_v7, %v889_v53  ;;  %v890_v63 = vunpack.c.h.bf16 %v1036_v41  ;;  %v619_v0 = vmax.f32 %v555_v56, 0.0  ;;  %v492_v2 = vadd.f32 %v1133_v10, %v424_v57  ;;  %v1040_v53 = vld [vmem:[%s1791_s3 + $0x38] sm:$0xff]  }
   0xf   :  { %679 = vst [vmem:[%s1794_s6] sm:$0xff] %v615_v42  ;;  %v162_v4 = vmul.f32 %v1114_v1, %v762_v58  ;;  %v765_v5 = vunpack.c.l.bf16 %v1006_v54  ;;  %v229_v6 = vadd.f32 %v1119_v3, %v161_v61  ;;  %v893_v11 = vunpack.c.l.bf16 %v1037_v59 }
  0x10   :  { %680 = vst [vmem:[%s1794_s6 + $0x8] sm:$0xff] %v616_v43  ;;  %v493_v8 = vadd.f32 %v1133_v10, %v425_v62  ;;  %v426_v9 = vmul.f32 %v1127_v7, %v890_v63  ;;  %v556_v13 = vadd.f32 %v492_v2, %v228_v60  ;;  %v766_v16 = vunpack.c.h.bf16 %v1006_v54 }
  0x11   :  { %682 = vst [vmem:[%s1794_s6 + $0x18] sm:$0xff] %v618_v55  ;;  %v230_v14 = vadd.f32 %v1119_v3, %v162_v4  ;;  %v163_v15 = vmul.f32 %v1114_v1, %v765_v5  ;;  %v427_v19 = vmul.f32 %v1127_v7, %v893_v11  ;;  %v894_v20 = vunpack.c.h.bf16 %v1037_v59  ;;  %v1010_v4 = vld [vmem:[%s1788_s0 + $0x40] sm:$0xff]  }
  0x12   :  { %683 = vst [vmem:[%s1794_s6 + $0x20] sm:$0xff] %v619_v0  ;;  %v557_v17 = vadd.f32 %v493_v8, %v229_v6  ;;  %v494_v18 = vadd.f32 %v1133_v10, %v426_v9  ;;  %v620_v22 = vmax.f32 %v556_v13, 0.0  ;;  %v164_v24 = vmul.f32 %v1114_v1, %v766_v16  ;;  %v1041_v11 = vld [vmem:[%s1791_s3 + $0x40] sm:$0xff]  }
  0x13   :  { %v231_v23 = vadd.f32 %v1119_v3, %v163_v15  ;;  %v769_v25 = vunpack.c.l.bf16 %v1007_v12  ;;  %v495_v28 = vadd.f32 %v1133_v10, %v427_v19  ;;  %v428_v29 = vmul.f32 %v1127_v7, %v894_v20 }
  0x14   :  { %v621_v26 = vmax.f32 %v557_v17, 0.0  ;;  %v558_v27 = vadd.f32 %v494_v18, %v230_v14  ;;  %684 = vst [vmem:[%s1794_s6 + $0x28] sm:$0xff] %v620_v22  ;;  %v232_v31 = vadd.f32 %v1119_v3, %v164_v24  ;;  %v897_v33 = vunpack.c.l.bf16 %v1038_v21  ;;  %v1011_v24 = vld [vmem:[%s1788_s0 + $0x48] sm:$0xff]  }
  0x15   :  { %v165_v32 = vmul.f32 %v1114_v1, %v769_v25  ;;  %v770_v34 = vunpack.c.h.bf16 %v1007_v12  ;;  %v559_v37 = vadd.f32 %v495_v28, %v231_v23  ;;  %v496_v38 = vadd.f32 %v1133_v10, %v428_v29  ;;  %v1042_v29 = vld [vmem:[%s1791_s3 + $0x48] sm:$0xff]  }
  0x16   :  { %685 = vst [vmem:[%s1794_s6 + $0x30] sm:$0xff] %v621_v26  ;;  %v622_v36 = vmax.f32 %v558_v27, 0.0  ;;  %v898_v39 = vunpack.c.h.bf16 %v1038_v21  ;;  %v429_v41 = vmul.f32 %v1127_v7, %v897_v33  ;;  %v773_v43 = vunpack.c.l.bf16 %v1008_v30 }
  0x17   :  { %v233_v40 = vadd.f32 %v1119_v3, %v165_v32  ;;  %v166_v42 = vmul.f32 %v1114_v1, %v770_v34  ;;  %v623_v44 = vmax.f32 %v559_v37, 0.0  ;;  %v560_v45 = vadd.f32 %v496_v38, %v232_v31 }
  0x18   :  { %686 = vst [vmem:[%s1794_s6 + $0x38] sm:$0xff] %v622_v36  ;;  %v430_v46 = vmul.f32 %v1127_v7, %v898_v39  ;;  %v901_v47 = vunpack.c.l.bf16 %v1039_v35  ;;  %v497_v49 = vadd.f32 %v1133_v10, %v429_v41  ;;  %v167_v51 = vmul.f32 %v1114_v1, %v773_v43 }
  0x19   :  { %v234_v50 = vadd.f32 %v1119_v3, %v166_v42  ;;  %v774_v52 = vunpack.c.h.bf16 %v1008_v30  ;;  %687 = vst [vmem:[%s1794_s6 + $0x40] sm:$0xff] %v623_v44  ;;  %v624_v54 = vmax.f32 %v560_v45, 0.0  ;;  %v902_v57 = vunpack.c.h.bf16 %v1039_v35  ;;  %v1012_v42 = vld [vmem:[%s1788_s0 + $0x50] sm:$0xff]  }
  0x1a   :  { %v498_v55 = vadd.f32 %v1133_v10, %v430_v46  ;;  %v431_v56 = vmul.f32 %v1127_v7, %v901_v47  ;;  %v561_v58 = vadd.f32 %v497_v49, %v233_v40  ;;  %v235_v59 = vadd.f32 %v1119_v3, %v167_v51  ;;  %v1043_v51 = vld [vmem:[%s1791_s3 + $0x50] sm:$0xff]  }
  0x1b   :  { %v168_v60 = vmul.f32 %v1114_v1, %v774_v52  ;;  %v777_v61 = vunpack.c.l.bf16 %v1009_v48  ;;  %688 = vst [vmem:[%s1794_s6 + $0x48] sm:$0xff] %v624_v54  ;;  %v432_v0 = vmul.f32 %v1127_v7, %v902_v57  ;;  %v905_v2 = vunpack.c.l.bf16 %v1040_v53 }
  0x1c   :  { %v562_v62 = vadd.f32 %v498_v55, %v234_v50  ;;  %v499_v63 = vadd.f32 %v1133_v10, %v431_v56  ;;  %v625_v5 = vmax.f32 %v561_v58, 0.0  ;;  %v778_v9 = vunpack.c.h.bf16 %v1009_v48 }
  0x1d   :  { %v236_v6 = vadd.f32 %v1119_v3, %v168_v60  ;;  %v169_v8 = vmul.f32 %v1114_v1, %v777_v61  ;;  %v500_v14 = vadd.f32 %v1133_v10, %v432_v0  ;;  %v433_v15 = vmul.f32 %v1127_v7, %v905_v2  ;;  %v1013_v60 = vld [vmem:[%s1788_s0 + $0x58] sm:$0xff]  }
  0x1e   :  { %v626_v12 = vmax.f32 %v562_v62, 0.0  ;;  %v563_v13 = vadd.f32 %v499_v63, %v235_v59  ;;  %689 = vst [vmem:[%s1794_s6 + $0x50] sm:$0xff] %v625_v5  ;;  %v170_v17 = vmul.f32 %v1114_v1, %v778_v9  ;;  %v906_v18 = vunpack.c.h.bf16 %v1040_v53  ;;  %v1044_v2 = vld [vmem:[%s1791_s3 + $0x58] sm:$0xff]  }
  0x1f   :  { %v237_v16 = vadd.f32 %v1119_v3, %v169_v8  ;;  %v781_v19 = vunpack.c.l.bf16 %v1010_v4  ;;  %v564_v21 = vadd.f32 %v500_v14, %v236_v6  ;;  %v501_v22 = vadd.f32 %v1133_v10, %v433_v15 }
  0x20   :  { %690 = vst [vmem:[%s1794_s6 + $0x58] sm:$0xff] %v626_v12  ;;  %v627_v20 = vmax.f32 %v563_v13, 0.0  ;;  %v909_v23 = vunpack.c.l.bf16 %v1041_v11  ;;  %v238_v25 = vadd.f32 %v1119_v3, %v170_v17  ;;  %v434_v26 = vmul.f32 %v1127_v7, %v906_v18  ;;  %v1014_v18 = vld [vmem:[%s1788_s0 + $0x60] sm:$0xff]  }
  0x21   :  { %v171_v27 = vmul.f32 %v1114_v1, %v781_v19  ;;  %v782_v28 = vunpack.c.h.bf16 %v1010_v4  ;;  %v628_v30 = vmax.f32 %v564_v21, 0.0  ;;  %v565_v31 = vadd.f32 %v501_v22, %v237_v16 }
  0x22   :  { %691 = vst [vmem:[%s1794_s6 + $0x60] sm:$0xff] %v627_v20  ;;  %v435_v32 = vmul.f32 %v1127_v7, %v909_v23  ;;  %v910_v33 = vunpack.c.h.bf16 %v1041_v11  ;;  %v502_v34 = vadd.f32 %v1133_v10, %v434_v26  ;;  %v785_v37 = vunpack.c.l.bf16 %v1011_v24  ;;  %v1045_v23 = vld [vmem:[%s1791_s3 + $0x60] sm:$0xff]  }
  0x23   :  { %v239_v35 = vadd.f32 %v1119_v3, %v171_v27  ;;  %v172_v36 = vmul.f32 %v1114_v1, %v782_v28  ;;  %692 = vst [vmem:[%s1794_s6 + $0x68] sm:$0xff] %v628_v30  ;;  %v629_v38 = vmax.f32 %v565_v31, 0.0  ;;  %v913_v41 = vunpack.c.l.bf16 %v1042_v29 }
  0x24   :  { %v503_v39 = vadd.f32 %v1133_v10, %v435_v32  ;;  %v436_v40 = vmul.f32 %v1127_v7, %v910_v33  ;;  %v566_v43 = vadd.f32 %v502_v34, %v238_v25  ;;  %v173_v45 = vmul.f32 %v1114_v1, %v785_v37 }
  0x25   :  { %v240_v44 = vadd.f32 %v1119_v3, %v172_v36  ;;  %v786_v46 = vunpack.c.h.bf16 %v1011_v24  ;;  %693 = vst [vmem:[%s1794_s6 + $0x70] sm:$0xff] %v629_v38  ;;  %v437_v49 = vmul.f32 %v1127_v7, %v913_v41  ;;  %v914_v50 = vunpack.c.h.bf16 %v1042_v29  ;;  %v1015_v36 = vld [vmem:[%s1788_s0 + $0x68] sm:$0xff]  }
  0x26   :  { %v567_v47 = vadd.f32 %v503_v39, %v239_v35  ;;  %v504_v48 = vadd.f32 %v1133_v10, %v436_v40  ;;  %v630_v52 = vmax.f32 %v566_v43, 0.0  ;;  %v241_v53 = vadd.f32 %v1119_v3, %v173_v45  ;;  %v1046_v41 = vld [vmem:[%s1791_s3 + $0x68] sm:$0xff]  }
  0x27   :  { %v174_v54 = vmul.f32 %v1114_v1, %v786_v46  ;;  %v789_v55 = vunpack.c.l.bf16 %v1012_v42  ;;  %v505_v58 = vadd.f32 %v1133_v10, %v437_v49  ;;  %v438_v59 = vmul.f32 %v1127_v7, %v914_v50 }
  0x28   :  { %v631_v56 = vmax.f32 %v567_v47, 0.0  ;;  %v568_v57 = vadd.f32 %v504_v48, %v240_v44  ;;  %694 = vst [vmem:[%s1794_s6 + $0x78] sm:$0xff] %v630_v52  ;;  %v917_v63 = vunpack.c.l.bf16 %v1043_v51  ;;  %v790_v0 = vunpack.c.h.bf16 %v1012_v42 }
  0x29   :  { %v242_v61 = vadd.f32 %v1119_v3, %v174_v54  ;;  %v175_v62 = vmul.f32 %v1114_v1, %v789_v55  ;;  %v569_v5 = vadd.f32 %v505_v58, %v241_v53  ;;  %v506_v6 = vadd.f32 %v1133_v10, %v438_v59  ;;  %v1016_v54 = vld [vmem:[%s1788_s0 + $0x70] sm:$0xff]  }
  0x2a   :  { %695 = vst [vmem:[%s1794_s6 + $0x80] sm:$0xff] %v631_v56  ;;  %v632_v4 = vmax.f32 %v568_v57, 0.0  ;;  %v918_v8 = vunpack.c.h.bf16 %v1043_v51  ;;  %v439_v11 = vmul.f32 %v1127_v7, %v917_v63  ;;  %v176_v12 = vmul.f32 %v1114_v1, %v790_v0  ;;  %v1047_v59 = vld [vmem:[%s1791_s3 + $0x70] sm:$0xff]  }
  0x2b   :  { %v243_v9 = vadd.f32 %v1119_v3, %v175_v62  ;;  %v793_v13 = vunpack.c.l.bf16 %v1013_v60  ;;  %v633_v14 = vmax.f32 %v569_v5, 0.0  ;;  %v570_v15 = vadd.f32 %v506_v6, %v242_v61 }
  0x2c   :  { %696 = vst [vmem:[%s1794_s6 + $0x88] sm:$0xff] %v632_v4  ;;  %v440_v16 = vmul.f32 %v1127_v7, %v918_v8  ;;  %v921_v17 = vunpack.c.l.bf16 %v1044_v2  ;;  %v507_v19 = vadd.f32 %v1133_v10, %v439_v11  ;;  %v244_v20 = vadd.f32 %v1119_v3, %v176_v12  ;;  %v1017_v12 = vld [vmem:[%s1788_s0 + $0x78] sm:$0xff]  }
  0x2d   :  { %v177_v21 = vmul.f32 %v1114_v1, %v793_v13  ;;  %v794_v22 = vunpack.c.h.bf16 %v1013_v60  ;;  %697 = vst [vmem:[%s1794_s6 + $0x90] sm:$0xff] %v633_v14  ;;  %v634_v24 = vmax.f32 %v570_v15, 0.0  ;;  %v922_v27 = vunpack.c.h.bf16 %v1044_v2 }
  0x2e   :  { %v508_v25 = vadd.f32 %v1133_v10, %v440_v16  ;;  %v441_v26 = vmul.f32 %v1127_v7, %v921_v17  ;;  %v571_v28 = vadd.f32 %v507_v19, %v243_v9  ;;  %v797_v31 = vunpack.c.l.bf16 %v1014_v18 }
  0x2f   :  { %v245_v29 = vadd.f32 %v1119_v3, %v177_v21  ;;  %v178_v30 = vmul.f32 %v1114_v1, %v794_v22  ;;  %698 = vst [vmem:[%s1794_s6 + $0x98] sm:$0xff] %v634_v24  ;;  %v442_v34 = vmul.f32 %v1127_v7, %v922_v27  ;;  %v925_v35 = vunpack.c.l.bf16 %v1045_v23  ;;  %v1048_v21 = vld [vmem:[%s1791_s3 + $0x78] sm:$0xff]  }
  0x30   :  { %v572_v32 = vadd.f32 %v508_v25, %v244_v20  ;;  %v509_v33 = vadd.f32 %v1133_v10, %v441_v26  ;;  %v635_v37 = vmax.f32 %v571_v28, 0.0  ;;  %v179_v39 = vmul.f32 %v1114_v1, %v797_v31 }
  0x31   :  { %v246_v38 = vadd.f32 %v1119_v3, %v178_v30  ;;  %v798_v40 = vunpack.c.h.bf16 %v1014_v18  ;;  %v510_v44 = vadd.f32 %v1133_v10, %v442_v34  ;;  %v443_v45 = vmul.f32 %v1127_v7, %v925_v35  ;;  %v1018_v30 = vld [vmem:[%s1788_s0 + $0x80] sm:$0xff]  }
  0x32   :  { %v636_v42 = vmax.f32 %v572_v32, 0.0  ;;  %v573_v43 = vadd.f32 %v509_v33, %v245_v29  ;;  %699 = vst [vmem:[%s1794_s6 + $0xa0] sm:$0xff] %v635_v37  ;;  %v247_v46 = vadd.f32 %v1119_v3, %v179_v39  ;;  %v926_v48 = vunpack.c.h.bf16 %v1045_v23  ;;  %v1049_v35 = vld [vmem:[%s1791_s3 + $0x80] sm:$0xff]  }
  0x33   :  { %v180_v47 = vmul.f32 %v1114_v1, %v798_v40  ;;  %v801_v49 = vunpack.c.l.bf16 %v1015_v36  ;;  %v574_v51 = vadd.f32 %v510_v44, %v246_v38  ;;  %v511_v52 = vadd.f32 %v1133_v10, %v443_v45 }
  0x34   :  { %700 = vst [vmem:[%s1794_s6 + $0xa8] sm:$0xff] %v636_v42  ;;  %v637_v50 = vmax.f32 %v573_v43, 0.0  ;;  %v929_v53 = vunpack.c.l.bf16 %v1046_v41  ;;  %v444_v56 = vmul.f32 %v1127_v7, %v926_v48  ;;  %v802_v58 = vunpack.c.h.bf16 %v1015_v36  ;;  %v1019_v48 = vld [vmem:[%s1788_s0 + $0x88] sm:$0xff]  }
  0x35   :  { %v248_v55 = vadd.f32 %v1119_v3, %v180_v47  ;;  %v181_v57 = vmul.f32 %v1114_v1, %v801_v49  ;;  %v638_v60 = vmax.f32 %v574_v51, 0.0  ;;  %v575_v61 = vadd.f32 %v511_v52, %v247_v46 }
  0x36   :  { %701 = vst [vmem:[%s1794_s6 + $0xb0] sm:$0xff] %v637_v50  ;;  %v445_v62 = vmul.f32 %v1127_v7, %v929_v53  ;;  %v930_v63 = vunpack.c.h.bf16 %v1046_v41  ;;  %v512_v0 = vadd.f32 %v1133_v10, %v444_v56  ;;  %v182_v4 = vmul.f32 %v1114_v1, %v802_v58  ;;  %v1050_v53 = vld [vmem:[%s1791_s3 + $0x88] sm:$0xff]  }
  0x37   :  { %v249_v2 = vadd.f32 %v1119_v3, %v181_v57  ;;  %v805_v5 = vunpack.c.l.bf16 %v1016_v54  ;;  %702 = vst [vmem:[%s1794_s6 + $0xb8] sm:$0xff] %v638_v60  ;;  %v639_v6 = vmax.f32 %v575_v61, 0.0  ;;  %v933_v11 = vunpack.c.l.bf16 %v1047_v59 }
  0x38   :  { %v513_v8 = vadd.f32 %v1133_v10, %v445_v62  ;;  %v446_v9 = vmul.f32 %v1127_v7, %v930_v63  ;;  %v576_v13 = vadd.f32 %v512_v0, %v248_v55  ;;  %v250_v14 = vadd.f32 %v1119_v3, %v182_v4  ;;  %v1020_v4 = vld [vmem:[%s1788_s0 + $0x90] sm:$0xff]  }
  0x39   :  { %v183_v15 = vmul.f32 %v1114_v1, %v805_v5  ;;  %v806_v16 = vunpack.c.h.bf16 %v1016_v54  ;;  %703 = vst [vmem:[%s1794_s6 + $0xc0] sm:$0xff] %v639_v6  ;;  %v447_v19 = vmul.f32 %v1127_v7, %v933_v11  ;;  %v934_v20 = vunpack.c.h.bf16 %v1047_v59  ;;  %v1051_v11 = vld [vmem:[%s1791_s3 + $0x90] sm:$0xff]  }
  0x3a   :  { %v577_v17 = vadd.f32 %v513_v8, %v249_v2  ;;  %v514_v18 = vadd.f32 %v1133_v10, %v446_v9  ;;  %v640_v22 = vmax.f32 %v576_v13, 0.0  ;;  %v809_v25 = vunpack.c.l.bf16 %v1017_v12 }
  0x3b   :  { %v251_v23 = vadd.f32 %v1119_v3, %v183_v15  ;;  %v184_v24 = vmul.f32 %v1114_v1, %v806_v16  ;;  %v515_v28 = vadd.f32 %v1133_v10, %v447_v19  ;;  %v448_v29 = vmul.f32 %v1127_v7, %v934_v20 }
  0x3c   :  { %v641_v26 = vmax.f32 %v577_v17, 0.0  ;;  %v578_v27 = vadd.f32 %v514_v18, %v250_v14  ;;  %704 = vst [vmem:[%s1794_s6 + $0xc8] sm:$0xff] %v640_v22  ;;  %v185_v32 = vmul.f32 %v1114_v1, %v809_v25  ;;  %v937_v33 = vunpack.c.l.bf16 %v1048_v21 }
  0x3d   :  { %v252_v31 = vadd.f32 %v1119_v3, %v184_v24  ;;  %v810_v34 = vunpack.c.h.bf16 %v1017_v12  ;;  %v579_v37 = vadd.f32 %v515_v28, %v251_v23  ;;  %v516_v38 = vadd.f32 %v1133_v10, %v448_v29  ;;  %v1021_v24 = vld [vmem:[%s1788_s0 + $0x98] sm:$0xff]  }
  0x3e   :  { %705 = vst [vmem:[%s1794_s6 + $0xd0] sm:$0xff] %v641_v26  ;;  %v642_v36 = vmax.f32 %v578_v27, 0.0  ;;  %v938_v39 = vunpack.c.h.bf16 %v1048_v21  ;;  %v253_v40 = vadd.f32 %v1119_v3, %v185_v32  ;;  %v449_v41 = vmul.f32 %v1127_v7, %v937_v33  ;;  %v1052_v29 = vld [vmem:[%s1791_s3 + $0x98] sm:$0xff]  }
  0x3f   :  { %v186_v42 = vmul.f32 %v1114_v1, %v810_v34  ;;  %v813_v43 = vunpack.c.l.bf16 %v1018_v30  ;;  %v643_v44 = vmax.f32 %v579_v37, 0.0  ;;  %v580_v45 = vadd.f32 %v516_v38, %v252_v31 }
  0x40   :  { %706 = vst [vmem:[%s1794_s6 + $0xd8] sm:$0xff] %v642_v36  ;;  %v450_v46 = vmul.f32 %v1127_v7, %v938_v39  ;;  %v941_v47 = vunpack.c.l.bf16 %v1049_v35  ;;  %v517_v49 = vadd.f32 %v1133_v10, %v449_v41  ;;  %v814_v52 = vunpack.c.h.bf16 %v1018_v30 }
  0x41   :  { %v254_v50 = vadd.f32 %v1119_v3, %v186_v42  ;;  %v187_v51 = vmul.f32 %v1114_v1, %v813_v43  ;;  %707 = vst [vmem:[%s1794_s6 + $0xe0] sm:$0xff] %v643_v44  ;;  %v644_v54 = vmax.f32 %v580_v45, 0.0  ;;  %v942_v57 = vunpack.c.h.bf16 %v1049_v35  ;;  %v1022_v42 = vld [vmem:[%s1788_s0 + $0xa0] sm:$0xff]  }
  0x42   :  { %v518_v55 = vadd.f32 %v1133_v10, %v450_v46  ;;  %v451_v56 = vmul.f32 %v1127_v7, %v941_v47  ;;  %v581_v58 = vadd.f32 %v517_v49, %v253_v40  ;;  %v188_v60 = vmul.f32 %v1114_v1, %v814_v52 }
  0x43   :  { %v255_v59 = vadd.f32 %v1119_v3, %v187_v51  ;;  %v817_v61 = vunpack.c.l.bf16 %v1019_v48  ;;  %708 = vst [vmem:[%s1794_s6 + $0xe8] sm:$0xff] %v644_v54  ;;  %v452_v0 = vmul.f32 %v1127_v7, %v942_v57  ;;  %v945_v2 = vunpack.c.l.bf16 %v1050_v53  ;;  %v1053_v51 = vld [vmem:[%s1791_s3 + $0xa0] sm:$0xff]  }
  0x44   :  { %v582_v62 = vadd.f32 %v518_v55, %v254_v50  ;;  %v519_v63 = vadd.f32 %v1133_v10, %v451_v56  ;;  %v645_v5 = vmax.f32 %v581_v58, 0.0  ;;  %v256_v6 = vadd.f32 %v1119_v3, %v188_v60  ;;  %v1023_v60 = vld [vmem:[%s1788_s0 + $0xa8] sm:$0xff]  }
  0x45   :  { %v189_v8 = vmul.f32 %v1114_v1, %v817_v61  ;;  %v818_v9 = vunpack.c.h.bf16 %v1019_v48  ;;  %v520_v14 = vadd.f32 %v1133_v10, %v452_v0  ;;  %v453_v15 = vmul.f32 %v1127_v7, %v945_v2  ;;  %v1054_v2 = vld [vmem:[%s1791_s3 + $0xa8] sm:$0xff]  }
  0x46   :  { %v646_v12 = vmax.f32 %v582_v62, 0.0  ;;  %v583_v13 = vadd.f32 %v519_v63, %v255_v59  ;;  %709 = vst [vmem:[%s1794_s6 + $0xf0] sm:$0xff] %v645_v5  ;;  %v946_v18 = vunpack.c.h.bf16 %v1050_v53  ;;  %v821_v19 = vunpack.c.l.bf16 %v1020_v4 }
  0x47   :  { %v257_v16 = vadd.f32 %v1119_v3, %v189_v8  ;;  %v190_v17 = vmul.f32 %v1114_v1, %v818_v9  ;;  %v584_v21 = vadd.f32 %v520_v14, %v256_v6  ;;  %v521_v22 = vadd.f32 %v1133_v10, %v453_v15 }
  0x48   :  { %710 = vst [vmem:[%s1794_s6 + $0xf8] sm:$0xff] %v646_v12  ;;  %v647_v20 = vmax.f32 %v583_v13, 0.0  ;;  %v949_v23 = vunpack.c.l.bf16 %v1051_v11  ;;  %v454_v26 = vmul.f32 %v1127_v7, %v946_v18  ;;  %v191_v27 = vmul.f32 %v1114_v1, %v821_v19  ;;  %v1024_v18 = vld [vmem:[%s1788_s0 + $0xb0] sm:$0xff]  }
  0x49   :  { %v258_v25 = vadd.f32 %v1119_v3, %v190_v17  ;;  %v822_v28 = vunpack.c.h.bf16 %v1020_v4  ;;  %v648_v30 = vmax.f32 %v584_v21, 0.0  ;;  %v585_v31 = vadd.f32 %v521_v22, %v257_v16 }
  0x4a   :  { %711 = vst [vmem:[%s1794_s6 + $0x100] sm:$0xff] %v647_v20  ;;  %v455_v32 = vmul.f32 %v1127_v7, %v949_v23  ;;  %v950_v33 = vunpack.c.h.bf16 %v1051_v11  ;;  %v522_v34 = vadd.f32 %v1133_v10, %v454_v26  ;;  %v259_v35 = vadd.f32 %v1119_v3, %v191_v27  ;;  %v1055_v23 = vld [vmem:[%s1791_s3 + $0xb0] sm:$0xff]  }
  0x4b   :  { %v192_v36 = vmul.f32 %v1114_v1, %v822_v28  ;;  %v825_v37 = vunpack.c.l.bf16 %v1021_v24  ;;  %712 = vst [vmem:[%s1794_s6 + $0x108] sm:$0xff] %v648_v30  ;;  %v649_v38 = vmax.f32 %v585_v31, 0.0  ;;  %v953_v41 = vunpack.c.l.bf16 %v1052_v29 }
  0x4c   :  { %v523_v39 = vadd.f32 %v1133_v10, %v455_v32  ;;  %v456_v40 = vmul.f32 %v1127_v7, %v950_v33  ;;  %v586_v43 = vadd.f32 %v522_v34, %v258_v25  ;;  %v826_v46 = vunpack.c.h.bf16 %v1021_v24 }
  0x4d   :  { %v260_v44 = vadd.f32 %v1119_v3, %v192_v36  ;;  %v193_v45 = vmul.f32 %v1114_v1, %v825_v37  ;;  %713 = vst [vmem:[%s1794_s6 + $0x110] sm:$0xff] %v649_v38  ;;  %v457_v49 = vmul.f32 %v1127_v7, %v953_v41  ;;  %v954_v50 = vunpack.c.h.bf16 %v1052_v29  ;;  %v1025_v36 = vld [vmem:[%s1788_s0 + $0xb8] sm:$0xff]  }
  0x4e   :  { %v587_v47 = vadd.f32 %v523_v39, %v259_v35  ;;  %v524_v48 = vadd.f32 %v1133_v10, %v456_v40  ;;  %v650_v52 = vmax.f32 %v586_v43, 0.0  ;;  %v194_v54 = vmul.f32 %v1114_v1, %v826_v46  ;;  %v1056_v41 = vld [vmem:[%s1791_s3 + $0xb8] sm:$0xff]  }
  0x4f   :  { %v261_v53 = vadd.f32 %v1119_v3, %v193_v45  ;;  %v829_v55 = vunpack.c.l.bf16 %v1022_v42  ;;  %v525_v58 = vadd.f32 %v1133_v10, %v457_v49  ;;  %v458_v59 = vmul.f32 %v1127_v7, %v954_v50 }
  0x50   :  { %v651_v56 = vmax.f32 %v587_v47, 0.0  ;;  %v588_v57 = vadd.f32 %v524_v48, %v260_v44  ;;  %714 = vst [vmem:[%s1794_s6 + $0x118] sm:$0xff] %v650_v52  ;;  %v262_v61 = vadd.f32 %v1119_v3, %v194_v54  ;;  %v957_v63 = vunpack.c.l.bf16 %v1053_v51  ;;  %v1026_v54 = vld [vmem:[%s1788_s0 + $0xc0] sm:$0xff]  }
  0x51   :  { %v195_v62 = vmul.f32 %v1114_v1, %v829_v55  ;;  %v830_v0 = vunpack.c.h.bf16 %v1022_v42  ;;  %v589_v5 = vadd.f32 %v525_v58, %v261_v53  ;;  %v526_v6 = vadd.f32 %v1133_v10, %v458_v59  ;;  %v1057_v59 = vld [vmem:[%s1791_s3 + $0xc0] sm:$0xff]  }
  0x52   :  { %715 = vst [vmem:[%s1794_s6 + $0x120] sm:$0xff] %v651_v56  ;;  %v652_v4 = vmax.f32 %v588_v57, 0.0  ;;  %v958_v8 = vunpack.c.h.bf16 %v1053_v51  ;;  %v459_v11 = vmul.f32 %v1127_v7, %v957_v63  ;;  %v833_v13 = vunpack.c.l.bf16 %v1023_v60 }
  0x53   :  { %v263_v9 = vadd.f32 %v1119_v3, %v195_v62  ;;  %v196_v12 = vmul.f32 %v1114_v1, %v830_v0  ;;  %v653_v14 = vmax.f32 %v589_v5, 0.0  ;;  %v590_v15 = vadd.f32 %v526_v6, %v262_v61 }
  0x54   :  { %716 = vst [vmem:[%s1794_s6 + $0x128] sm:$0xff] %v652_v4  ;;  %v460_v16 = vmul.f32 %v1127_v7, %v958_v8  ;;  %v961_v17 = vunpack.c.l.bf16 %v1054_v2  ;;  %v527_v19 = vadd.f32 %v1133_v10, %v459_v11  ;;  %v197_v21 = vmul.f32 %v1114_v1, %v833_v13 }
  0x55   :  { %v264_v20 = vadd.f32 %v1119_v3, %v196_v12  ;;  %v834_v22 = vunpack.c.h.bf16 %v1023_v60  ;;  %717 = vst [vmem:[%s1794_s6 + $0x130] sm:$0xff] %v653_v14  ;;  %v654_v24 = vmax.f32 %v590_v15, 0.0  ;;  %v962_v27 = vunpack.c.h.bf16 %v1054_v2  ;;  %v1027_v12 = vld [vmem:[%s1788_s0 + $0xc8] sm:$0xff]  }
  0x56   :  { %v528_v25 = vadd.f32 %v1133_v10, %v460_v16  ;;  %v461_v26 = vmul.f32 %v1127_v7, %v961_v17  ;;  %v591_v28 = vadd.f32 %v527_v19, %v263_v9  ;;  %v265_v29 = vadd.f32 %v1119_v3, %v197_v21  ;;  %v1058_v21 = vld [vmem:[%s1791_s3 + $0xc8] sm:$0xff]  }
  0x57   :  { %v198_v30 = vmul.f32 %v1114_v1, %v834_v22  ;;  %v837_v31 = vunpack.c.l.bf16 %v1024_v18  ;;  %718 = vst [vmem:[%s1794_s6 + $0x138] sm:$0xff] %v654_v24  ;;  %v462_v34 = vmul.f32 %v1127_v7, %v962_v27  ;;  %v965_v35 = vunpack.c.l.bf16 %v1055_v23 }
  0x58   :  { %v592_v32 = vadd.f32 %v528_v25, %v264_v20  ;;  %v529_v33 = vadd.f32 %v1133_v10, %v461_v26  ;;  %v655_v37 = vmax.f32 %v591_v28, 0.0  ;;  %v838_v40 = vunpack.c.h.bf16 %v1024_v18 }
  0x59   :  { %v266_v38 = vadd.f32 %v1119_v3, %v198_v30  ;;  %v199_v39 = vmul.f32 %v1114_v1, %v837_v31  ;;  %v530_v44 = vadd.f32 %v1133_v10, %v462_v34  ;;  %v463_v45 = vmul.f32 %v1127_v7, %v965_v35  ;;  %v1028_v30 = vld [vmem:[%s1788_s0 + $0xd0] sm:$0xff]  }
  0x5a   :  { %v656_v42 = vmax.f32 %v592_v32, 0.0  ;;  %v593_v43 = vadd.f32 %v529_v33, %v265_v29  ;;  %719 = vst [vmem:[%s1794_s6 + $0x140] sm:$0xff] %v655_v37  ;;  %v200_v47 = vmul.f32 %v1114_v1, %v838_v40  ;;  %v966_v48 = vunpack.c.h.bf16 %v1055_v23  ;;  %v1059_v35 = vld [vmem:[%s1791_s3 + $0xd0] sm:$0xff]  }
  0x5b   :  { %v267_v46 = vadd.f32 %v1119_v3, %v199_v39  ;;  %v841_v49 = vunpack.c.l.bf16 %v1025_v36  ;;  %v594_v51 = vadd.f32 %v530_v44, %v266_v38  ;;  %v531_v52 = vadd.f32 %v1133_v10, %v463_v45 }
  0x5c   :  { %720 = vst [vmem:[%s1794_s6 + $0x148] sm:$0xff] %v656_v42  ;;  %v657_v50 = vmax.f32 %v593_v43, 0.0  ;;  %v969_v53 = vunpack.c.l.bf16 %v1056_v41  ;;  %v268_v55 = vadd.f32 %v1119_v3, %v200_v47  ;;  %v464_v56 = vmul.f32 %v1127_v7, %v966_v48 }
  0x5d   :  { %v201_v57 = vmul.f32 %v1114_v1, %v841_v49  ;;  %v842_v58 = vunpack.c.h.bf16 %v1025_v36  ;;  %v658_v60 = vmax.f32 %v594_v51, 0.0  ;;  %v595_v61 = vadd.f32 %v531_v52, %v267_v46  ;;  %v1651_v49 = vld [vmem:[%s1790_s2] ss:$0 sm:$0xff] }
  0x5e   :  { %721 = vst [vmem:[%s1794_s6 + $0x150] sm:$0xff] %v657_v50  ;;  %v465_v62 = vmul.f32 %v1127_v7, %v969_v53  ;;  %v970_v63 = vunpack.c.h.bf16 %v1056_v41  ;;  %v532_v0 = vadd.f32 %v1133_v10, %v464_v56  ;;  %v845_v5 = vunpack.c.l.bf16 %v1026_v54 }
  0x5f   :  { %v269_v2 = vadd.f32 %v1119_v3, %v201_v57  ;;  %v202_v4 = vmul.f32 %v1114_v1, %v842_v58  ;;  %722 = vst [vmem:[%s1794_s6 + $0x158] sm:$0xff] %v658_v60  ;;  %v659_v6 = vmax.f32 %v595_v61, 0.0  ;;  %v973_v11 = vunpack.c.l.bf16 %v1057_v59 }
  0x60   :  { %v533_v8 = vadd.f32 %v1133_v10, %v465_v62  ;;  %v466_v9 = vmul.f32 %v1127_v7, %v970_v63  ;;  %v596_v13 = vadd.f32 %v532_v0, %v268_v55  ;;  %v203_v15 = vmul.f32 %v1114_v1, %v845_v5  ;;  %v1670_v55 = vld [vmem:[%s1792_s4] ss:$0 sm:$0xff] }
  0x61   :  { %v270_v14 = vadd.f32 %v1119_v3, %v202_v4  ;;  %v846_v16 = vunpack.c.h.bf16 %v1026_v54  ;;  %723 = vst [vmem:[%s1794_s6 + $0x160] sm:$0xff] %v659_v6  ;;  %v467_v19 = vmul.f32 %v1127_v7, %v973_v11  ;;  %v974_v20 = vunpack.c.h.bf16 %v1057_v59  ;;  %v1030_v4 = vld [vmem:[%s1788_s0 + $0xe0] sm:$0xff]  }
  0x62   :  { %v597_v17 = vadd.f32 %v533_v8, %v269_v2  ;;  %v534_v18 = vadd.f32 %v1133_v10, %v466_v9  ;;  %v660_v22 = vmax.f32 %v596_v13, 0.0  ;;  %v271_v23 = vadd.f32 %v1119_v3, %v203_v15  ;;  %v1061_v11 = vld [vmem:[%s1791_s3 + $0xe0] sm:$0xff]  }
  0x63   :  { %v204_v24 = vmul.f32 %v1114_v1, %v846_v16  ;;  %v849_v25 = vunpack.c.l.bf16 %v1027_v12  ;;  %v535_v28 = vadd.f32 %v1133_v10, %v467_v19  ;;  %v468_v29 = vmul.f32 %v1127_v7, %v974_v20 }
  0x64   :  { %v661_v26 = vmax.f32 %v597_v17, 0.0  ;;  %v598_v27 = vadd.f32 %v534_v18, %v270_v14  ;;  %724 = vst [vmem:[%s1794_s6 + $0x168] sm:$0xff] %v660_v22  ;;  %v977_v33 = vunpack.c.l.bf16 %v1058_v21  ;;  %v850_v34 = vunpack.c.h.bf16 %v1027_v12 }
  0x65   :  { %v272_v31 = vadd.f32 %v1119_v3, %v204_v24  ;;  %v205_v32 = vmul.f32 %v1114_v1, %v849_v25  ;;  %v599_v37 = vadd.f32 %v535_v28, %v271_v23  ;;  %v536_v38 = vadd.f32 %v1133_v10, %v468_v29  ;;  %v1637_v1 = vld [vmem:[%s1789_s1] ss:$0 sm:$0xff]  ;;  %v1031_v24 = vld [vmem:[%s1788_s0 + $0xe8] sm:$0xff]  }
  0x66   :  { %725 = vst [vmem:[%s1794_s6 + $0x170] sm:$0xff] %v661_v26  ;;  %v662_v36 = vmax.f32 %v598_v27, 0.0  ;;  %v978_v39 = vunpack.c.h.bf16 %v1058_v21  ;;  %v469_v41 = vmul.f32 %v1127_v7, %v977_v33  ;;  %v206_v42 = vmul.f32 %v1637_v1, %v850_v34  ;;  %v1062_v29 = vld [vmem:[%s1791_s3 + $0xe8] sm:$0xff]  }
  0x67   :  { %v273_v40 = vadd.f32 %v1119_v3, %v205_v32  ;;  %v853_v43 = vunpack.c.l.bf16 %v1028_v30  ;;  %v663_v44 = vmax.f32 %v599_v37, 0.0  ;;  %v600_v45 = vadd.f32 %v536_v38, %v272_v31  ;;  %v1029_v3 = vld [vmem:[%s1788_s0 + $0xd8] sm:$0xff]  }
  0x68   :  { %726 = vst [vmem:[%s1794_s6 + $0x178] sm:$0xff] %v662_v36  ;;  %v470_v46 = vmul.f32 %v1127_v7, %v978_v39  ;;  %v981_v47 = vunpack.c.l.bf16 %v1059_v35  ;;  %v537_v48 = vadd.f32 %v1133_v10, %v469_v41  ;;  %v274_v50 = vadd.f32 %v1651_v49, %v206_v42  ;;  %v1060_v7 = vld [vmem:[%s1791_s3 + $0xd8] sm:$0xff]   ;;  %v1664_v10 = vld [vmem:[%s1793_s5] ss:$0 sm:$0xff]  ;;  %v1032_v42 = vld [vmem:[%s1788_s0 + $0xf0] sm:$0xff]  }
  0x69   :  { %v207_v51 = vmul.f32 %v1637_v1, %v853_v43  ;;  %v854_v52 = vunpack.c.h.bf16 %v1028_v30  ;;  %727 = vst [vmem:[%s1794_s6 + $0x180] sm:$0xff] %v663_v44  ;;  %v664_v53 = vmax.f32 %v600_v45, 0.0  ;;  %v982_v57 = vunpack.c.h.bf16 %v1059_v35 }
  0x6a   :  { %v538_v54 = vadd.f32 %v1664_v10, %v470_v46  ;;  %v471_v56 = vmul.f32 %v1670_v55, %v981_v47  ;;  %v601_v58 = vadd.f32 %v537_v48, %v273_v40  ;;  %v857_v61 = vunpack.c.l.bf16 %v1029_v3 }
  0x6b   :  { %v275_v59 = vadd.f32 %v1651_v49, %v207_v51  ;;  %v208_v60 = vmul.f32 %v1637_v1, %v854_v52  ;;  %728 = vst [vmem:[%s1794_s6 + $0x188] sm:$0xff] %v664_v53  ;;  %v472_v0 = vmul.f32 %v1670_v55, %v982_v57  ;;  %v985_v2 = vunpack.c.l.bf16 %v1060_v7  ;;  %v1063_v51 = vld [vmem:[%s1791_s3 + $0xf0] sm:$0xff]  }
  0x6c   :  { %v602_v62 = vadd.f32 %v538_v54, %v274_v50  ;;  %v539_v63 = vadd.f32 %v1664_v10, %v471_v56  ;;  %v665_v5 = vmax.f32 %v601_v58, 0.0  ;;  %v209_v8 = vmul.f32 %v1637_v1, %v857_v61 }
  0x6d   :  { %v276_v6 = vadd.f32 %v1651_v49, %v208_v60  ;;  %v858_v9 = vunpack.c.h.bf16 %v1029_v3  ;;  %v540_v14 = vadd.f32 %v1664_v10, %v472_v0  ;;  %v473_v15 = vmul.f32 %v1670_v55, %v985_v2  ;;  %v1033_v60 = vld [vmem:[%s1788_s0 + $0xf8] sm:$0xff]  }
  0x6e   :  { %v666_v12 = vmax.f32 %v602_v62, 0.0  ;;  %v603_v13 = vadd.f32 %v539_v63, %v275_v59  ;;  %729 = vst [vmem:[%s1794_s6 + $0x190] sm:$0xff] %v665_v5  ;;  %v277_v16 = vadd.f32 %v1651_v49, %v209_v8  ;;  %v986_v18 = vunpack.c.h.bf16 %v1060_v7  ;;  %v1064_v2 = vld [vmem:[%s1791_s3 + $0xf8] sm:$0xff]  }
  0x6f   :  { %v210_v17 = vmul.f32 %v1637_v1, %v858_v9  ;;  %v861_v19 = vunpack.c.l.bf16 %v1030_v4  ;;  %v604_v21 = vadd.f32 %v540_v14, %v276_v6  ;;  %v541_v22 = vadd.f32 %v1664_v10, %v473_v15 }
  0x70   :  { %730 = vst [vmem:[%s1794_s6 + $0x198] sm:$0xff] %v666_v12  ;;  %v667_v20 = vmax.f32 %v603_v13, 0.0  ;;  %v989_v23 = vunpack.c.l.bf16 %v1061_v11  ;;  %v474_v26 = vmul.f32 %v1670_v55, %v986_v18  ;;  %v862_v28 = vunpack.c.h.bf16 %v1030_v4 }
  0x71   :  { %v278_v25 = vadd.f32 %v1651_v49, %v210_v17  ;;  %v211_v27 = vmul.f32 %v1637_v1, %v861_v19  ;;  %v668_v30 = vmax.f32 %v604_v21, 0.0  ;;  %v605_v31 = vadd.f32 %v541_v22, %v277_v16 }
  0x72   :  { %731 = vst [vmem:[%s1794_s6 + $0x1a0] sm:$0xff] %v667_v20  ;;  %v475_v32 = vmul.f32 %v1670_v55, %v989_v23  ;;  %v990_v33 = vunpack.c.h.bf16 %v1061_v11  ;;  %v542_v34 = vadd.f32 %v1664_v10, %v474_v26  ;;  %v212_v36 = vmul.f32 %v1637_v1, %v862_v28 }
  0x73   :  { %v279_v35 = vadd.f32 %v1651_v49, %v211_v27  ;;  %v865_v37 = vunpack.c.l.bf16 %v1031_v24  ;;  %732 = vst [vmem:[%s1794_s6 + $0x1a8] sm:$0xff] %v668_v30  ;;  %v669_v38 = vmax.f32 %v605_v31, 0.0  ;;  %v993_v41 = vunpack.c.l.bf16 %v1062_v29 }
  0x74   :  { %v543_v39 = vadd.f32 %v1664_v10, %v475_v32  ;;  %v476_v40 = vmul.f32 %v1670_v55, %v990_v33  ;;  %v606_v43 = vadd.f32 %v542_v34, %v278_v25  ;;  %v280_v44 = vadd.f32 %v1651_v49, %v212_v36 }
  0x75   :  { %v213_v45 = vmul.f32 %v1637_v1, %v865_v37  ;;  %v866_v46 = vunpack.c.h.bf16 %v1031_v24  ;;  %733 = vst [vmem:[%s1794_s6 + $0x1b0] sm:$0xff] %v669_v38  ;;  %v477_v48 = vmul.f32 %v1670_v55, %v993_v41  ;;  %v994_v50 = vunpack.c.h.bf16 %v1062_v29 }
  0x76   :  { %v607_v47 = vadd.f32 %v543_v39, %v279_v35  ;;  %v544_v3 = vadd.f32 %v1664_v10, %v476_v40  ;;  %v670_v52 = vmax.f32 %v606_v43, 0.0  ;;  %v869_v54 = vunpack.c.l.bf16 %v1032_v42 }
  0x77   :  { %v281_v7 = vadd.f32 %v1651_v49, %v213_v45  ;;  %v214_v53 = vmul.f32 %v1637_v1, %v866_v46  ;;  %v545_v58 = vadd.f32 %v1664_v10, %v477_v48  ;;  %v478_v59 = vmul.f32 %v1670_v55, %v994_v50 }
  0x78   :  { %v671_v56 = vmax.f32 %v607_v47, 0.0  ;;  %v608_v57 = vadd.f32 %v544_v3, %v280_v44  ;;  %734 = vst [vmem:[%s1794_s6 + $0x1b8] sm:$0xff] %v670_v52  ;;  %v215_v62 = vmul.f32 %v1637_v1, %v869_v54  ;;  %v997_v63 = vunpack.c.l.bf16 %v1063_v51 }
  0x79   :  { %v282_v61 = vadd.f32 %v1651_v49, %v214_v53  ;;  %v870_v0 = vunpack.c.h.bf16 %v1032_v42  ;;  %v609_v5 = vadd.f32 %v545_v58, %v281_v7  ;;  %v546_v6 = vadd.f32 %v1664_v10, %v478_v59 }
  0x7a   :  { %735 = vst [vmem:[%s1794_s6 + $0x1c0] sm:$0xff] %v671_v56  ;;  %v672_v4 = vmax.f32 %v608_v57, 0.0  ;;  %v998_v8 = vunpack.c.h.bf16 %v1063_v51  ;;  %v283_v9 = vadd.f32 %v1651_v49, %v215_v62  ;;  %v479_v11 = vmul.f32 %v1670_v55, %v997_v63 }
  0x7b   :  { %v216_v12 = vmul.f32 %v1637_v1, %v870_v0  ;;  %v873_v13 = vunpack.c.l.bf16 %v1033_v60  ;;  %v673_v14 = vmax.f32 %v609_v5, 0.0  ;;  %v610_v15 = vadd.f32 %v546_v6, %v282_v61 }
  0x7c   :  { %736 = vst [vmem:[%s1794_s6 + $0x1c8] sm:$0xff] %v672_v4  ;;  %v480_v16 = vmul.f32 %v1670_v55, %v998_v8  ;;  %v1001_v17 = vunpack.c.l.bf16 %v1064_v2  ;;  %v547_v18 = vadd.f32 %v1664_v10, %v479_v11  ;;  %v874_v21 = vunpack.c.h.bf16 %v1033_v60 }
  0x7d   :  { %v284_v19 = vadd.f32 %v1651_v49, %v216_v12  ;;  %v217_v20 = vmul.f32 %v1637_v1, %v873_v13  ;;  %737 = vst [vmem:[%s1794_s6 + $0x1d0] sm:$0xff] %v673_v14  ;;  %v674_v22 = vmax.f32 %v610_v15, 0.0  ;;  %v1002_v25 = vunpack.c.h.bf16 %v1064_v2 }
  0x7e   :  { %v548_v23 = vadd.f32 %v1664_v10, %v480_v16  ;;  %v481_v24 = vmul.f32 %v1670_v55, %v1001_v17  ;;  %v611_v26 = vadd.f32 %v547_v18, %v283_v9  ;;  %v218_v28 = vmul.f32 %v1637_v1, %v874_v21 }
  0x7f   :  { %v285_v27 = vadd.f32 %v1651_v49, %v217_v20  ;;  %738 = vst [vmem:[%s1794_s6 + $0x1d8] sm:$0xff] %v674_v22  ;;  %v482_v31 = vmul.f32 %v1670_v55, %v1002_v25 }
  0x80   :  { %v612_v29 = vadd.f32 %v548_v23, %v284_v19  ;;  %v549_v30 = vadd.f32 %v1664_v10, %v481_v24  ;;  %v675_v32 = vmax.f32 %v611_v26, 0.0  ;;  %v286_v33 = vadd.f32 %v1651_v49, %v218_v28 }
  0x81   :  { %v550_v36 = vadd.f32 %v1664_v10, %v482_v31 }
  0x82   :  { %v676_v34 = vmax.f32 %v612_v29, 0.0  ;;  %v613_v35 = vadd.f32 %v549_v30, %v285_v27  ;;  %739 = vst [vmem:[%s1794_s6 + $0x1e0] sm:$0xff] %v675_v32 }
  0x83   :  { %v614_v37 = vadd.f32 %v550_v36, %v286_v33 }
  0x84   :  { %740 = vst [vmem:[%s1794_s6 + $0x1e8] sm:$0xff] %v676_v34  ;;  %v677_v1 = vmax.f32 %v613_v35, 0.0 }
  0x85   :  { %v678_v55 = vmax.f32 %v614_v37, 0.0 }
  0x86   :  { %741 = vst [vmem:[%s1794_s6 + $0x1f0] sm:$0xff] %v677_v1 }
  0x87   :  { %742 = vst [vmem:[%s1794_s6 + $0x1f8] sm:$0xff] %v678_v55 }

// kernel: btnk_forward.4
= control target key start
LH: loop header
LB: loop body
LE: loop exit
PB: predicated region body
PF: predicated region fallthrough
CT: control target
= control target key end

     0   :  { %vm1113_vm1 = vcmask 1040384   ;;  %s2976_s1 = inlined_call_operand.vmem [shape: bf16[128,256], index: 1, kind: input, shape index: {}]   ;;  %s2977_s0 = inlined_call_operand.vmem [shape: bf16[512,128], index: 0, kind: input, shape index: {}]   ;;  %s2978_s2 = inlined_call_operand.vmem [shape: bf16[512,128], index: 2, kind: output, shape index: {0}]   ;;  %s2979_s3 = inlined_call_operand.vmem [shape: bf16[512,128], index: 3, kind: output, shape index: {1}]   ;;  %s2980_s4 = inlined_call_operand.vmem [shape: f32[1,256], index: 4, kind: output, shape index: {2}]   ;;  %s2981_s5 = inlined_call_operand.vmem [shape: f32[1,256], index: 5, kind: output, shape index: {3}]  }
   0x1   :  { %v1598_v0 = vld [vmem:[%s2976_s1 + $0x70] sm:$0xf]  ;;  %v1651_v1 = vld [vmem:[%s2976_s1 + $0x74] sm:$0xf0]  ;;  %v1650_v2 = vld [vmem:[%s2976_s1 + $0x74] sm:$0xf] }
   0x2   :  { %v1599_v3 = vor.u32 %v1651_v1, %v1598_v0  ;;  %v1600_v4 = vld [vmem:[%s2976_s1 + $0x78] sm:$0xf0]  ;;  %v1590_v5 = vld [vmem:[%s2976_s1 + $0x60] sm:$0xf]  ;;  %v1649_v6 = vld [vmem:[%s2976_s1 + $0x64] sm:$0xf0] }
   0x3   :  { %v1603_v7 = vor.u32 %v1650_v2, %v1600_v4  ;;  %v1648_v8 = vld [vmem:[%s2976_s1 + $0x64] sm:$0xf]  ;;  %v1592_v9 = vld [vmem:[%s2976_s1 + $0x68] sm:$0xf0]  ;;  %v1591_v10 = vor.u32 %v1649_v6, %v1590_v5  ;;  %v1582_v12 = vld [vmem:[%s2976_s1 + $0x50] sm:$0xf] }
   0x4   :  { %377 = vmatpush.bf16.msra.mxu0 %v1599_v3  ;;  %2034 = vmatpush.bf16.msra.mxu2 %v1599_v3  ;;  %v1595_v11 = vor.u32 %v1648_v8, %v1592_v9  ;;  %v1647_v13 = vld [vmem:[%s2976_s1 + $0x54] sm:$0xf0]  ;;  %v1646_v14 = vld [vmem:[%s2976_s1 + $0x54] sm:$0xf]  ;;  %v1584_v15 = vld [vmem:[%s2976_s1 + $0x58] sm:$0xf0] }
   0x5   :  { %546 = vmatpush.bf16.msra.mxu1 %v1603_v7  ;;  %2042 = vmatpush.bf16.msra.mxu3 %v1603_v7  ;;  %v1583_v16 = vor.u32 %v1647_v13, %v1582_v12  ;;  %v1587_v17 = vor.u32 %v1646_v14, %v1584_v15  ;;  %v1574_v18 = vld [vmem:[%s2976_s1 + $0x40] sm:$0xf]  ;;  %v1645_v19 = vld [vmem:[%s2976_s1 + $0x44] sm:$0xf0]  ;;  %v1644_v20 = vld [vmem:[%s2976_s1 + $0x44] sm:$0xf] }
   0x6   :  { %v1576_v21 = vld [vmem:[%s2976_s1 + $0x48] sm:$0xf0]  ;;  %v1575_v22 = vor.u32 %v1645_v19, %v1574_v18  ;;  %v1566_v24 = vld [vmem:[%s2976_s1 + $0x30] sm:$0xf]  ;;  %v1643_v25 = vld [vmem:[%s2976_s1 + $0x34] sm:$0xf0] }
   0x7   :  { %v1579_v23 = vor.u32 %v1644_v20, %v1576_v21  ;;  %v1642_v26 = vld [vmem:[%s2976_s1 + $0x34] sm:$0xf]  ;;  %v1568_v27 = vld [vmem:[%s2976_s1 + $0x38] sm:$0xf0]  ;;  %v1567_v28 = vor.u32 %v1643_v25, %v1566_v24  ;;  %v1558_v30 = vld [vmem:[%s2976_s1 + $0x20] sm:$0xf] }
   0x8   :  { %378 = vmatpush.bf16.msra.mxu0 %v1591_v10  ;;  %2035 = vmatpush.bf16.msra.mxu2 %v1591_v10  ;;  %v1571_v29 = vor.u32 %v1642_v26, %v1568_v27  ;;  %v1641_v31 = vld [vmem:[%s2976_s1 + $0x24] sm:$0xf0]  ;;  %v1640_v32 = vld [vmem:[%s2976_s1 + $0x24] sm:$0xf]  ;;  %v1560_v33 = vld [vmem:[%s2976_s1 + $0x28] sm:$0xf0] }
   0x9   :  { %547 = vmatpush.bf16.msra.mxu1 %v1595_v11  ;;  %2043 = vmatpush.bf16.msra.mxu3 %v1595_v11  ;;  %v1559_v34 = vor.u32 %v1641_v31, %v1558_v30  ;;  %v1563_v35 = vor.u32 %v1640_v32, %v1560_v33  ;;  %v1550_v36 = vld [vmem:[%s2976_s1 + $0x10] sm:$0xf]  ;;  %v1639_v37 = vld [vmem:[%s2976_s1 + $0x14] sm:$0xf0]  ;;  %v1638_v38 = vld [vmem:[%s2976_s1 + $0x14] sm:$0xf] }
   0xa   :  { %v1552_v39 = vld [vmem:[%s2976_s1 + $0x18] sm:$0xf0]  ;;  %v1551_v40 = vor.u32 %v1639_v37, %v1550_v36  ;;  %v1542_v42 = vld [vmem:[%s2976_s1] sm:$0xf]  ;;  %v1637_v43 = vld [vmem:[%s2976_s1 + $0x4] sm:$0xf0] }
   0xb   :  { %v1555_v41 = vor.u32 %v1638_v38, %v1552_v39  ;;  %v1636_v44 = vld [vmem:[%s2976_s1 + $0x4] sm:$0xf]  ;;  %v1544_v45 = vld [vmem:[%s2976_s1 + $0x8] sm:$0xf0]  ;;  %v1543_v46 = vor.u32 %v1637_v43, %v1542_v42  ;;  %v1606_v51 = vld [vmem:[%s2977_s0 + $0x10] sm:$0xff] }
   0xc   :  { %379 = vmatpush.bf16.msra.mxu0 %v1583_v16  ;;  %2036 = vmatpush.bf16.msra.mxu2 %v1583_v16  ;;  %v1547_v47 = vor.u32 %v1636_v44, %v1544_v45  ;;  %v1604_v48 = vld [vmem:[%s2977_s0] sm:$0xff]  ;;  %v1605_v49 = vld [vmem:[%s2977_s0 + $0x8] sm:$0xff]  ;;  %v1607_v53 = vld [vmem:[%s2977_s0 + $0x18] sm:$0xff] }
   0xd   :  { %548 = vmatpush.bf16.msra.mxu1 %v1587_v17  ;;  %2044 = vmatpush.bf16.msra.mxu3 %v1587_v17  ;;  %v1620_v50 = vld [vmem:[%s2977_s0 + $0x80] sm:$0xff]  ;;  %v1621_v52 = vld [vmem:[%s2977_s0 + $0x88] sm:$0xff]  ;;  %v1622_v54 = vld [vmem:[%s2977_s0 + $0x90] sm:$0xff] }
   0xe   :  { %v1608_v55 = vld [vmem:[%s2977_s0 + $0x20] sm:$0xff]  ;;  %v1623_v56 = vld [vmem:[%s2977_s0 + $0x98] sm:$0xff]  ;;  %v1609_v57 = vld [vmem:[%s2977_s0 + $0x28] sm:$0xff] }
   0xf   :  { %v1624_v58 = vld [vmem:[%s2977_s0 + $0xa0] sm:$0xff]  ;;  %v1610_v59 = vld [vmem:[%s2977_s0 + $0x30] sm:$0xff]  ;;  %v1625_v60 = vld [vmem:[%s2977_s0 + $0xa8] sm:$0xff] }
  0x10   :  { %380 = vmatpush.bf16.msra.mxu0 %v1575_v22  ;;  %2037 = vmatpush.bf16.msra.mxu2 %v1575_v22  ;;  %v1611_v61 = vld [vmem:[%s2977_s0 + $0x38] sm:$0xff]  ;;  %v1626_v62 = vld [vmem:[%s2977_s0 + $0xb0] sm:$0xff]  ;;  %v1612_v63 = vld [vmem:[%s2977_s0 + $0x40] sm:$0xff] }
  0x11   :  { %549 = vmatpush.bf16.msra.mxu1 %v1579_v23  ;;  %2045 = vmatpush.bf16.msra.mxu3 %v1579_v23  ;;  %v1627_v2 = vld [vmem:[%s2977_s0 + $0xb8] sm:$0xff]  ;;  %v1613_v15 = vld [vmem:[%s2977_s0 + $0x48] sm:$0xff]  ;;  %v1628_v24 = vld [vmem:[%s2977_s0 + $0xc0] sm:$0xff] }
  0x12   :  { %v1614_v37 = vld [vmem:[%s2977_s0 + $0x50] sm:$0xff] }
  0x14   :  { %381 = vmatpush.bf16.msra.mxu0 %v1567_v28  ;;  %2038 = vmatpush.bf16.msra.mxu2 %v1567_v28 }
  0x15   :  { %550 = vmatpush.bf16.msra.mxu1 %v1571_v29  ;;  %2046 = vmatpush.bf16.msra.mxu3 %v1571_v29 }
  0x18   :  { %382 = vmatpush.bf16.msra.mxu0 %v1559_v34  ;;  %2039 = vmatpush.bf16.msra.mxu2 %v1559_v34 }
  0x19   :  { %551 = vmatpush.bf16.msra.mxu1 %v1563_v35  ;;  %2047 = vmatpush.bf16.msra.mxu3 %v1563_v35 }
  0x1c   :  { %383 = vmatpush.bf16.msra.mxu0 %v1551_v40  ;;  %2040 = vmatpush.bf16.msra.mxu2 %v1551_v40 }
  0x1d   :  { %552 = vmatpush.bf16.msra.mxu1 %v1555_v41  ;;  %2048 = vmatpush.bf16.msra.mxu3 %v1555_v41 }
  0x20   :  { %384 = vmatpush.bf16.msra.mxu0 %v1543_v46  ;;  %2041 = vmatpush.bf16.msra.mxu2 %v1543_v46 }
  0x21   :  { %553 = vmatpush.bf16.msra.mxu1 %v1547_v47  ;;  %2049 = vmatpush.bf16.msra.mxu3 %v1547_v47 }
  0x23   :  { %385 = vmatmul.bf16.vlgmr.msra.gmra.mxu0 %v1604_v48  ;;  %465 = vmatmul.bf16.vlgmr.msra.gmra.mxu2 %v1620_v50 }
  0x24   :  { %554 = vmatmul.bf16.vlgmr.msra.gmra.mxu1 %v1604_v48  ;;  %634 = vmatmul.bf16.vlgmr.msra.gmra.mxu3 %v1620_v50  ;;  %v1629_v50 = vld [vmem:[%s2977_s0 + $0xc8] sm:$0xff] }
  0x33   :  { %390 = vmatmul.bf16.gmra.mxu0 %v1605_v49  ;;  %470 = vmatmul.bf16.gmra.mxu2 %v1621_v52 }
  0x34   :  { %559 = vmatmul.bf16.gmra.mxu1 %v1605_v49  ;;  %639 = vmatmul.bf16.gmra.mxu3 %v1621_v52 }
  0x43   :  { %395 = vmatmul.bf16.gmra.mxu0 %v1606_v51  ;;  %475 = vmatmul.bf16.gmra.mxu2 %v1622_v54 }
  0x44   :  { %564 = vmatmul.bf16.gmra.mxu1 %v1606_v51  ;;  %644 = vmatmul.bf16.gmra.mxu3 %v1622_v54 }
  0x53   :  { %400 = vmatmul.bf16.gmra.mxu0 %v1607_v53  ;;  %480 = vmatmul.bf16.gmra.mxu2 %v1623_v56 }
  0x54   :  { %569 = vmatmul.bf16.gmra.mxu1 %v1607_v53  ;;  %649 = vmatmul.bf16.gmra.mxu3 %v1623_v56 }
  0x63   :  { %405 = vmatmul.bf16.gmra.mxu0 %v1608_v55  ;;  %485 = vmatmul.bf16.gmra.mxu2 %v1624_v58 }
  0x64   :  { %574 = vmatmul.bf16.gmra.mxu1 %v1608_v55  ;;  %654 = vmatmul.bf16.gmra.mxu3 %v1624_v58 }
  0x73   :  { %410 = vmatmul.bf16.gmra.mxu0 %v1609_v57  ;;  %490 = vmatmul.bf16.gmra.mxu2 %v1625_v60 }
  0x74   :  { %579 = vmatmul.bf16.gmra.mxu1 %v1609_v57  ;;  %659 = vmatmul.bf16.gmra.mxu3 %v1625_v60 }
  0x83   :  { %415 = vmatmul.bf16.gmra.mxu0 %v1610_v59  ;;  %495 = vmatmul.bf16.gmra.mxu2 %v1626_v62 }
  0x84   :  { %584 = vmatmul.bf16.gmra.mxu1 %v1610_v59  ;;  %664 = vmatmul.bf16.gmra.mxu3 %v1626_v62 }
  0x93   :  { %420 = vmatmul.bf16.gmra.mxu0 %v1611_v61  ;;  %500 = vmatmul.bf16.gmra.mxu2 %v1627_v2 }
  0x94   :  { %589 = vmatmul.bf16.gmra.mxu1 %v1611_v61  ;;  %669 = vmatmul.bf16.gmra.mxu3 %v1627_v2 }
  0xa0   :  { %v386_v0 = vpop.f32.mrf.mxu0 }
  0xa1   :  { %v555_v1 = vpop.f32.mrf.mxu1  ;;  %v1123_v4 = vmul.f32 %v386_v0, %v386_v0 }
  0xa2   :  { %v1124_v9 = vmul.f32 %v555_v1, %v555_v1 }
  0xa3   :  { %425 = vmatmul.bf16.gmra.mxu0 %v1612_v63  ;;  %505 = vmatmul.bf16.gmra.mxu2 %v1628_v24 }
  0xa4   :  { %594 = vmatmul.bf16.gmra.mxu1 %v1612_v63  ;;  %674 = vmatmul.bf16.gmra.mxu3 %v1628_v24  ;;  %v1615_v63 = vld [vmem:[%s2977_s0 + $0x58] sm:$0xff] }
  0xa6   :  { %v2246_v35 = vpop.f32.mrf.mxu2 }
  0xa7   :  { %v2241_v30 = vpop.f32.mrf.mxu3 }
  0xa8   :  { %v388_v3 = vpop.f32.mrf.mxu0 }
  0xa9   :  { %v1655_v5 = vpack.c.bf16 %v388_v3, %v386_v0  ;;  %v1125_v6 = vmul.f32 %v388_v3, %v388_v3  ;;  %v557_v7 = vpop.f32.mrf.mxu1  ;;  %v972_v8 = vadd.f32 %v388_v3, %v386_v0 }
  0xaa   :  { %v1815_v10 = vpack.c.bf16 %v557_v7, %v555_v1  ;;  %v1126_v11 = vmul.f32 %v557_v7, %v557_v7  ;;  %v1041_v12 = vadd.f32 %v557_v7, %v555_v1 }
  0xab   :  { %1656 = vst [vmem:[%s2978_s2] sm:$0xff] %v1655_v5   ;;  %v1251_v13 = vadd.f32 %v1125_v6, %v1123_v4 }
  0xac   :  { %1816 = vst [vmem:[%s2979_s3] sm:$0xff] %v1815_v10   ;;  %v1320_v14 = vadd.f32 %v1126_v11, %v1124_v9 }
  0xae   :  { %v2258_v47 = vpop.f32.mrf.mxu2 }
  0xaf   :  { %v2254_v42 = vpop.f32.mrf.mxu3  ;;  %v1735_v49 = vpack.c.bf16 %v2258_v47, %v2246_v35 }
  0xb0   :  { %v391_v16 = vpop.f32.mrf.mxu0  ;;  %v1895_v45 = vpack.c.bf16 %v2254_v42, %v2241_v30 }
  0xb1   :  { %v973_v17 = vadd.f32 %v972_v8, %v391_v16  ;;  %v1127_v18 = vmul.f32 %v391_v16, %v391_v16  ;;  %v560_v19 = vpop.f32.mrf.mxu1  ;;  %1987 = vst [vmem:[%s2978_s2 + $0x80] sm:$0xff] %v1735_v49  }
  0xb2   :  { %v1042_v20 = vadd.f32 %v1041_v12, %v560_v19  ;;  %v1128_v21 = vmul.f32 %v560_v19, %v560_v19  ;;  %2018 = vst [vmem:[%s2979_s3 + $0x80] sm:$0xff] %v1895_v45   ;;  %v1630_v12 = vld [vmem:[%s2977_s0 + $0xd0] sm:$0xff] }
  0xb3   :  { %v1252_v22 = vadd.f32 %v1251_v13, %v1127_v18  ;;  %430 = vmatmul.bf16.gmra.mxu0 %v1613_v15  ;;  %510 = vmatmul.bf16.gmra.mxu2 %v1629_v50 }
  0xb4   :  { %v1321_v23 = vadd.f32 %v1320_v14, %v1128_v21  ;;  %599 = vmatmul.bf16.gmra.mxu1 %v1613_v15  ;;  %679 = vmatmul.bf16.gmra.mxu3 %v1629_v50 }
  0xb6   :  { %v2276_v61 = vpop.f32.mrf.mxu2 }
  0xb7   :  { %v2271_v56 = vpop.f32.mrf.mxu3 }
  0xb8   :  { %v393_v25 = vpop.f32.mrf.mxu0 }
  0xb9   :  { %v1660_v26 = vpack.c.bf16 %v393_v25, %v391_v16  ;;  %v1129_v27 = vmul.f32 %v393_v25, %v393_v25  ;;  %v562_v28 = vpop.f32.mrf.mxu1  ;;  %v974_v29 = vadd.f32 %v973_v17, %v393_v25  ;;  %v1616_v25 = vld [vmem:[%s2977_s0 + $0x60] sm:$0xff] }
  0xba   :  { %v1820_v31 = vpack.c.bf16 %v562_v28, %v560_v19  ;;  %v1130_v32 = vmul.f32 %v562_v28, %v562_v28  ;;  %v1043_v33 = vadd.f32 %v1042_v20, %v562_v28 }
  0xbb   :  { %1972 = vst [vmem:[%s2978_s2 + $0x8] sm:$0xff] %v1660_v26   ;;  %v1253_v34 = vadd.f32 %v1252_v22, %v1129_v27 }
  0xbc   :  { %2003 = vst [vmem:[%s2979_s3 + $0x8] sm:$0xff] %v1820_v31   ;;  %v1322_v36 = vadd.f32 %v1321_v23, %v1130_v32 }
  0xbe   :  { %v2288_v9 = vpop.f32.mrf.mxu2 }
  0xbf   :  { %v2284_v4 = vpop.f32.mrf.mxu3  ;;  %v1740_v11 = vpack.c.bf16 %v2288_v9, %v2276_v61 }
  0xc0   :  { %v396_v38 = vpop.f32.mrf.mxu0  ;;  %v1900_v7 = vpack.c.bf16 %v2284_v4, %v2271_v56 }
  0xc1   :  { %v975_v39 = vadd.f32 %v974_v29, %v396_v38  ;;  %v1131_v40 = vmul.f32 %v396_v38, %v396_v38  ;;  %v565_v41 = vpop.f32.mrf.mxu1  ;;  %1988 = vst [vmem:[%s2978_s2 + $0x88] sm:$0xff] %v1740_v11  }
  0xc2   :  { %v1044_v43 = vadd.f32 %v1043_v33, %v565_v41  ;;  %v1132_v44 = vmul.f32 %v565_v41, %v565_v41  ;;  %2019 = vst [vmem:[%s2979_s3 + $0x88] sm:$0xff] %v1900_v7   ;;  %v1632_v7 = vld [vmem:[%s2977_s0 + $0xe0] sm:$0xff] }
  0xc3   :  { %v1254_v46 = vadd.f32 %v1253_v34, %v1131_v40  ;;  %435 = vmatmul.bf16.gmra.mxu0 %v1614_v37  ;;  %515 = vmatmul.bf16.gmra.mxu2 %v1630_v12  ;;  %v1631_v40 = vld [vmem:[%s2977_s0 + $0xd8] sm:$0xff] }
  0xc4   :  { %v1323_v48 = vadd.f32 %v1322_v36, %v1132_v44  ;;  %604 = vmatmul.bf16.gmra.mxu1 %v1614_v37  ;;  %684 = vmatmul.bf16.gmra.mxu3 %v1630_v12 }
  0xc6   :  { %v2306_v23 = vpop.f32.mrf.mxu2 }
  0xc7   :  { %v2301_v18 = vpop.f32.mrf.mxu3 }
  0xc8   :  { %v398_v51 = vpop.f32.mrf.mxu0 }
  0xc9   :  { %v1665_v52 = vpack.c.bf16 %v398_v51, %v396_v38  ;;  %v1133_v53 = vmul.f32 %v398_v51, %v398_v51  ;;  %v567_v54 = vpop.f32.mrf.mxu1  ;;  %v976_v55 = vadd.f32 %v975_v39, %v398_v51 }
  0xca   :  { %v1825_v57 = vpack.c.bf16 %v567_v54, %v565_v41  ;;  %v1134_v58 = vmul.f32 %v567_v54, %v567_v54  ;;  %v1045_v59 = vadd.f32 %v1044_v43, %v567_v54 }
  0xcb   :  { %1973 = vst [vmem:[%s2978_s2 + $0x10] sm:$0xff] %v1665_v52   ;;  %v1255_v60 = vadd.f32 %v1254_v46, %v1133_v53 }
  0xcc   :  { %2004 = vst [vmem:[%s2979_s3 + $0x10] sm:$0xff] %v1825_v57   ;;  %v1324_v62 = vadd.f32 %v1323_v48, %v1134_v58 }
  0xce   :  { %v2318_v37 = vpop.f32.mrf.mxu2 }
  0xcf   :  { %v2314_v31 = vpop.f32.mrf.mxu3  ;;  %v1745_v39 = vpack.c.bf16 %v2318_v37, %v2306_v23 }
  0xd0   :  { %v401_v0 = vpop.f32.mrf.mxu0  ;;  %v1905_v34 = vpack.c.bf16 %v2314_v31, %v2301_v18 }
  0xd1   :  { %v977_v1 = vadd.f32 %v976_v55, %v401_v0  ;;  %v1135_v2 = vmul.f32 %v401_v0, %v401_v0  ;;  %v570_v3 = vpop.f32.mrf.mxu1  ;;  %1989 = vst [vmem:[%s2978_s2 + $0x90] sm:$0xff] %v1745_v39   ;;  %v1617_v55 = vld [vmem:[%s2977_s0 + $0x68] sm:$0xff] }
  0xd2   :  { %v1046_v5 = vadd.f32 %v1045_v59, %v570_v3  ;;  %v1136_v6 = vmul.f32 %v570_v3, %v570_v3  ;;  %2020 = vst [vmem:[%s2979_s3 + $0x90] sm:$0xff] %v1905_v34  }
  0xd3   :  { %v1256_v8 = vadd.f32 %v1255_v60, %v1135_v2  ;;  %440 = vmatmul.bf16.gmra.mxu0 %v1615_v63  ;;  %520 = vmatmul.bf16.gmra.mxu2 %v1631_v40 }
  0xd4   :  { %v1325_v10 = vadd.f32 %v1324_v62, %v1136_v6  ;;  %609 = vmatmul.bf16.gmra.mxu1 %v1615_v63  ;;  %689 = vmatmul.bf16.gmra.mxu3 %v1631_v40  ;;  %v1633_v40 = vld [vmem:[%s2977_s0 + $0xe8] sm:$0xff] }
  0xd6   :  { %v2336_v53 = vpop.f32.mrf.mxu2 }
  0xd7   :  { %v2331_v48 = vpop.f32.mrf.mxu3 }
  0xd8   :  { %v403_v13 = vpop.f32.mrf.mxu0 }
  0xd9   :  { %v1670_v14 = vpack.c.bf16 %v403_v13, %v401_v0  ;;  %v1137_v15 = vmul.f32 %v403_v13, %v403_v13  ;;  %v572_v16 = vpop.f32.mrf.mxu1  ;;  %v978_v17 = vadd.f32 %v977_v1, %v403_v13 }
  0xda   :  { %v1830_v19 = vpack.c.bf16 %v572_v16, %v570_v3  ;;  %v1138_v20 = vmul.f32 %v572_v16, %v572_v16  ;;  %v1047_v21 = vadd.f32 %v1046_v5, %v572_v16 }
  0xdb   :  { %1974 = vst [vmem:[%s2978_s2 + $0x18] sm:$0xff] %v1670_v14   ;;  %v1257_v22 = vadd.f32 %v1256_v8, %v1137_v15 }
  0xdc   :  { %2005 = vst [vmem:[%s2979_s3 + $0x18] sm:$0xff] %v1830_v19   ;;  %v1326_v24 = vadd.f32 %v1325_v10, %v1138_v20 }
  0xde   :  { %v2348_v3 = vpop.f32.mrf.mxu2 }
  0xdf   :  { %v2344_v62 = vpop.f32.mrf.mxu3  ;;  %v1750_v6 = vpack.c.bf16 %v2348_v3, %v2336_v53 }
  0xe0   :  { %v406_v26 = vpop.f32.mrf.mxu0  ;;  %v1910_v1 = vpack.c.bf16 %v2344_v62, %v2331_v48 }
  0xe1   :  { %v979_v27 = vadd.f32 %v978_v17, %v406_v26  ;;  %v1139_v28 = vmul.f32 %v406_v26, %v406_v26  ;;  %v575_v29 = vpop.f32.mrf.mxu1  ;;  %1990 = vst [vmem:[%s2978_s2 + $0x98] sm:$0xff] %v1750_v6  }
  0xe2   :  { %v1048_v32 = vadd.f32 %v1047_v21, %v575_v29  ;;  %v1140_v33 = vmul.f32 %v575_v29, %v575_v29  ;;  %2021 = vst [vmem:[%s2979_s3 + $0x98] sm:$0xff] %v1910_v1  }
  0xe3   :  { %v1258_v36 = vadd.f32 %v1257_v22, %v1139_v28  ;;  %445 = vmatmul.bf16.gmra.mxu0 %v1616_v25  ;;  %525 = vmatmul.bf16.gmra.mxu2 %v1632_v7  ;;  %v1618_v22 = vld [vmem:[%s2977_s0 + $0x70] sm:$0xff] }
  0xe4   :  { %v1327_v38 = vadd.f32 %v1326_v24, %v1140_v33  ;;  %614 = vmatmul.bf16.gmra.mxu1 %v1616_v25  ;;  %694 = vmatmul.bf16.gmra.mxu3 %v1632_v7 }
  0xe6   :  { %v2366_v20 = vpop.f32.mrf.mxu2 }
  0xe7   :  { %v2361_v14 = vpop.f32.mrf.mxu3 }
  0xe8   :  { %v408_v41 = vpop.f32.mrf.mxu0 }
  0xe9   :  { %v1675_v43 = vpack.c.bf16 %v408_v41, %v406_v26  ;;  %v980_v44 = vadd.f32 %v979_v27, %v408_v41  ;;  %v1141_v45 = vmul.f32 %v408_v41, %v408_v41  ;;  %v577_v46 = vpop.f32.mrf.mxu1 }
  0xea   :  { %v1835_v49 = vpack.c.bf16 %v577_v46, %v575_v29  ;;  %v1049_v50 = vadd.f32 %v1048_v32, %v577_v46  ;;  %v1142_v51 = vmul.f32 %v577_v46, %v577_v46 }
  0xeb   :  { %1975 = vst [vmem:[%s2978_s2 + $0x20] sm:$0xff] %v1675_v43   ;;  %v1259_v52 = vadd.f32 %v1258_v36, %v1141_v45 }
  0xec   :  { %2006 = vst [vmem:[%s2979_s3 + $0x20] sm:$0xff] %v1835_v49   ;;  %v1328_v54 = vadd.f32 %v1327_v38, %v1142_v51 }
  0xee   :  { %v2378_v36 = vpop.f32.mrf.mxu2 }
  0xef   :  { %v2374_v28 = vpop.f32.mrf.mxu3  ;;  %v1755_v39 = vpack.c.bf16 %v2378_v36, %v2366_v20 }
  0xf0   :  { %v411_v57 = vpop.f32.mrf.mxu0  ;;  %v1915_v33 = vpack.c.bf16 %v2374_v28, %v2361_v14 }
  0xf1   :  { %v981_v58 = vadd.f32 %v980_v44, %v411_v57  ;;  %v1143_v59 = vmul.f32 %v411_v57, %v411_v57  ;;  %v580_v60 = vpop.f32.mrf.mxu1  ;;  %1991 = vst [vmem:[%s2978_s2 + $0xa0] sm:$0xff] %v1755_v39  }
  0xf2   :  { %v1050_v63 = vadd.f32 %v1049_v50, %v580_v60  ;;  %v1144_v0 = vmul.f32 %v580_v60, %v580_v60  ;;  %2022 = vst [vmem:[%s2979_s3 + $0xa0] sm:$0xff] %v1915_v33  }
  0xf3   :  { %v1260_v2 = vadd.f32 %v1259_v52, %v1143_v59  ;;  %450 = vmatmul.bf16.gmra.mxu0 %v1617_v55  ;;  %530 = vmatmul.bf16.gmra.mxu2 %v1633_v40 }
  0xf4   :  { %v1329_v5 = vadd.f32 %v1328_v54, %v1144_v0  ;;  %619 = vmatmul.bf16.gmra.mxu1 %v1617_v55  ;;  %699 = vmatmul.bf16.gmra.mxu3 %v1633_v40 }
  0xf6   :  { %v2396_v55 = vpop.f32.mrf.mxu2 }
  0xf7   :  { %v2391_v49 = vpop.f32.mrf.mxu3 }
  0xf8   :  { %v413_v8 = vpop.f32.mrf.mxu0 }
  0xf9   :  { %v1680_v10 = vpack.c.bf16 %v413_v8, %v411_v57  ;;  %v982_v11 = vadd.f32 %v981_v58, %v413_v8  ;;  %v1145_v12 = vmul.f32 %v413_v8, %v413_v8  ;;  %v582_v13 = vpop.f32.mrf.mxu1  ;;  %v1619_v58 = vld [vmem:[%s2977_s0 + $0x78] sm:$0xff] }
  0xfa   :  { %v1840_v15 = vpack.c.bf16 %v582_v13, %v580_v60  ;;  %v1051_v16 = vadd.f32 %v1050_v63, %v582_v13  ;;  %v1146_v17 = vmul.f32 %v582_v13, %v582_v13 }
  0xfb   :  { %1976 = vst [vmem:[%s2978_s2 + $0x28] sm:$0xff] %v1680_v10   ;;  %v1261_v19 = vadd.f32 %v1260_v2, %v1145_v12  ;;  %v1634_v12 = vld [vmem:[%s2977_s0 + $0xf0] sm:$0xff] }
  0xfc   :  { %2007 = vst [vmem:[%s2979_s3 + $0x28] sm:$0xff] %v1840_v15   ;;  %v1330_v21 = vadd.f32 %v1329_v5, %v1146_v17 }
  0xfe   :  { %v2408_v8 = vpop.f32.mrf.mxu2 }
  0xff   :  { %v2404_v1 = vpop.f32.mrf.mxu3 }
 0x100   :  { %v416_v24 = vpop.f32.mrf.mxu0  ;;  %v1920_v6 = vpack.c.bf16 %v2404_v1, %v2391_v49 }
 0x101   :  { %v983_v25 = vadd.f32 %v982_v11, %v416_v24  ;;  %v1147_v26 = vmul.f32 %v416_v24, %v416_v24  ;;  %v585_v27 = vpop.f32.mrf.mxu1  ;;  %v1760_v11 = vpack.c.bf16 %v2408_v8, %v2396_v55 }
 0x102   :  { %v1052_v29 = vadd.f32 %v1051_v16, %v585_v27  ;;  %v1148_v32 = vmul.f32 %v585_v27, %v585_v27  ;;  %2023 = vst [vmem:[%s2979_s3 + $0xa8] sm:$0xff] %v1920_v6  }
 0x103   :  { %v1262_v34 = vadd.f32 %v1261_v19, %v1147_v26  ;;  %455 = vmatmul.bf16.gmra.mxu0 %v1618_v22  ;;  %1992 = vst [vmem:[%s2978_s2 + $0xa8] sm:$0xff] %v1760_v11   ;;  %535 = vmatmul.bf16.gmra.mxu2 %v1634_v12 }
 0x104   :  { %v1331_v38 = vadd.f32 %v1330_v21, %v1148_v32  ;;  %624 = vmatmul.bf16.gmra.mxu1 %v1618_v22  ;;  %704 = vmatmul.bf16.gmra.mxu3 %v1634_v12 }
 0x107   :  { %v2421_v21 = vpop.f32.mrf.mxu3 }
 0x108   :  { %v418_v41 = vpop.f32.mrf.mxu0 }
 0x109   :  { %v1685_v43 = vpack.c.bf16 %v418_v41, %v416_v24  ;;  %v984_v44 = vadd.f32 %v983_v25, %v418_v41  ;;  %v1149_v45 = vmul.f32 %v418_v41, %v418_v41  ;;  %v587_v46 = vpop.f32.mrf.mxu1 }
 0x10a   :  { %v1845_v50 = vpack.c.bf16 %v587_v46, %v585_v27  ;;  %v1053_v51 = vadd.f32 %v1052_v29, %v587_v46  ;;  %v1150_v52 = vmul.f32 %v587_v46, %v587_v46  ;;  %v2426_v27 = vpop.f32.mrf.mxu2 }
 0x10b   :  { %1977 = vst [vmem:[%s2978_s2 + $0x30] sm:$0xff] %v1685_v43   ;;  %v1263_v54 = vadd.f32 %v1262_v34, %v1149_v45 }
 0x10c   :  { %2008 = vst [vmem:[%s2979_s3 + $0x30] sm:$0xff] %v1845_v50   ;;  %v1332_v57 = vadd.f32 %v1331_v38, %v1150_v52 }
 0x10f   :  { %v2431_v39 = vpop.f32.mrf.mxu3 }
 0x110   :  { %v421_v59 = vpop.f32.mrf.mxu0  ;;  %v1925_v43 = vpack.c.bf16 %v2431_v39, %v2421_v21 }
 0x111   :  { %v985_v60 = vadd.f32 %v984_v44, %v421_v59  ;;  %v1151_v63 = vmul.f32 %v421_v59, %v421_v59  ;;  %v590_v0 = vpop.f32.mrf.mxu1 }
 0x112   :  { %v1054_v2 = vadd.f32 %v1053_v51, %v590_v0  ;;  %v1152_v5 = vmul.f32 %v590_v0, %v590_v0  ;;  %v2435_v45 = vpop.f32.mrf.mxu2  ;;  %2024 = vst [vmem:[%s2979_s3 + $0xb0] sm:$0xff] %v1925_v43   ;;  %v1635_v51 = vld [vmem:[%s2977_s0 + $0xf8] sm:$0xff] }
 0x113   :  { %v1264_v7 = vadd.f32 %v1263_v54, %v1151_v63  ;;  %460 = vmatmul.bf16.gmra.mxu0 %v1619_v58  ;;  %v1765_v50 = vpack.c.bf16 %v2435_v45, %v2426_v27  ;;  %540 = vmatmul.bf16.gmra.mxu2 %v1635_v51 }
 0x114   :  { %v1333_v10 = vadd.f32 %v1332_v57, %v1152_v5  ;;  %629 = vmatmul.bf16.gmra.mxu1 %v1619_v58  ;;  %709 = vmatmul.bf16.gmra.mxu3 %v1635_v51 }
 0x115   :  { %1993 = vst [vmem:[%s2978_s2 + $0xb0] sm:$0xff] %v1765_v50  }
 0x118   :  { %v423_v13 = vpop.f32.mrf.mxu0 }
 0x119   :  { %v1690_v15 = vpack.c.bf16 %v423_v13, %v421_v59  ;;  %v986_v16 = vadd.f32 %v985_v60, %v423_v13  ;;  %v1153_v17 = vmul.f32 %v423_v13, %v423_v13  ;;  %v592_v19 = vpop.f32.mrf.mxu1  ;;  %v2448_v60 = vpop.f32.mrf.mxu3 }
 0x11a   :  { %v1850_v22 = vpack.c.bf16 %v592_v19, %v590_v0  ;;  %v1055_v24 = vadd.f32 %v1054_v2, %v592_v19  ;;  %v1154_v25 = vmul.f32 %v592_v19, %v592_v19  ;;  %v2453_v6 = vpop.f32.mrf.mxu2 }
 0x11b   :  { %1978 = vst [vmem:[%s2978_s2 + $0x38] sm:$0xff] %v1690_v15   ;;  %v1265_v26 = vadd.f32 %v1264_v7, %v1153_v17 }
 0x11c   :  { %2009 = vst [vmem:[%s2979_s3 + $0x38] sm:$0xff] %v1850_v22   ;;  %v1334_v29 = vadd.f32 %v1333_v10, %v1154_v25 }
 0x120   :  { %v426_v32 = vpop.f32.mrf.mxu0 }
 0x121   :  { %v987_v33 = vadd.f32 %v986_v16, %v426_v32  ;;  %v1155_v34 = vmul.f32 %v426_v32, %v426_v32  ;;  %v595_v38 = vpop.f32.mrf.mxu1  ;;  %v2458_v15 = vpop.f32.mrf.mxu3 }
 0x122   :  { %v1056_v40 = vadd.f32 %v1055_v24, %v595_v38  ;;  %v1156_v41 = vmul.f32 %v595_v38, %v595_v38  ;;  %3026 = vst [vmem:[#allocation2_spill] sm:$0xff] %v2458_v15  ;;  %v1930_v19 = vpack.c.bf16 %v2458_v15, %v2448_v60  ;;  %v2462_v24 = vpop.f32.mrf.mxu2 }
 0x123   :  { %v1266_v44 = vadd.f32 %v1265_v26, %v1155_v34  ;;  %3027 = vst [vmem:[#allocation3_spill] sm:$0xff] %v2462_v24  ;;  %v1770_v26 = vpack.c.bf16 %v2462_v24, %v2453_v6 }
 0x124   :  { %v1335_v46 = vadd.f32 %v1334_v29, %v1156_v41  ;;  %2025 = vst [vmem:[%s2979_s3 + $0xb8] sm:$0xff] %v1930_v19  }
 0x125   :  { %1994 = vst [vmem:[%s2978_s2 + $0xb8] sm:$0xff] %v1770_v26  }
 0x128   :  { %v428_v52 = vpop.f32.mrf.mxu0 }
 0x129   :  { %v1695_v54 = vpack.c.bf16 %v428_v52, %v426_v32  ;;  %v988_v57 = vadd.f32 %v987_v33, %v428_v52  ;;  %v1157_v58 = vmul.f32 %v428_v52, %v428_v52  ;;  %v597_v59 = vpop.f32.mrf.mxu1 }
 0x12a   :  { %v1855_v63 = vpack.c.bf16 %v597_v59, %v595_v38  ;;  %v1057_v0 = vadd.f32 %v1056_v40, %v597_v59  ;;  %v1158_v2 = vmul.f32 %v597_v59, %v597_v59  ;;  %v2472_v40 = vpop.f32.mrf.mxu3  ;;  %v2477_v50 = vpop.f32.mrf.mxu2 }
 0x12b   :  { %1979 = vst [vmem:[%s2978_s2 + $0x40] sm:$0xff] %v1695_v54   ;;  %v1267_v5 = vadd.f32 %v1266_v44, %v1157_v58 }
 0x12c   :  { %2010 = vst [vmem:[%s2979_s3 + $0x40] sm:$0xff] %v1855_v63   ;;  %v1336_v7 = vadd.f32 %v1335_v46, %v1158_v2 }
 0x12d   :  { %3028 = vst [vmem:[#allocation4_spill] sm:$0xff] %v2472_v40 }
 0x12e   :  { %3029 = vst [vmem:[#allocation5_spill] sm:$0xff] %v2477_v50 }
 0x130   :  { %v431_v10 = vpop.f32.mrf.mxu0 }
 0x131   :  { %v989_v11 = vadd.f32 %v988_v57, %v431_v10  ;;  %v1159_v12 = vmul.f32 %v431_v10, %v431_v10  ;;  %v600_v13 = vpop.f32.mrf.mxu1 }
 0x132   :  { %v1058_v16 = vadd.f32 %v1057_v0, %v600_v13  ;;  %v1160_v17 = vmul.f32 %v600_v13, %v600_v13  ;;  %v2484_v59 = vpop.f32.mrf.mxu3 }
 0x133   :  { %v1268_v22 = vadd.f32 %v1267_v5, %v1159_v12  ;;  %3030 = vst [vmem:[#allocation6_spill] sm:$0xff] %v2484_v59  ;;  %v1935_v2 = vpack.c.bf16 %v2484_v59, %v2472_v40 }
 0x134   :  { %v1337_v25 = vadd.f32 %v1336_v7, %v1160_v17  ;;  %v2492_v7 = vpop.f32.mrf.mxu2 }
 0x135   :  { %3031 = vst [vmem:[#allocation7_spill] sm:$0xff] %v2492_v7 }
 0x136   :  { %2026 = vst [vmem:[%s2979_s3 + $0xc0] sm:$0xff] %v1935_v2  }
 0x138   :  { %v433_v29 = vpop.f32.mrf.mxu0 }
 0x139   :  { %v1700_v32 = vpack.c.bf16 %v433_v29, %v431_v10  ;;  %v990_v33 = vadd.f32 %v989_v11, %v433_v29  ;;  %v1161_v34 = vmul.f32 %v433_v29, %v433_v29  ;;  %v602_v38 = vpop.f32.mrf.mxu1  ;;  %v1775_v11 = vpack.c.bf16 %v2492_v7, %v2477_v50 }
 0x13a   :  { %v1860_v41 = vpack.c.bf16 %v602_v38, %v600_v13  ;;  %v1059_v43 = vadd.f32 %v1058_v16, %v602_v38  ;;  %v1162_v44 = vmul.f32 %v602_v38, %v602_v38  ;;  %v2509_v17 = vpop.f32.mrf.mxu3 }
 0x13b   :  { %1980 = vst [vmem:[%s2978_s2 + $0x48] sm:$0xff] %v1700_v32   ;;  %v1269_v46 = vadd.f32 %v1268_v22, %v1161_v34 }
 0x13c   :  { %2011 = vst [vmem:[%s2979_s3 + $0x48] sm:$0xff] %v1860_v41   ;;  %v1338_v51 = vadd.f32 %v1337_v25, %v1162_v44  ;;  %v2515_v22 = vpop.f32.mrf.mxu2 }
 0x13d   :  { %1995 = vst [vmem:[%s2978_s2 + $0xc0] sm:$0xff] %v1775_v11  }
 0x13e   :  { %3032 = vst [vmem:[#allocation8_spill] sm:$0xff] %v2509_v17 }
 0x13f   :  { %3033 = vst [vmem:[#allocation9_spill] sm:$0xff] %v2515_v22 }
 0x140   :  { %v436_v52 = vpop.f32.mrf.mxu0 }
 0x141   :  { %v2482_v54 = vadd.f32 %v990_v33, %v436_v52  ;;  %v1163_v57 = vmul.f32 %v436_v52, %v436_v52  ;;  %v605_v58 = vpop.f32.mrf.mxu1 }
 0x142   :  { %v2486_v63 = vadd.f32 %v1059_v43, %v605_v58  ;;  %v1164_v0 = vmul.f32 %v605_v58, %v605_v58  ;;  %v2524_v29 = vpop.f32.mrf.mxu3 }
 0x143   :  { %v2490_v5 = vadd.f32 %v1269_v46, %v1163_v57  ;;  %3034 = vst [vmem:[#allocation10_spill] sm:$0xff] %v2524_v29  ;;  %v1940_v32 = vpack.c.bf16 %v2524_v29, %v2509_v17 }
 0x144   :  { %v2494_v10 = vadd.f32 %v1338_v51, %v1164_v0  ;;  %v2528_v33 = vpop.f32.mrf.mxu2 }
 0x145   :  { %3035 = vst [vmem:[#allocation11_spill] sm:$0xff] %v2528_v33  ;;  %v1780_v34 = vpack.c.bf16 %v2528_v33, %v2515_v22 }
 0x146   :  { %2027 = vst [vmem:[%s2979_s3 + $0xc8] sm:$0xff] %v1940_v32  }
 0x147   :  { %1996 = vst [vmem:[%s2978_s2 + $0xc8] sm:$0xff] %v1780_v34  }
 0x148   :  { %v2504_v12 = vpop.f32.mrf.mxu0 }
 0x149   :  { %v1705_v13 = vpack.c.bf16 %v2504_v12, %v436_v52  ;;  %v2507_v16 = vpop.f32.mrf.mxu1  ;;  %v1165_v17 = vmul.f32 %v2504_v12, %v2504_v12  ;;  %v992_v59 = vadd.f32 %v2482_v54, %v2504_v12 }
 0x14a   :  { %v1865_v19 = vpack.c.bf16 %v2507_v16, %v605_v58  ;;  %v2541_v44 = vpop.f32.mrf.mxu3 }
 0x14b   :  { %1981 = vst [vmem:[%s2978_s2 + $0x50] sm:$0xff] %v1705_v13  }
 0x14c   :  { %2012 = vst [vmem:[%s2979_s3 + $0x50] sm:$0xff] %v1865_v19   ;;  %v2548_v51 = vpop.f32.mrf.mxu2 }
 0x14d   :  { %3036 = vst [vmem:[#allocation12_spill] sm:$0xff] %v2541_v44 }
 0x14e   :  { %3037 = vst [vmem:[#allocation13_spill] sm:$0xff] %v2548_v51 }
 0x150   :  { %v2520_v25 = vpop.f32.mrf.mxu0 }
 0x151   :  { %v2522_v26 = vpop.f32.mrf.mxu1 }
 0x152   :  { %v2557_v58 = vpop.f32.mrf.mxu3  ;;  %v1168_v7 = vmul.f32 %v2522_v26, %v2522_v26 }
 0x153   :  { %3038 = vst [vmem:[#allocation14_spill] sm:$0xff] %v2557_v58  ;;  %v1945_v0 = vpack.c.bf16 %v2557_v58, %v2541_v44 }
 0x154   :  { %v2561_v2 = vpop.f32.mrf.mxu2 }
 0x155   :  { %3039 = vst [vmem:[#allocation15_spill] sm:$0xff] %v2561_v2  ;;  %v1785_v11 = vpack.c.bf16 %v2561_v2, %v2548_v51 }
 0x156   :  { %2028 = vst [vmem:[%s2979_s3 + $0xd0] sm:$0xff] %v1945_v0  }
 0x157   :  { %1997 = vst [vmem:[%s2978_s2 + $0xd0] sm:$0xff] %v1785_v11  }
 0x158   :  { %v443_v38 = vpop.f32.mrf.mxu0 }
 0x159   :  { %v1710_v41 = vpack.c.bf16 %v443_v38, %v2520_v25  ;;  %v2539_v43 = vpop.f32.mrf.mxu1 }
 0x15a   :  { %v1870_v46 = vpack.c.bf16 %v2539_v43, %v2522_v26  ;;  %v2577_v34 = vpop.f32.mrf.mxu3  ;;  %v1170_v40 = vmul.f32 %v2539_v43, %v2539_v43 }
 0x15b   :  { %1982 = vst [vmem:[%s2978_s2 + $0x58] sm:$0xff] %v1710_v41  }
 0x15c   :  { %2013 = vst [vmem:[%s2979_s3 + $0x58] sm:$0xff] %v1870_v46   ;;  %v2584_v46 = vpop.f32.mrf.mxu2 }
 0x15d   :  { %3040 = vst [vmem:[#allocation16_spill] sm:$0xff] %v2577_v34 }
 0x15e   :  { %3041 = vst [vmem:[#allocation17_spill] sm:$0xff] %v2584_v46 }
 0x160   :  { %v2553_v52 = vpop.f32.mrf.mxu0 }
 0x161   :  { %v2555_v57 = vpop.f32.mrf.mxu1  ;;  %v1171_v15 = vmul.f32 %v2553_v52, %v2553_v52 }
 0x162   :  { %v2593_v58 = vpop.f32.mrf.mxu3 }
 0x163   :  { %3042 = vst [vmem:[#allocation18_spill] sm:$0xff] %v2593_v58  ;;  %v1950_v2 = vpack.c.bf16 %v2593_v58, %v2577_v34 }
 0x164   :  { %v2597_v44 = vpop.f32.mrf.mxu2 }
 0x165   :  { %3043 = vst [vmem:[#allocation19_spill] sm:$0xff] %v2597_v44 }
 0x166   :  { %2029 = vst [vmem:[%s2979_s3 + $0xd8] sm:$0xff] %v1950_v2  }
 0x168   :  { %v2571_v13 = vpop.f32.mrf.mxu0 }
 0x169   :  { %v1715_v19 = vpack.c.bf16 %v2571_v13, %v2553_v52  ;;  %v2575_v32 = vpop.f32.mrf.mxu1 }
 0x16a   :  { %v1875_v41 = vpack.c.bf16 %v2575_v32, %v2555_v57  ;;  %v2610_v29 = vpop.f32.mrf.mxu3 }
 0x16b   :  { %1983 = vst [vmem:[%s2978_s2 + $0x60] sm:$0xff] %v1715_v19   ;;  %v1790_v19 = vpack.c.bf16 %v2597_v44, %v2584_v46 }
 0x16c   :  { %2014 = vst [vmem:[%s2979_s3 + $0x60] sm:$0xff] %v1875_v41   ;;  %v2617_v2 = vpop.f32.mrf.mxu2 }
 0x16d   :  { %1998 = vst [vmem:[%s2978_s2 + $0xd8] sm:$0xff] %v1790_v19  }
 0x16e   :  { %3044 = vst [vmem:[#allocation20_spill] sm:$0xff] %v2610_v29 }
 0x16f   :  { %3045 = vst [vmem:[#allocation21_spill] sm:$0xff] %v2617_v2 }
 0x170   :  { %v2589_v0 = vpop.f32.mrf.mxu0 }
 0x171   :  { %v2591_v11 = vpop.f32.mrf.mxu1 }
 0x172   :  { %v2626_v34 = vpop.f32.mrf.mxu3 }
 0x173   :  { %3046 = vst [vmem:[#allocation22_spill] sm:$0xff] %v2626_v34  ;;  %v1955_v46 = vpack.c.bf16 %v2626_v34, %v2610_v29  ;;  %v1167_v34 = vmul.f32 %v2520_v25, %v2520_v25  ;;  %v1061_v29 = vadd.f32 %v2486_v63, %v2507_v16 }
 0x174   :  { %v2632_v22 = vpop.f32.mrf.mxu2 }
 0x175   :  { %3047 = vst [vmem:[#allocation23_spill] sm:$0xff] %v2632_v22  ;;  %v1062_v12 = vadd.f32 %v1061_v29, %v2522_v26 }
 0x176   :  { %2030 = vst [vmem:[%s2979_s3 + $0xe0] sm:$0xff] %v1955_v46   ;;  %v1271_v46 = vadd.f32 %v2490_v5, %v1165_v17 }
 0x177   :  { %v1063_v17 = vadd.f32 %v1062_v12, %v2539_v43 }
 0x178   :  { %v453_v41 = vpop.f32.mrf.mxu0 }
 0x179   :  { %v1720_v51 = vpack.c.bf16 %v453_v41, %v2589_v0  ;;  %v2608_v33 = vpop.f32.mrf.mxu1  ;;  %v1064_v43 = vadd.f32 %v1063_v17, %v2555_v57  ;;  %v1177_v12 = vmul.f32 %v453_v41, %v453_v41 }
 0x17a   :  { %v1880_v58 = vpack.c.bf16 %v2608_v33, %v2591_v11  ;;  %v2661_v5 = vpop.f32.mrf.mxu3 }
 0x17b   :  { %1984 = vst [vmem:[%s2978_s2 + $0x68] sm:$0xff] %v1720_v51   ;;  %v1166_v51 = vmul.f32 %v2507_v16, %v2507_v16  ;;  %v1272_v16 = vadd.f32 %v1271_v46, %v1167_v34  ;;  %v1174_v34 = vmul.f32 %v2575_v32, %v2575_v32  ;;  %v1065_v46 = vadd.f32 %v1064_v43, %v2575_v32 }
 0x17c   :  { %2015 = vst [vmem:[%s2979_s3 + $0x68] sm:$0xff] %v1880_v58   ;;  %v1795_v58 = vpack.c.bf16 %v2632_v22, %v2617_v2  ;;  %v993_v22 = vadd.f32 %v992_v59, %v2520_v25  ;;  %v1169_v2 = vmul.f32 %v443_v38, %v443_v38 }
 0x17d   :  { %v1340_v54 = vadd.f32 %v2494_v10, %v1166_v51  ;;  %v1172_v10 = vmul.f32 %v2555_v57, %v2555_v57 }
 0x17e   :  { %1999 = vst [vmem:[%s2978_s2 + $0xe0] sm:$0xff] %v1795_v58   ;;  %v994_v50 = vadd.f32 %v993_v22, %v443_v38  ;;  %v1273_v26 = vadd.f32 %v1272_v16, %v1169_v2  ;;  %v1173_v22 = vmul.f32 %v2571_v13, %v2571_v13  ;;  %v2673_v38 = vpop.f32.mrf.mxu2  ;;  %v1175_v2 = vmul.f32 %v2589_v0, %v2589_v0 }
 0x17f   :  { %v1341_v59 = vadd.f32 %v1340_v54, %v1168_v7 }
 0x180   :  { %v2622_v19 = vpop.f32.mrf.mxu0  ;;  %v995_v29 = vadd.f32 %v994_v50, %v2553_v52  ;;  %v1274_v50 = vadd.f32 %v1273_v26, %v1171_v15  ;;  %v1178_v15 = vmul.f32 %v2608_v33, %v2608_v33 }
 0x181   :  { %v2624_v44 = vpop.f32.mrf.mxu1  ;;  %v1342_v7 = vadd.f32 %v1341_v59, %v1170_v40  ;;  %v1176_v40 = vmul.f32 %v2591_v11, %v2591_v11 }
 0x182   :  { %v996_v52 = vadd.f32 %v995_v29, %v2571_v13  ;;  %v1275_v57 = vadd.f32 %v1274_v50, %v1173_v22 }
 0x183   :  { %v1343_v51 = vadd.f32 %v1342_v7, %v1172_v10  ;;  %v1179_v10 = vmul.f32 %v2622_v19, %v2622_v19 }
 0x184   :  { %v997_v54 = vadd.f32 %v996_v52, %v2589_v0  ;;  %v1276_v59 = vadd.f32 %v1275_v57, %v1175_v2  ;;  %v1180_v0 = vmul.f32 %v2624_v44, %v2624_v44 }
 0x185   :  { %v1344_v16 = vadd.f32 %v1343_v51, %v1174_v34 }
 0x186   :  { %v998_v17 = vadd.f32 %v997_v54, %v453_v41  ;;  %v1277_v22 = vadd.f32 %v1276_v59, %v1177_v12  ;;  %v2701_v41 = vpop.f32.mrf.mxu2 }
 0x187   :  { %v1345_v26 = vadd.f32 %v1344_v16, %v1176_v40 }
 0x188   :  { %v458_v63 = vpop.f32.mrf.mxu0  ;;  %v999_v7 = vadd.f32 %v998_v17, %v2622_v19  ;;  %v1278_v2 = vadd.f32 %v1277_v22, %v1179_v10  ;;  %v1187_v22 = vmul.f32 %v2246_v35, %v2246_v35 }
 0x189   :  { %v1725_v58 = vpack.c.bf16 %v458_v63, %v2622_v19  ;;  %v627_v24 = vpop.f32.mrf.mxu1  ;;  %v1181_v43 = vmul.f32 %v458_v63, %v458_v63  ;;  %v1346_v34 = vadd.f32 %v1345_v26, %v1178_v15 }
 0x18a   :  { %v1885_v25 = vpack.c.bf16 %v627_v24, %v2624_v44  ;;  %v1182_v52 = vmul.f32 %v627_v24, %v627_v24  ;;  %v1000_v51 = vadd.f32 %v999_v7, %v458_v63 }
 0x18b   :  { %1985 = vst [vmem:[%s2978_s2 + $0x70] sm:$0xff] %v1725_v58   ;;  %v1066_v58 = vadd.f32 %v1065_v46, %v2591_v11  ;;  %v1347_v40 = vadd.f32 %v1346_v34, %v1180_v0  ;;  %v1279_v54 = vadd.f32 %v1278_v2, %v1181_v43  ;;  %v1188_v34 = vmul.f32 %v2241_v30, %v2241_v30 }
 0x18c   :  { %2016 = vst [vmem:[%s2979_s3 + $0x70] sm:$0xff] %v1885_v25   ;;  %v2693_v25 = vpop.f32.mrf.mxu3 }
 0x18d   :  { %v1067_v29 = vadd.f32 %v1066_v58, %v2608_v33  ;;  %v1960_v11 = vpack.c.bf16 %v2693_v25, %v2661_v5  ;;  %v1800_v33 = vpack.c.bf16 %v2701_v41, %v2673_v38  ;;  %v1348_v12 = vadd.f32 %v1347_v40, %v1182_v52 }
 0x18e   :  { %v1189_v52 = vmul.f32 %v2258_v47, %v2258_v47  ;;  %v1191_v40 = vmul.f32 %v2276_v61, %v2276_v61 }
 0x18f   :  { %v1068_v50 = vadd.f32 %v1067_v29, %v2624_v44  ;;  %2031 = vst [vmem:[%s2979_s3 + $0xe8] sm:$0xff] %v1960_v11  }
 0x190   :  { %v461_v13 = vpop.f32.mrf.mxu0  ;;  %2000 = vst [vmem:[%s2978_s2 + $0xe8] sm:$0xff] %v1800_v33  }
 0x191   :  { %v630_v32 = vpop.f32.mrf.mxu1  ;;  %v1183_v46 = vmul.f32 %v461_v13, %v461_v13  ;;  %v1069_v57 = vadd.f32 %v1068_v50, %v627_v24  ;;  %v1001_v44 = vadd.f32 %v1000_v51, %v461_v13 }
 0x192   :  { %v1184_v19 = vmul.f32 %v630_v32, %v630_v32 }
 0x193   :  { %v1070_v16 = vadd.f32 %v1069_v57, %v630_v32  ;;  %v1280_v15 = vadd.f32 %v1279_v54, %v1183_v46 }
 0x194   :  { %v2712_v10 = vpop.f32.mrf.mxu3  ;;  %v1349_v63 = vadd.f32 %v1348_v12, %v1184_v19 }
 0x198   :  { %v463_v58 = vpop.f32.mrf.mxu0 }
 0x199   :  { %v1730_v59 = vpack.c.bf16 %v463_v58, %v461_v13  ;;  %v1002_v17 = vadd.f32 %v1001_v44, %v463_v58  ;;  %v1185_v26 = vmul.f32 %v463_v58, %v463_v58  ;;  %v632_v29 = vpop.f32.mrf.mxu1  ;;  %v2720_v13 = vpop.f32.mrf.mxu2  ;;  %v1194_v58 = vmul.f32 %v2284_v4, %v2284_v4 }
 0x19a   :  { %v1890_v0 = vpack.c.bf16 %v632_v29, %v630_v32  ;;  %v1071_v24 = vadd.f32 %v1070_v16, %v632_v29  ;;  %v1186_v11 = vmul.f32 %v632_v29, %v632_v29 }
 0x19b   :  { %1986 = vst [vmem:[%s2978_s2 + $0x78] sm:$0xff] %v1730_v59   ;;  %v1003_v7 = vadd.f32 %v1002_v17, %v2246_v35  ;;  %v1281_v43 = vadd.f32 %v1280_v15, %v1185_v26  ;;  %v1190_v35 = vmul.f32 %v2254_v42, %v2254_v42 }
 0x19c   :  { %2017 = vst [vmem:[%s2979_s3 + $0x78] sm:$0xff] %v1890_v0   ;;  %v1072_v32 = vadd.f32 %v1071_v24, %v2241_v30  ;;  %v1350_v50 = vadd.f32 %v1349_v63, %v1186_v11  ;;  %v1192_v30 = vmul.f32 %v2271_v56, %v2271_v56  ;;  %v1197_v24 = vmul.f32 %v2318_v37, %v2318_v37 }
 0x19d   :  { %v1004_v33 = vadd.f32 %v1003_v7, %v2258_v47  ;;  %v1282_v2 = vadd.f32 %v1281_v43, %v1187_v22  ;;  %v1193_v47 = vmul.f32 %v2288_v9, %v2288_v9  ;;  %v1198_v22 = vmul.f32 %v2314_v31, %v2314_v31 }
 0x19e   :  { %v1073_v51 = vadd.f32 %v1072_v32, %v2254_v42  ;;  %v1351_v46 = vadd.f32 %v1350_v50, %v1188_v34  ;;  %v2743_v42 = vpop.f32.mrf.mxu3  ;;  %v1199_v43 = vmul.f32 %v2336_v53, %v2336_v53 }
 0x19f   :  { %v1005_v57 = vadd.f32 %v1004_v33, %v2276_v61  ;;  %v1283_v19 = vadd.f32 %v1282_v2, %v1189_v52  ;;  %v1965_v59 = vpack.c.bf16 %v2743_v42, %v2712_v10 }
 0x1a0   :  { %v1074_v54 = vadd.f32 %v1073_v51, %v2271_v56  ;;  %v1352_v44 = vadd.f32 %v1351_v46, %v1190_v35  ;;  %v1195_v56 = vmul.f32 %v2306_v23, %v2306_v23  ;;  %v1202_v51 = vmul.f32 %v2344_v62, %v2344_v62 }
 0x1a1   :  { %v1006_v12 = vadd.f32 %v1005_v57, %v2288_v9  ;;  %v1284_v16 = vadd.f32 %v1283_v19, %v1191_v40  ;;  %v2753_v29 = vpop.f32.mrf.mxu2  ;;  %v1196_v9 = vmul.f32 %v2301_v18, %v2301_v18  ;;  %2032 = vst [vmem:[%s2979_s3 + $0xf0] sm:$0xff] %v1965_v59   ;;  %v1203_v40 = vmul.f32 %v2366_v20, %v2366_v20 }
 0x1a2   :  { %v1075_v61 = vadd.f32 %v1074_v54, %v2284_v4  ;;  %v1353_v15 = vadd.f32 %v1352_v44, %v1192_v30  ;;  %v1805_v4 = vpack.c.bf16 %v2753_v29, %v2720_v13  ;;  %v1205_v44 = vmul.f32 %v2378_v36, %v2378_v36 }
 0x1a3   :  { %v1007_v17 = vadd.f32 %v1006_v12, %v2306_v23  ;;  %v1285_v26 = vadd.f32 %v1284_v16, %v1193_v47  ;;  %v1206_v12 = vmul.f32 %v2374_v28, %v2374_v28 }
 0x1a4   :  { %v1076_v63 = vadd.f32 %v1075_v61, %v2301_v18  ;;  %v1354_v0 = vadd.f32 %v1353_v15, %v1194_v58  ;;  %2001 = vst [vmem:[%s2978_s2 + $0xf0] sm:$0xff] %v1805_v4   ;;  %v1207_v58 = vmul.f32 %v2396_v55, %v2396_v55 }
 0x1a5   :  { %v1008_v23 = vadd.f32 %v1007_v17, %v2318_v37  ;;  %v1286_v11 = vadd.f32 %v1285_v26, %v1195_v56  ;;  %v1200_v37 = vmul.f32 %v2331_v48, %v2331_v48 }
 0x1a6   :  { %v1077_v7 = vadd.f32 %v1076_v63, %v2314_v31  ;;  %v1355_v18 = vadd.f32 %v1354_v0, %v1196_v9  ;;  %v1201_v31 = vmul.f32 %v2348_v3, %v2348_v3  ;;  %v2781_v35 = vpop.f32.mrf.mxu3  ;;  %v1210_v9 = vmul.f32 %v2404_v1, %v2404_v1 }
 0x1a7   :  { %v1009_v34 = vadd.f32 %v1008_v23, %v2336_v53  ;;  %v1287_v32 = vadd.f32 %v1286_v11, %v1197_v24 }
 0x1a8   :  { %v1078_v50 = vadd.f32 %v1077_v7, %v2331_v48  ;;  %v1356_v52 = vadd.f32 %v1355_v18, %v1198_v22  ;;  %v1213_v7 = vmul.f32 %v2435_v45, %v2435_v45 }
 0x1a9   :  { %v1010_v33 = vadd.f32 %v1009_v34, %v2348_v3  ;;  %v1288_v2 = vadd.f32 %v1287_v32, %v1199_v43  ;;  %v2789_v19 = vpop.f32.mrf.mxu2  ;;  %v1204_v3 = vmul.f32 %v2361_v14, %v2361_v14  ;;  %v1214_v43 = vmul.f32 %v2431_v39, %v2431_v39 }
 0x1aa   :  { %v1079_v53 = vadd.f32 %v1078_v50, %v2344_v62  ;;  %v1357_v46 = vadd.f32 %v1356_v52, %v1200_v37 }
 0x1ab   :  { %v1011_v48 = vadd.f32 %v1010_v33, %v2366_v20  ;;  %v1289_v57 = vadd.f32 %v1288_v2, %v1201_v31  ;;  %v3048_v33 = vld [vmem:[#allocation3_spill] sm:$0xff] }
 0x1ac   :  { %v1080_v30 = vadd.f32 %v1079_v53, %v2361_v14  ;;  %v1358_v54 = vadd.f32 %v1357_v46, %v1202_v51  ;;  %v1208_v14 = vmul.f32 %v2391_v49, %v2391_v49  ;;  %v3049_v53 = vld [vmem:[#allocation2_spill] sm:$0xff] }
 0x1ad   :  { %v1012_v62 = vadd.f32 %v1011_v48, %v2378_v36  ;;  %v1290_v47 = vadd.f32 %v1289_v57, %v1203_v40  ;;  %v1209_v36 = vmul.f32 %v2408_v8, %v2408_v8  ;;  %v1218_v46 = vmul.f32 %v3049_v53, %v3049_v53 }
 0x1ae   :  { %v1081_v20 = vadd.f32 %v1080_v30, %v2374_v28  ;;  %v1359_v16 = vadd.f32 %v1358_v54, %v1204_v3  ;;  %v2809_v28 = vpop.f32.mrf.mxu3 }
 0x1af   :  { %v1013_v61 = vadd.f32 %v1012_v62, %v2396_v55  ;;  %v1291_v15 = vadd.f32 %v1290_v47, %v1205_v44  ;;  %v1970_v0 = vpack.c.bf16 %v2809_v28, %v2781_v35  ;;  %v3052_v47 = vld [vmem:[#allocation7_spill] sm:$0xff] }
 0x1b0   :  { %v1082_v59 = vadd.f32 %v1081_v20, %v2391_v49  ;;  %v1360_v56 = vadd.f32 %v1359_v16, %v1206_v12  ;;  %v1211_v49 = vmul.f32 %v2426_v27, %v2426_v27  ;;  %v1221_v12 = vmul.f32 %v3052_v47, %v3052_v47 }
 0x1b1   :  { %v1014_v17 = vadd.f32 %v1013_v61, %v2408_v8  ;;  %v1292_v26 = vadd.f32 %v1291_v15, %v1207_v58  ;;  %v2819_v23 = vpop.f32.mrf.mxu2  ;;  %v1212_v8 = vmul.f32 %v2421_v21, %v2421_v21  ;;  %2033 = vst [vmem:[%s2979_s3 + $0xf8] sm:$0xff] %v1970_v0   ;;  %v3053_v58 = vld [vmem:[#allocation6_spill] sm:$0xff]  ;;  %v19_v0 = vlaneseq }
 0x1b2   :  { %v1083_v55 = vadd.f32 %v1082_v59, %v2404_v1  ;;  %v1361_v63 = vadd.f32 %v1360_v56, %v1208_v14  ;;  %v1810_v1 = vpack.c.bf16 %v2819_v23, %v2789_v19  ;;  %v1222_v61 = vmul.f32 %v3053_v58, %v3053_v58  ;;  %v3054_v59 = vld [vmem:[#allocation9_spill] sm:$0xff] }
 0x1b3   :  { %v1293_v4 = vadd.f32 %v1292_v26, %v1209_v36  ;;  %v1015_v24 = vadd.f32 %v1014_v17, %v2426_v27  ;;  %v1223_v56 = vmul.f32 %v3054_v59, %v3054_v59  ;;  %v3055_v26 = vld [vmem:[#allocation8_spill] sm:$0xff]  ;;  %vm2874_vm0 = vcmp.lt.s32.totalorder %v19_v0, 256  ;;  %v3070_v0 = vld [vmem:[#allocation23_spill] sm:$0xff] }
 0x1b4   :  { %v1362_v11 = vadd.f32 %v1361_v63, %v1210_v9  ;;  %v1084_v22 = vadd.f32 %v1083_v55, %v2421_v21  ;;  %2002 = vst [vmem:[%s2978_s2 + $0xf8] sm:$0xff] %v1810_v1   ;;  %v1215_v21 = vmul.f32 %v2453_v6, %v2453_v6  ;;  %v1224_v9 = vmul.f32 %v3055_v26, %v3055_v26 }
 0x1b5   :  { %v1016_v27 = vadd.f32 %v1015_v24, %v2435_v45  ;;  %v1294_v18 = vadd.f32 %v1293_v4, %v1211_v49  ;;  %v1216_v45 = vmul.f32 %v2448_v60, %v2448_v60  ;;  %v3056_v49 = vld [vmem:[#allocation10_spill] sm:$0xff]  ;;  %v3057_v24 = vld [vmem:[#allocation11_spill] sm:$0xff] }
 0x1b6   :  { %v1085_v34 = vadd.f32 %v1084_v22, %v2431_v39  ;;  %v1363_v32 = vadd.f32 %v1362_v11, %v1212_v8  ;;  %v1217_v39 = vmul.f32 %v3048_v33, %v3048_v33  ;;  %v1226_v4 = vmul.f32 %v3056_v49, %v3056_v49 }
 0x1b7   :  { %v1017_v37 = vadd.f32 %v1016_v27, %v2453_v6  ;;  %v1295_v50 = vadd.f32 %v1294_v18, %v1213_v7  ;;  %v3050_v6 = vld [vmem:[#allocation5_spill] sm:$0xff]  ;;  %v1225_v8 = vmul.f32 %v3057_v24, %v3057_v24 }
 0x1b8   :  { %v1086_v52 = vadd.f32 %v1085_v34, %v2448_v60  ;;  %v1364_v31 = vadd.f32 %v1363_v32, %v1214_v43  ;;  %v1219_v57 = vmul.f32 %v3050_v6, %v3050_v6  ;;  %v3051_v60 = vld [vmem:[#allocation4_spill] sm:$0xff]  ;;  %v3060_v18 = vld [vmem:[#allocation13_spill] sm:$0xff] }
 0x1b9   :  { %v1018_v2 = vadd.f32 %v1017_v37, %v3048_v33  ;;  %v1296_v51 = vadd.f32 %v1295_v50, %v1215_v21  ;;  %v1220_v54 = vmul.f32 %v3051_v60, %v3051_v60  ;;  %v1227_v43 = vmul.f32 %v3060_v18, %v3060_v18  ;;  %v3061_v37 = vld [vmem:[#allocation12_spill] sm:$0xff] }
 0x1ba   :  { %v1087_v40 = vadd.f32 %v1086_v52, %v3049_v53  ;;  %v1365_v48 = vadd.f32 %v1364_v31, %v1216_v45  ;;  %v2051_v21 = vmov 0.0   ;;  %v1228_v50 = vmul.f32 %v3061_v37, %v3061_v37  ;;  %v3062_v31 = vld [vmem:[#allocation15_spill] sm:$0xff] }
 0x1bb   :  { %v1019_v3 = vadd.f32 %v1018_v2, %v3050_v6  ;;  %v1297_v30 = vadd.f32 %v1296_v51, %v1217_v39  ;;  %23 = vst.msk [vmem:[%s2980_s4] sm:$0x3] %vm2874_vm0, %v2051_v21  ;;  %v1229_v33 = vmul.f32 %v3062_v31, %v3062_v31  ;;  %v3063_v51 = vld [vmem:[#allocation14_spill] sm:$0xff] }
 0x1bc   :  { %v1088_v44 = vadd.f32 %v1087_v40, %v3051_v60  ;;  %v1366_v62 = vadd.f32 %v1365_v48, %v1218_v46  ;;  %24 = vst.msk [vmem:[%s2981_s5] sm:$0x3] %vm2874_vm0, %v2051_v21  ;;  %v1230_v53 = vmul.f32 %v3063_v51, %v3063_v51  ;;  %v3064_v48 = vld [vmem:[#allocation17_spill] sm:$0xff] }
 0x1bd   :  { %v1020_v20 = vadd.f32 %v1019_v3, %v3052_v47  ;;  %v1298_v16 = vadd.f32 %v1297_v30, %v1219_v57  ;;  %v1231_v6 = vmul.f32 %v3064_v48, %v3064_v48  ;;  %v3065_v30 = vld [vmem:[#allocation16_spill] sm:$0xff] }
 0x1be   :  { %v1089_v15 = vadd.f32 %v1088_v44, %v3053_v58  ;;  %v1367_v14 = vadd.f32 %v1366_v62, %v1220_v54  ;;  %v1232_v60 = vmul.f32 %v3065_v30, %v3065_v30  ;;  %v3066_v62 = vld [vmem:[#allocation19_spill] sm:$0xff] }
 0x1bf   :  { %v1021_v36 = vadd.f32 %v1020_v20, %v3054_v59  ;;  %v1299_v17 = vadd.f32 %v1298_v16, %v1221_v12  ;;  %v1233_v47 = vmul.f32 %v3066_v62, %v3066_v62  ;;  %v3067_v16 = vld [vmem:[#allocation18_spill] sm:$0xff] }
 0x1c0   :  { %v1090_v55 = vadd.f32 %v1089_v15, %v3055_v26  ;;  %v1368_v63 = vadd.f32 %v1367_v14, %v1222_v61  ;;  %v1234_v58 = vmul.f32 %v3067_v16, %v3067_v16  ;;  %v3068_v14 = vld [vmem:[#allocation21_spill] sm:$0xff] }
 0x1c1   :  { %v1022_v11 = vadd.f32 %v1021_v36, %v3057_v24  ;;  %v1300_v22 = vadd.f32 %v1299_v17, %v1223_v56  ;;  %v1235_v56 = vmul.f32 %v3068_v14, %v3068_v14  ;;  %v3069_v17 = vld [vmem:[#allocation20_spill] sm:$0xff] }
 0x1c2   :  { %v1091_v1 = vadd.f32 %v1090_v55, %v3056_v49  ;;  %v1369_v7 = vadd.f32 %v1368_v63, %v1224_v9  ;;  %v1236_v9 = vmul.f32 %v3069_v17, %v3069_v17 }
 0x1c3   :  { %v1023_v34 = vadd.f32 %v1022_v11, %v3060_v18  ;;  %v1301_v32 = vadd.f32 %v1300_v22, %v1225_v8  ;;  %v3071_v8 = vld [vmem:[#allocation22_spill] sm:$0xff]  ;;  %v1239_v18 = vmul.f32 %v2673_v38, %v2673_v38 }
 0x1c4   :  { %v1092_v45 = vadd.f32 %v1091_v1, %v3061_v37  ;;  %v1370_v52 = vadd.f32 %v1369_v7, %v1226_v4  ;;  %v1237_v4 = vmul.f32 %v3070_v0, %v3070_v0  ;;  %v1238_v22 = vmul.f32 %v3071_v8, %v3071_v8 }
 0x1c5   :  { %v1024_v39 = vadd.f32 %v1023_v34, %v3062_v31  ;;  %v1302_v2 = vadd.f32 %v1301_v32, %v1227_v43  ;;  %v1240_v32 = vmul.f32 %v2661_v5, %v2661_v5  ;;  %v1242_v31 = vmul.f32 %v2693_v25, %v2693_v25 }
 0x1c6   :  { %v1093_v46 = vadd.f32 %v1092_v45, %v3063_v51  ;;  %v1371_v40 = vadd.f32 %v1370_v52, %v1228_v50  ;;  %v1241_v50 = vmul.f32 %v2701_v41, %v2701_v41  ;;  %v1244_v51 = vmul.f32 %v2712_v10, %v2712_v10 }
 0x1c7   :  { %v1025_v57 = vadd.f32 %v1024_v39, %v3064_v48  ;;  %v1303_v3 = vadd.f32 %v1302_v2, %v1229_v33  ;;  %v1243_v39 = vmul.f32 %v2720_v13, %v2720_v13  ;;  %v1246_v48 = vmul.f32 %v2743_v42, %v2743_v42 }
 0x1c8   :  { %v1094_v54 = vadd.f32 %v1093_v46, %v3065_v30  ;;  %v1372_v44 = vadd.f32 %v1371_v40, %v1230_v53  ;;  %v1245_v46 = vmul.f32 %v2753_v29, %v2753_v29  ;;  %v1248_v30 = vmul.f32 %v2781_v35, %v2781_v35 }
 0x1c9   :  { %v1026_v12 = vadd.f32 %v1025_v57, %v3066_v62  ;;  %v1304_v20 = vadd.f32 %v1303_v3, %v1231_v6  ;;  %v1247_v57 = vmul.f32 %v2789_v19, %v2789_v19  ;;  %v1250_v62 = vmul.f32 %v2809_v28, %v2809_v28 }
 0x1ca   :  { %v1095_v61 = vadd.f32 %v1094_v54, %v3067_v16  ;;  %v1373_v15 = vadd.f32 %v1372_v44, %v1232_v60  ;;  %v1249_v54 = vmul.f32 %v2819_v23, %v2819_v23 }
 0x1cb   :  { %v1027_v59 = vadd.f32 %v1026_v12, %v3068_v14  ;;  %v1305_v36 = vadd.f32 %v1304_v20, %v1233_v47 }
 0x1cc   :  { %v1096_v26 = vadd.f32 %v1095_v61, %v3069_v17  ;;  %v1374_v55 = vadd.f32 %v1373_v15, %v1234_v58 }
 0x1cd   :  { %v1306_v63 = vadd.f32 %v1305_v36, %v1235_v56  ;;  %v1028_v49 = vadd.f32 %v1027_v59, %v3070_v0 }
 0x1ce   :  { %v1375_v24 = vadd.f32 %v1374_v55, %v1236_v9  ;;  %v1097_v11 = vadd.f32 %v1096_v26, %v3071_v8 }
 0x1cf   :  { %v1307_v1 = vadd.f32 %v1306_v63, %v1237_v4  ;;  %v1029_v7 = vadd.f32 %v1028_v49, %v2673_v38 }
 0x1d0   :  { %v1376_v43 = vadd.f32 %v1375_v24, %v1238_v22  ;;  %v1098_v34 = vadd.f32 %v1097_v11, %v2661_v5  ;;  %v971_v11 = vld [vmem:[%s2980_s4] sm:$0x3] }
 0x1d1   :  { %v1308_v21 = vadd.f32 %v1307_v1, %v1239_v18  ;;  %v1030_v37 = vadd.f32 %v1029_v7, %v2701_v41  ;;  %v1122_v18 = vld [vmem:[%s2981_s5] sm:$0x3] }
 0x1d2   :  { %v1377_v45 = vadd.f32 %v1376_v43, %v1240_v32  ;;  %v1099_v52 = vadd.f32 %v1098_v34, %v2693_v25 }
 0x1d3   :  { %v1309_v33 = vadd.f32 %v1308_v21, %v1241_v50  ;;  %v1031_v38 = vadd.f32 %v1030_v37, %v2720_v13 }
 0x1d4   :  { %v1378_v2 = vadd.f32 %v1377_v45, %v1242_v31  ;;  %v1100_v5 = vadd.f32 %v1099_v52, %v2712_v10 }
 0x1d5   :  { %v1310_v53 = vadd.f32 %v1309_v33, %v1243_v39  ;;  %v1032_v41 = vadd.f32 %v1031_v38, %v2753_v29 }
 0x1d6   :  { %v1379_v40 = vadd.f32 %v1378_v2, %v1244_v51  ;;  %v1101_v25 = vadd.f32 %v1100_v5, %v2743_v42 }
 0x1d7   :  { %v1311_v6 = vadd.f32 %v1310_v53, %v1245_v46  ;;  %v1033_v13 = vadd.f32 %v1032_v41, %v2789_v19 }
 0x1d8   :  { %v1380_v3 = vadd.f32 %v1379_v40, %v1246_v48  ;;  %v1102_v10 = vadd.f32 %v1101_v25, %v2781_v35 }
 0x1d9   :  { %v1312_v60 = vadd.f32 %v1311_v6, %v1247_v57  ;;  %v1034_v29 = vadd.f32 %v1033_v13, %v2819_v23 }
 0x1da   :  { %v1381_v44 = vadd.f32 %v1380_v3, %v1248_v30  ;;  %v1103_v42 = vadd.f32 %v1102_v10, %v2809_v28 }
 0x1db   :  { %v1035_v47 = vrot.slane %v1034_v29, 4  ;;  %v1313_v19 = vadd.f32 %v1312_v60, %v1249_v54 }
 0x1dc   :  { %v1104_v12 = vrot.slane %v1103_v42, 4  ;;  %v1382_v20 = vadd.f32 %v1381_v44, %v1250_v62 }
 0x1dd   :  { %v1036_v16 = vadd.f32 %v1035_v47, %v1034_v29  ;;  %v1314_v58 = vrot.slane %v1313_v19, 4 }
 0x1de   :  { %v1105_v61 = vadd.f32 %v1104_v12, %v1103_v42  ;;  %v1383_v35 = vrot.slane %v1382_v20, 4 }
 0x1df   :  { %v1037_v15 = vrot.slane %v1036_v16, 2  ;;  %v1315_v14 = vadd.f32 %v1314_v58, %v1313_v19 }
 0x1e0   :  { %v1106_v59 = vrot.slane %v1105_v61, 2  ;;  %v1384_v56 = vadd.f32 %v1383_v35, %v1382_v20 }
 0x1e1   :  { %v1038_v36 = vadd.f32 %v1037_v15, %v1036_v16  ;;  %v1316_v23 = vrot.slane %v1315_v14, 2 }
 0x1e2   :  { %v1107_v17 = vadd.f32 %v1106_v59, %v1105_v61  ;;  %v1385_v26 = vrot.slane %v1384_v56, 2 }
 0x1e3   :  { %v1317_v9 = vadd.f32 %v1316_v23, %v1315_v14  ;;  %v1039_v28 = vrot.slane %v1038_v36, 1 }
 0x1e4   :  { %v1108_v55 = vrot.slane %v1107_v17, 1  ;;  %v1386_v63 = vadd.f32 %v1385_v26, %v1384_v56 }
 0x1e5   :  { %v1318_v4 = vrot.slane %v1317_v9, 1  ;;  %v1040_v22 = vadd.f32 %v1039_v28, %v1038_v36 }
 0x1e6   :  { %v1109_v0 = vadd.f32 %v1108_v55, %v1107_v17  ;;  %v1387_v49 = vrot.slane %v1386_v63, 1 }
 0x1e7   :  { %v1319_v43 = vadd.f32 %v1318_v4, %v1317_v9 }
 0x1e8   :  { %v1112_v24 = vrot.slane %v1109_v0, 7  ;;  %v1388_v8 = vadd.f32 %v1387_v49, %v1386_v63 }
 0x1ea   :  { %v1391_v1 = vrot.slane %v1388_v8, 7  ;;  %v1114_v7 = vsel %vm1113_vm1, %v1040_v22, %v1112_v24 }
 0x1eb   :  { %v1116_v34 = vadd.f32 %v1114_v7, %v971_v11 }
 0x1ec   :  { %v1392_v32 = vsel %vm1113_vm1, %v1319_v43, %v1391_v1 }
 0x1ed   :  { %1121 = vst.msk [vmem:[%s2980_s4] sm:$0x3] %vm2874_vm0, %v1116_v34  ;;  %v1394_v21 = vadd.f32 %v1392_v32, %v1122_v18 }
 0x1ef   :  { %1395 = vst.msk [vmem:[%s2981_s5] sm:$0x3] %vm2874_vm0, %v1394_v21 }

// kernel: btnk_forward.5
= control target key start
LH: loop header
LB: loop body
LE: loop exit
PB: predicated region body
PF: predicated region fallthrough
CT: control target
= control target key end

     0   :  { %s2847_s27 = smov 0   ;;  %s2849_s28 = smov 0   ;;  %s3585_s0 = inlined_call_operand.vmem [shape: bf16[512,128], index: 0, kind: input, shape index: {}, may-alias: {0,1,2}]   ;;  %s3586_s1 = inlined_call_operand.vmem [shape: bf16[512,128], index: 1, kind: input, shape index: {}, may-alias: {0,1,2}]   ;;  %s3587_s2 = inlined_call_operand.vmem [shape: bf16[512,128], index: 2, kind: input, shape index: {}, may-alias: {0,1,2}]   ;;  %s3588_s3 = inlined_call_operand.vmem [shape: f32[1,128], index: 3, kind: input, shape index: {}]   ;;  %s3589_s4 = inlined_call_operand.vmem [shape: f32[1,128], index: 4, kind: input, shape index: {}]   ;;  %s3590_s5 = inlined_call_operand.vmem [shape: bf16[1152,128], index: 5, kind: input, shape index: {}]   ;;  %s3591_s6 = inlined_call_operand.vmem [shape: bf16[512,128], index: 6, kind: output, shape index: {0}]   ;;  %s3592_s7 = inlined_call_operand.vmem [shape: f32[1,128], index: 7, kind: output, shape index: {1}]   ;;  %s3593_s8 = inlined_call_operand.vmem [shape: f32[1,128], index: 8, kind: output, shape index: {2}]  }
   0x1   :  { %s2851_s29 = smov 0   ;;  %s2853_s30 = smov 0  }
   0x2   :  { %s2855_s9 = smov 0  }
   0x3 LB: > { %s28_s10 = sadd.s32 1, %s2790_s29  ;;  %s31_s11 = sadd.s32 1, %s2794_s30  ;;  %s2798_s9 = sphi %s2855_s9, %s19_s9   ;;  %s2794_s30 = sphi %s2853_s30, %s3603_s30   ;;  %s2790_s29 = sphi %s2851_s29, %s3602_s29   ;;  %s2786_s28 = sphi %s2849_s28, %s3601_s28   ;;  %s2782_s27 = sphi %s2847_s27, %s3600_s27  }
   0x4   : > { %p29_p0 = scmp.ge.s32.totalorder %s28_s10, 2  ;;  %p2208_p1 = scmp.ge.s32.totalorder %s2798_s9, 1 }
   0x5   : > { %p352_p2 = scmp.lt.s32.totalorder %s2798_s9, 5 }
   0x6   : > { %s3605_s10 = smov (%p29_p0, %s28_s10), 0  ;;  %s3607_s11 = smov (!%p29_p0, %s31_s11), %s2794_s30 }
   0x7   : > { %p353_p3 = pnand %p2208_p1, %p352_p2  ;;  %p33_p4 = scmp.ge.s32.totalorder %s3607_s11, 2 }
   0x8   : > { %s2209_s12 = sshll.u32 (!%p353_p3), %s2786_s28, 1  ;;  %s2212_s13 = sshll.u32 (!%p353_p3), %s2786_s28, 4 }
   0x9   : > { %s3609_s11 = smov (%p33_p4, %s3607_s11), 0  ;;  %356 = sbr.rel (%p353_p3) target bundleno = 500 (0x1f4), region = 44 }
   0xa   : > { %3594 = sst [smem:[#allocation3_spill]] %s3609_s11  ;;  %s413_s14 = sadd.s32 (!%p353_p3), %s2782_s27, %s2209_s12 }
   0xb   : > { %s2213_s15 = sshll.u32 (!%p353_p3), %s2782_s27, 3  ;;  %s2210_s16 = sshll.u32 (!%p353_p3), %s413_s14, 4 }
   0xc   : > { %s2214_s17 = sadd.s32 (!%p353_p3), 4294967295, %s2213_s15  ;;  %p415_p5 = scmp.lt.s32.totalorder (!%p353_p3), %s2210_s16, 63 }
   0xd   : > { %p425_p6 = scmp.gt.s32.totalorder (!%p353_p3), %s2214_s17, 0  ;;  %s2519_s18 = sadd.s32 (!%p353_p3), 8, %s2213_s15 }
   0xe   : > { %p468_p7 = scmp.eq.s32.totalorder %s2786_s28, 0  ;;  %s3611_s16 = smov (!%p415_p5, %s2210_s16), 63 }
   0xf   : > { %s3613_s17 = smov (!%p425_p6, %s2214_s17), 0  ;;  %s2211_s19 = sshll.u32 %s3611_s16, 2 }
  0x10   : > { %p443_p8 = scmp.lt.s32.totalorder %s2519_s18, 15  ;;  %s2889_s22 = scalar_lea.vmem %s3585_s0, %s2211_s19 }
  0x11   : > { %s427_s23 = sadd.s32 %s2212_s13, %s3613_s17  ;;  %s2894_s12 = scalar_lea.vmem %s3591_s6, %s2211_s19 }
  0x12   : > { %s2215_s24 = sshll.u32 %s427_s23, 1  ;;  %p469_p10 = scmp.eq.s32.totalorder %s2782_s27, 0 }
  0x13   : > { %p429_p9 = scmp.lt.s32.totalorder %s2215_s24, 63  ;;  %s3615_s18 = smov (!%p443_p8, %s2519_s18), 15 }
  0x14   : > { %s445_s14 = sadd.s32 %s2212_s13, %s3615_s18  ;;  %p470_p11 = pnand %p469_p10, %p468_p7 }
  0x15   : > { %s3617_s24 = smov (!%p429_p9, %s2215_s24), 63  ;;  %s2219_s16 = sshll.u32 %s445_s14, 1 }
  0x16   : > { %s2216_s15 = sshll.u32 %s3617_s24, 2  ;;  %p447_p12 = scmp.lt.s32.totalorder %s2219_s16, 63 }
  0x17   : > { %s2902_s21 = scalar_lea.vmem %s3586_s1, %s2216_s15  ;;  %473 = sbr.rel (%p470_p11) target bundleno = 31 (0x1f), region = 48 }
  0x18   : > { %s3619_s16 = smov (!%p447_p12, %s2219_s16), 63 }
  0x19   : > { %s2220_s17 = sshll.u32 %s3619_s16, 2 }
  0x1a   : > { %s2907_s25 = scalar_lea.vmem %s3587_s2, %s2220_s17 }
  0x1c   : > { %v2800_v0 = vmov 0.0  }
  0x1d   : > { %474 = vst [vmem:[%s3592_s7] sm:$0x1] %v2800_v0 }
  0x1e   : > { %475 = vst [vmem:[%s3593_s8] sm:$0x1] %v2800_v0 }
  0x1f PF: > { %v2535_v1 = vld [vmem:[%s3590_s5 + $0x78] sm:$0xff]  ;;  %p478_p13 = scmp.gt.s32.totalorder %s2782_s27, 0  ;;  %v2534_v2 = vld [vmem:[%s3590_s5 + $0x70] sm:$0xff]  ;;  %v2927_v3 = vld [vmem:[%s3588_s3] ss:$0 sm:$0xff]  ;;  %p500_p0 = scmp.lt.s32.totalorder %s2782_s27, 1 }
  0x20   : > { %2686 = vmatpush.bf16.msra.mxu1 %v2535_v1  ;;  %2687 = vmatpush.bf16.msra.mxu2 %v2535_v1  ;;  %v2672_v4 = vld [vmem:[%s2889_s22 + $0x8] sm:$0xff]   ;;  %v2674_v5 = vld [vmem:[%s2889_s22 + $0x18] sm:$0xff]   ;;  %v2935_v7 = vld [vmem:[%s3589_s4] ss:$0 sm:$0xff] }
  0x21   : > { %s2922_s16 = scalar_select %p478_p13, 1, 0  ;;  %2688 = vmatpush.bf16.msra.mxu3 %v2535_v1  ;;  %766 = vmatpush.bf16.msra.mxu0 %v2535_v1  ;;  %v2676_v6 = vld [vmem:[%s2889_s22 + $0x28] sm:$0xff]   ;;  %v2606_v8 = vunpack.c.l.bf16 %v2672_v4  ;;  %v2607_v9 = vunpack.c.h.bf16 %v2672_v4  ;;  %v2614_v10 = vunpack.c.l.bf16 %v2674_v5  ;;  %v2615_v11 = vunpack.c.h.bf16 %v2674_v5  ;;  %v2593_v15 = vld [vmem:[%s2902_s21] sm:$0xff]   ;;  %v2673_v29 = vld [vmem:[%s2889_s22 + $0x10] sm:$0xff]  }
  0x22   : > { %v2533_v12 = vld [vmem:[%s3590_s5 + $0x68] sm:$0xff]  ;;  %v2622_v13 = vunpack.c.l.bf16 %v2676_v6  ;;  %v2623_v14 = vunpack.c.h.bf16 %v2676_v6  ;;  %v2594_v20 = vunpack.c.l.bf16 %v2593_v15  ;;  %v2595_v24 = vunpack.c.h.bf16 %v2593_v15  ;;  %v2532_v30 = vld [vmem:[%s3590_s5 + $0x60] sm:$0xff]  ;;  %v2677_v45 = vld [vmem:[%s2889_s22 + $0x30] sm:$0xff]   ;;  %s511_s19 = scalar_select %p500_p0, 1, 0 }
  0x23   : > { %v496_v16 = vstv %s2922_s16  ;;  %v572_v17 = vmul.f32 %v2927_v3, %v2606_v8  ;;  %v573_v18 = vmul.f32 %v2927_v3, %v2607_v9  ;;  %v576_v19 = vmul.f32 %v2927_v3, %v2614_v10  ;;  %v2675_v36 = vld [vmem:[%s2889_s22 + $0x20] sm:$0xff]   ;;  %v2531_v46 = vld [vmem:[%s3590_s5 + $0x58] sm:$0xff]  ;;  %v2530_v62 = vld [vmem:[%s3590_s5 + $0x50] sm:$0xff] }
  0x24   : > { %2689 = vmatpush.bf16.msra.mxu1 %v2534_v2  ;;  %2690 = vmatpush.bf16.msra.mxu2 %v2534_v2  ;;  %v577_v21 = vmul.f32 %v2927_v3, %v2615_v11  ;;  %v580_v22 = vmul.f32 %v2927_v3, %v2622_v13  ;;  %v581_v23 = vmul.f32 %v2927_v3, %v2623_v14  ;;  %v2610_v33 = vunpack.c.l.bf16 %v2673_v29  ;;  %v2601_v59 = vld [vmem:[%s2889_s22] sm:$0xff]   ;;  %v2529_v15 = vld [vmem:[%s3590_s5 + $0x48] sm:$0xff] }
  0x25   : > { %2691 = vmatpush.bf16.msra.mxu3 %v2534_v2  ;;  %767 = vmatpush.bf16.msra.mxu0 %v2534_v2  ;;  %v2949_v25 = vadd.f32 %v2935_v7, %v572_v17  ;;  %v2952_v26 = vadd.f32 %v2935_v7, %v573_v18  ;;  %v2955_v27 = vadd.f32 %v2935_v7, %v576_v19  ;;  %vm2978_vm0 = vcmp.eq.s32.totalorder %v496_v16, 1  ;;  %v2549_v40 = vld [vmem:[%s3590_s5 + $0xe8] sm:$0xff] }
  0x26   : > { %v486_v28 = vmul.f32 %v2927_v3, %v2594_v20  ;;  %v2963_v31 = vadd.f32 %v2935_v7, %v577_v21  ;;  %v2966_v32 = vadd.f32 %v2935_v7, %v580_v22  ;;  %v487_v35 = vmul.f32 %v2927_v3, %v2595_v24  ;;  %vm2754_vm1 = vmpackc.low %vm2978_vm0, %vm2978_vm0 }
  0x27   : > { %v604_v34 = vmax.f32 %v2949_v25, 0.0  ;;  %v605_v37 = vmax.f32 %v2952_v26, 0.0  ;;  %v2973_v38 = vadd.f32 %v2935_v7, %v581_v23  ;;  %v608_v41 = vmax.f32 %v2955_v27, 0.0  ;;  %v2528_v23 = vld [vmem:[%s3590_s5 + $0x40] sm:$0xff]  ;;  %v2551_v26 = vld [vmem:[%s3590_s5 + $0xf8] sm:$0xff] }
  0x28   : > { %2692 = vmatpush.bf16.msra.mxu1 %v2533_v12  ;;  %2693 = vmatpush.bf16.msra.mxu2 %v2533_v12  ;;  %v2976_v39 = vadd.f32 %v2935_v7, %v486_v28  ;;  %v2986_v42 = vadd.f32 %v2935_v7, %v487_v35  ;;  %v2611_v43 = vunpack.c.h.bf16 %v2673_v29  ;;  %v574_v44 = vmul.f32 %v2927_v3, %v2610_v33  ;;  %v2543_v28 = vld [vmem:[%s3590_s5 + $0xb8] sm:$0xff] }
  0x29   : > { %2694 = vmatpush.bf16.msra.mxu3 %v2533_v12  ;;  %768 = vmatpush.bf16.msra.mxu0 %v2533_v12  ;;  %621 = vst [vmem:[#allocation2 + $0x31] sm:$0xff] %v604_v34  ;;  %v609_v47 = vmax.f32 %v2963_v31, 0.0  ;;  %v612_v48 = vmax.f32 %v2966_v32, 0.0  ;;  %v2618_v50 = vunpack.c.l.bf16 %v2675_v36  ;;  %v2619_v54 = vunpack.c.h.bf16 %v2675_v36  ;;  %v2527_v29 = vld [vmem:[%s3590_s5 + $0x38] sm:$0xff]  ;;  %v2542_v31 = vld [vmem:[%s3590_s5 + $0xb0] sm:$0xff] }
  0x2a   : > { %622 = vst [vmem:[#allocation2 + $0x39] sm:$0xff] %v605_v37  ;;  %v493_v49 = vmax.f32 %v2976_v39, 0.0  ;;  %v494_v51 = vmax.f32 %v2986_v42, 0.0  ;;  %v575_v52 = vmul.f32 %v2927_v3, %v2611_v43  ;;  %v3003_v53 = vadd.f32 %v2935_v7, %v574_v44  ;;  %v2559_v27 = vld [vmem:[%s3590_s5 + $0x138] sm:$0xff]  ;;  %v2526_v32 = vld [vmem:[%s3590_s5 + $0x30] sm:$0xff]  ;;  %v2525_v39 = vld [vmem:[%s3590_s5 + $0x28] sm:$0xff] }
  0x2b   : > { %625 = vst [vmem:[#allocation2 + $0x61] sm:$0xff] %v608_v41  ;;  %v613_v55 = vmax.f32 %v2973_v38, 0.0  ;;  %v578_v56 = vmul.f32 %v2927_v3, %v2618_v50  ;;  %v2626_v57 = vunpack.c.l.bf16 %v2677_v45  ;;  %v2627_v58 = vunpack.c.h.bf16 %v2677_v45  ;;  %v2550_v36 = vld [vmem:[%s3590_s5 + $0xf0] sm:$0xff]  ;;  %v2541_v38 = vld [vmem:[%s3590_s5 + $0xa8] sm:$0xff]  ;;  %v2540_v42 = vld [vmem:[%s3590_s5 + $0xa0] sm:$0xff] }
  0x2c   : > { %2695 = vmatpush.bf16.msra.mxu1 %v2532_v30  ;;  %2696 = vmatpush.bf16.msra.mxu2 %v2532_v30  ;;  %626 = vst [vmem:[#allocation2 + $0x69] sm:$0xff] %v609_v47  ;;  %v3013_v60 = vadd.f32 %v2935_v7, %v575_v52  ;;  %v579_v61 = vmul.f32 %v2927_v3, %v2619_v54  ;;  %v498_v63 = vsel %vm2978_vm0, %v493_v49, 0.0  ;;  %v499_v0 = vsel %vm2978_vm0, %v494_v51, 0.0  ;;  %v2524_v43 = vld [vmem:[%s3590_s5 + $0x20] sm:$0xff]  ;;  %v2547_v52 = vld [vmem:[%s3590_s5 + $0xd8] sm:$0xff]  ;;  %v2538_v54 = vld [vmem:[%s3590_s5 + $0x90] sm:$0xff] }
  0x2d   : > { %2697 = vmatpush.bf16.msra.mxu3 %v2532_v30  ;;  %769 = vmatpush.bf16.msra.mxu0 %v2532_v30  ;;  %629 = vst [vmem:[#allocation2 + $0x91] sm:$0xff] %v612_v48  ;;  %v3030_v1 = vadd.f32 %v2935_v7, %v578_v56  ;;  %v582_v2 = vmul.f32 %v2927_v3, %v2626_v57  ;;  %v606_v4 = vmax.f32 %v3003_v53, 0.0  ;;  %v2602_v8 = vunpack.c.l.bf16 %v2601_v59  ;;  %v2548_v44 = vld [vmem:[%s3590_s5 + $0xe0] sm:$0xff]  ;;  %v2555_v53 = vld [vmem:[%s3590_s5 + $0x118] sm:$0xff]  ;;  %v2546_v56 = vld [vmem:[%s3590_s5 + $0xd0] sm:$0xff] }
  0x2e   : > { %630 = vst [vmem:[#allocation2 + $0x99] sm:$0xff] %v613_v55  ;;  %v3035_v5 = vadd.f32 %v2935_v7, %v579_v61  ;;  %v583_v6 = vmul.f32 %v2927_v3, %v2627_v58  ;;  %v607_v9 = vmax.f32 %v3013_v60, 0.0  ;;  %v2603_v11 = vunpack.c.h.bf16 %v2601_v59  ;;  %v2556_v45 = vld [vmem:[%s3590_s5 + $0x120] sm:$0xff]  ;;  %v2554_v57 = vld [vmem:[%s3590_s5 + $0x110] sm:$0xff]  ;;  %v2537_v58 = vld [vmem:[%s3590_s5 + $0x88] sm:$0xff] }
  0x2f   : > { %536 = vst [vmem:[#allocation2 + $0x1] sm:$0xff] %v498_v63  ;;  %v3040_v10 = vadd.f32 %v2935_v7, %v582_v2  ;;  %v610_v12 = vmax.f32 %v3030_v1, 0.0  ;;  %v570_v14 = vmul.f32 %v2927_v3, %v2602_v8  ;;  %v3091_v30 = vpack.c.bf16 %v605_v37, %v604_v34  ;;  %v2558_v37 = vld [vmem:[%s3590_s5 + $0x130] sm:$0xff]  ;;  %v2521_v59 = vld [vmem:[%s3590_s5 + $0x8] sm:$0xff]  ;;  %v2520_v63 = vld [vmem:[%s3590_s5] sm:$0xff] }
  0x30   : > { %2698 = vmatpush.bf16.msra.mxu1 %v2531_v46  ;;  %2699 = vmatpush.bf16.msra.mxu2 %v2531_v46  ;;  %537 = vst [vmem:[#allocation2 + $0x9] sm:$0xff] %v499_v0  ;;  %v3046_v13 = vadd.f32 %v2935_v7, %v583_v6  ;;  %v611_v16 = vmax.f32 %v3035_v5, 0.0  ;;  %v571_v17 = vmul.f32 %v2927_v3, %v2603_v11  ;;  %v2801_v35 = vmov 0.0   ;;  %v2545_v60 = vld [vmem:[%s3590_s5 + $0xc8] sm:$0xff]  ;;  %v2544_v0 = vld [vmem:[%s3590_s5 + $0xc0] sm:$0xff]  ;;  %v2575_v2 = vld [vmem:[%s3590_s5 + $0x1b8] sm:$0xff] }
  0x31   : > { %2700 = vmatpush.bf16.msra.mxu3 %v2531_v46  ;;  %770 = vmatpush.bf16.msra.mxu0 %v2531_v46  ;;  %623 = vst [vmem:[#allocation2 + $0x49] sm:$0xff] %v606_v4  ;;  %v614_v18 = vmax.f32 %v3040_v10, 0.0  ;;  %v3060_v19 = vadd.f32 %v2935_v7, %v570_v14  ;;  %v3097_v33 = vpack.c.bf16 %v609_v47, %v608_v41  ;;  %v2557_v41 = vld [vmem:[%s3590_s5 + $0x128] sm:$0xff]  ;;  %v2539_v46 = vld [vmem:[%s3590_s5 + $0x98] sm:$0xff] }
  0x32   : > { %624 = vst [vmem:[#allocation2 + $0x51] sm:$0xff] %v607_v9  ;;  %v615_v20 = vmax.f32 %v3046_v13, 0.0  ;;  %v3066_v21 = vadd.f32 %v2935_v7, %v571_v17  ;;  %v3104_v25 = vpack.c.bf16 %v613_v55, %v612_v48  ;;  %v2755_v34 = vpack.c.bf16 %v494_v51, %v493_v49  ;;  %v2523_v47 = vld [vmem:[%s3590_s5 + $0x18] sm:$0xff]  ;;  %v2522_v55 = vld [vmem:[%s3590_s5 + $0x10] sm:$0xff]  ;;  %v2553_v61 = vld [vmem:[%s3590_s5 + $0x108] sm:$0xff] }
  0x33   : > { %627 = vst [vmem:[#allocation2 + $0x79] sm:$0xff] %v610_v12  ;;  %v602_v22 = vmax.f32 %v3060_v19, 0.0  ;;  %v3183_v48 = vpack.c.bf16 %v607_v9, %v606_v4  ;;  %v3189_v49 = vpack.c.bf16 %v611_v16, %v610_v12  ;;  %v2567_v4 = vld [vmem:[%s3590_s5 + $0x178] sm:$0xff]  ;;  %v2552_v9 = vld [vmem:[%s3590_s5 + $0x100] sm:$0xff]  ;;  %v2574_v17 = vld [vmem:[%s3590_s5 + $0x1b0] sm:$0xff] }
  0x34   : > { %2701 = vmatpush.bf16.msra.mxu1 %v2530_v62  ;;  %2702 = vmatpush.bf16.msra.mxu2 %v2530_v62  ;;  %628 = vst [vmem:[#allocation2 + $0x81] sm:$0xff] %v611_v16  ;;  %v603_v24 = vmax.f32 %v3066_v21, 0.0  ;;  %v3196_v50 = vpack.c.bf16 %v615_v20, %v614_v18  ;;  %v2583_v12 = vld [vmem:[%s3590_s5 + $0x1f8] sm:$0xff]  ;;  %v2582_v19 = vld [vmem:[%s3590_s5 + $0x1f0] sm:$0xff]  ;;  %v2573_v21 = vld [vmem:[%s3590_s5 + $0x1a8] sm:$0xff] }
  0x35   : > { %2703 = vmatpush.bf16.msra.mxu3 %v2530_v62  ;;  %771 = vmatpush.bf16.msra.mxu0 %v2530_v62  ;;  %631 = vst [vmem:[#allocation2 + $0xa9] sm:$0xff] %v614_v18  ;;  %v2536_v62 = vld [vmem:[%s3590_s5 + $0x80] sm:$0xff]  ;;  %v2591_v13 = vld [vmem:[%s3590_s5 + $0x238] sm:$0xff]  ;;  %v2566_v18 = vld [vmem:[%s3590_s5 + $0x170] sm:$0xff] }
  0x36   : > { %632 = vst [vmem:[#allocation2 + $0xb1] sm:$0xff] %v615_v20  ;;  %v3202_v51 = vpack.c.bf16 %v603_v24, %v602_v22  ;;  %v2590_v20 = vld [vmem:[%s3590_s5 + $0x230] sm:$0xff] }
  0x37   : > { %619 = vst [vmem:[#allocation2 + $0x19] sm:$0xff] %v602_v22  ;;  %v639_v1 = vld [vmem:[#allocation2 + $0x8] sm:$0xff] }
  0x38   : > { %2704 = vmatpush.bf16.msra.mxu1 %v2529_v15  ;;  %2705 = vmatpush.bf16.msra.mxu2 %v2529_v15  ;;  %620 = vst [vmem:[#allocation2 + $0x21] sm:$0xff] %v603_v24  ;;  %v912_v6 = vld [vmem:[#allocation2 + $0x2] sm:$0xff] }
  0x39   : > { %2706 = vmatpush.bf16.msra.mxu3 %v2529_v15  ;;  %772 = vmatpush.bf16.msra.mxu0 %v2529_v15  ;;  %516 = vst [vmem:[#allocation2] sm:$0x1] %v2801_v35  ;;  %v2565_v22 = vld [vmem:[%s3590_s5 + $0x168] sm:$0xff] }
  0x3a   : > { %517 = vst [vmem:[#allocation2 + $0x18] sm:$0x1] %v2801_v35  ;;  %v2589_v24 = vld [vmem:[%s3590_s5 + $0x228] sm:$0xff] }
  0x3b   : > { %518 = vst [vmem:[#allocation2 + $0x30] sm:$0x1] %v2801_v35 }
  0x3c   : > { %2707 = vmatpush.bf16.msra.mxu1 %v2528_v23  ;;  %2708 = vmatpush.bf16.msra.mxu2 %v2528_v23  ;;  %519 = vst [vmem:[#allocation2 + $0x48] sm:$0x1] %v2801_v35 }
  0x3d   : > { %2709 = vmatpush.bf16.msra.mxu3 %v2528_v23  ;;  %773 = vmatpush.bf16.msra.mxu0 %v2528_v23  ;;  %520 = vst [vmem:[#allocation2 + $0x60] sm:$0x1] %v2801_v35  ;;  %v2581_v23 = vld [vmem:[%s3590_s5 + $0x1e8] sm:$0xff] }
  0x3e   : > { %521 = vst [vmem:[#allocation2 + $0x78] sm:$0x1] %v2801_v35 }
  0x3f   : > { %784 = vmatmul.bf16.vlgmr.msra.gmra.mxu1 %v3091_v30  ;;  %794 = vmatmul.bf16.vlgmr.msra.gmra.mxu2 %v3097_v33  ;;  %522 = vst [vmem:[#allocation2 + $0x90] sm:$0x1] %v2801_v35  ;;  %v1066_v11 = vld [vmem:[#allocation2 + $0x20] sm:$0xff] }
  0x40   : > { %1000 = vmatpush.bf16.msrb.mxu2 %v2543_v28  ;;  %863 = vmatpush.bf16.msrb.mxu1 %v2527_v29  ;;  %523 = vst [vmem:[#allocation2 + $0xa8] sm:$0x1] %v2801_v35  ;;  %v638_v5 = vld [vmem:[#allocation2] sm:$0xff] }
  0x41   : > { %804 = vmatmul.bf16.vlgmr.msra.gmra.mxu3 %v3104_v25  ;;  %2756 = vmatmul.msk.bf16.vlgmr.msra.gmra.mxu0 %vm2754_vm1, %v2755_v34  ;;  %524 = vst [vmem:[#allocation2 + $0xc0] sm:$0x1] %v2801_v35  ;;  %v1065_v10 = vld [vmem:[#allocation2 + $0x18] sm:$0xff]  ;;  %v654_v14 = vpack.c.bf16 %v639_v1, %v638_v5  ;;  %v2580_v34 = vld [vmem:[%s3590_s5 + $0x1e0] sm:$0xff]  ;;  %v2569_v5 = vld [vmem:[%s3590_s5 + $0x188] sm:$0xff] }
  0x42   : > { %1153 = vmatpush.bf16.msrb.mxu3 %v2551_v26  ;;  %1306 = vmatpush.bf16.msrb.mxu0 %v2559_v27  ;;  %525 = vst [vmem:[#allocation2 + $0xd8] sm:$0x1] %v2801_v35  ;;  %v1081_v16 = vpack.c.bf16 %v1066_v11, %v1065_v10  ;;  %v914_v28 = vld [vmem:[#allocation2 + $0x1a] sm:$0xff]  ;;  %v2561_v10 = vld [vmem:[%s3590_s5 + $0x148] sm:$0xff] }
  0x43   : > { %526 = vst [vmem:[#allocation2 + $0x11] sm:$0x1] %v2801_v35  ;;  %v1068_v26 = vld [vmem:[#allocation2 + $0x38] sm:$0xff] }
  0x44   : > { %1001 = vmatpush.bf16.msrb.mxu2 %v2542_v31  ;;  %864 = vmatpush.bf16.msrb.mxu1 %v2526_v32  ;;  %527 = vst [vmem:[#allocation2 + $0x29] sm:$0x1] %v2801_v35  ;;  %v2572_v32 = vld [vmem:[%s3590_s5 + $0x1a0] sm:$0xff]  ;;  %v2678_v1 = vld [vmem:[%s2889_s22 + $0x38] sm:$0xff]  }
  0x45   : > { %528 = vst [vmem:[#allocation2 + $0x41] sm:$0x1] %v2801_v35 }
  0x46   : > { %1154 = vmatpush.bf16.msrb.mxu3 %v2550_v36  ;;  %1307 = vmatpush.bf16.msrb.mxu0 %v2558_v37  ;;  %529 = vst [vmem:[#allocation2 + $0x59] sm:$0x1] %v2801_v35  ;;  %v2564_v36 = vld [vmem:[%s3590_s5 + $0x160] sm:$0xff] }
  0x47   : > { %530 = vst [vmem:[#allocation2 + $0x71] sm:$0x1] %v2801_v35  ;;  %v2588_v37 = vld [vmem:[%s3590_s5 + $0x220] sm:$0xff] }
  0x48   : > { %1002 = vmatpush.bf16.msrb.mxu2 %v2541_v38  ;;  %865 = vmatpush.bf16.msrb.mxu1 %v2525_v39  ;;  %531 = vst [vmem:[#allocation2 + $0x89] sm:$0x1] %v2801_v35  ;;  %v1069_v39 = vld [vmem:[#allocation2 + $0x48] sm:$0xff] }
  0x49   : > { %532 = vst [vmem:[#allocation2 + $0xa1] sm:$0x1] %v2801_v35 }
  0x4a   : > { %1155 = vmatpush.bf16.msrb.mxu3 %v2549_v40  ;;  %1308 = vmatpush.bf16.msrb.mxu0 %v2557_v41  ;;  %533 = vst [vmem:[#allocation2 + $0xb9] sm:$0x1] %v2801_v35  ;;  %v913_v8 = vld [vmem:[#allocation2 + $0xa] sm:$0xff] }
  0x4b   : > { %534 = vst [vmem:[#allocation2 + $0xd1] sm:$0x1] %v2801_v35  ;;  %v928_v15 = vpack.c.bf16 %v913_v8, %v912_v6  ;;  %v915_v29 = vld [vmem:[#allocation2 + $0x22] sm:$0xff]  ;;  %v1070_v40 = vld [vmem:[#allocation2 + $0x50] sm:$0xff] }
  0x4c   : > { %1003 = vmatpush.bf16.msrb.mxu2 %v2540_v42  ;;  %866 = vmatpush.bf16.msrb.mxu1 %v2524_v43  ;;  %535 = vst [vmem:[#allocation2 + $0xe9] sm:$0x1] %v2801_v35  ;;  %v1067_v35 = vld [vmem:[#allocation2 + $0x30] sm:$0xff]  ;;  %v3290_v27 = vpack.c.bf16 %v915_v29, %v914_v28  ;;  %v917_v38 = vld [vmem:[#allocation2 + $0x3a] sm:$0xff]  ;;  %v3311_v42 = vpack.c.bf16 %v1070_v40, %v1069_v39  ;;  %v2577_v6 = vld [vmem:[%s3590_s5 + $0x1c8] sm:$0xff] }
  0x4d   : > { %v3292_v31 = vpack.c.bf16 %v1068_v26, %v1067_v35  ;;  %v2571_v43 = vld [vmem:[%s3590_s5 + $0x198] sm:$0xff]  ;;  %v2584_v28 = vld [vmem:[%s3590_s5 + $0x200] sm:$0xff]  ;;  %v1077_v35 = vld [vmem:[#allocation2 + $0xa8] sm:$0xff] }
  0x4e   : > { %1156 = vmatpush.bf16.msrb.mxu3 %v2548_v44  ;;  %1309 = vmatpush.bf16.msrb.mxu0 %v2556_v45  ;;  %v2579_v44 = vld [vmem:[%s3590_s5 + $0x1d8] sm:$0xff]  ;;  %v1078_v26 = vld [vmem:[#allocation2 + $0xb0] sm:$0xff] }
  0x4f   : > { %789 = vmatmul.bf16.gmra.mxu1 %v3183_v48  ;;  %799 = vmatmul.bf16.gmra.mxu2 %v3189_v49  ;;  %v2563_v45 = vld [vmem:[%s3590_s5 + $0x158] sm:$0xff] }
  0x50   : > { %1004 = vmatpush.bf16.msrb.mxu2 %v2539_v46  ;;  %867 = vmatpush.bf16.msrb.mxu1 %v2523_v47  ;;  %v2587_v46 = vld [vmem:[%s3590_s5 + $0x218] sm:$0xff]  ;;  %v918_v47 = vld [vmem:[#allocation2 + $0x4a] sm:$0xff] }
  0x51   : > { %809 = vmatmul.bf16.gmra.mxu3 %v3196_v50  ;;  %779 = vmatmul.bf16.gmra.mxu0 %v3202_v51  ;;  %v925_v29 = vld [vmem:[#allocation2 + $0x9a] sm:$0xff] }
  0x52   : > { %1157 = vmatpush.bf16.msrb.mxu3 %v2547_v52  ;;  %1310 = vmatpush.bf16.msrb.mxu0 %v2555_v53  ;;  %v1071_v52 = vld [vmem:[#allocation2 + $0x60] sm:$0xff]  ;;  %v1072_v53 = vld [vmem:[#allocation2 + $0x68] sm:$0xff] }
  0x54   : > { %1005 = vmatpush.bf16.msrb.mxu2 %v2538_v54  ;;  %868 = vmatpush.bf16.msrb.mxu1 %v2522_v55  ;;  %v3331_v55 = vpack.c.bf16 %v1072_v53, %v1071_v52 }
  0x56   : > { %1158 = vmatpush.bf16.msrb.mxu3 %v2546_v56  ;;  %1311 = vmatpush.bf16.msrb.mxu0 %v2554_v57  ;;  %v2570_v56 = vld [vmem:[%s3590_s5 + $0x190] sm:$0xff] }
  0x57   : > { %v2578_v57 = vld [vmem:[%s3590_s5 + $0x1d0] sm:$0xff] }
  0x58   : > { %1006 = vmatpush.bf16.msrb.mxu2 %v2537_v58  ;;  %869 = vmatpush.bf16.msrb.mxu1 %v2521_v59  ;;  %v2562_v58 = vld [vmem:[%s3590_s5 + $0x150] sm:$0xff] }
  0x59   : > { %v2586_v59 = vld [vmem:[%s3590_s5 + $0x210] sm:$0xff] }
  0x5a   : > { %1159 = vmatpush.bf16.msrb.mxu3 %v2545_v60  ;;  %1312 = vmatpush.bf16.msrb.mxu0 %v2553_v61  ;;  %v921_v60 = vld [vmem:[#allocation2 + $0x6a] sm:$0xff]  ;;  %v1073_v61 = vld [vmem:[#allocation2 + $0x78] sm:$0xff] }
  0x5c   : > { %1007 = vmatpush.bf16.msrb.mxu2 %v2536_v62  ;;  %870 = vmatpush.bf16.msrb.mxu1 %v2520_v63  ;;  %v1074_v62 = vld [vmem:[#allocation2 + $0x80] sm:$0xff] }
  0x5e   : > { %1160 = vmatpush.bf16.msrb.mxu3 %v2544_v0  ;;  %1313 = vmatpush.bf16.msrb.mxu0 %v2552_v9  ;;  %v3351_v0 = vpack.c.bf16 %v1074_v62, %v1073_v61  ;;  %v1678_v61 = vld [vmem:[#allocation2 + $0x31] sm:$0xff]  ;;  %v1679_v62 = vld [vmem:[#allocation2 + $0x39] sm:$0xff] }
  0x5f   : > { %871 = vmatmul.bf16.vlgmr.msrb.gmra.mxu1 %v654_v14  ;;  %1008 = vmatmul.bf16.vlgmr.msrb.gmra.mxu2 %v928_v15 }
  0x60   : > { %1613 = vmatpush.bf16.msra.mxu2 %v2575_v2  ;;  %1459 = vmatpush.bf16.msra.mxu1 %v2567_v4  ;;  %v2630_v2 = vunpack.c.l.bf16 %v2678_v1  ;;  %v2631_v4 = vunpack.c.h.bf16 %v2678_v1 }
  0x61   : > { %1161 = vmatmul.bf16.vlgmr.msrb.gmra.mxu3 %v1081_v16  ;;  %1314 = vmatmul.bf16.vlgmr.msrb.gmra.mxu0 %v3202_v51  ;;  %v919_v51 = vld [vmem:[#allocation2 + $0x52] sm:$0xff] }
  0x62   : > { %1766 = vmatpush.bf16.msra.mxu3 %v2583_v12  ;;  %1919 = vmatpush.bf16.msra.mxu0 %v2591_v13  ;;  %v3329_v54 = vpack.c.bf16 %v919_v51, %v918_v47  ;;  %v584_v8 = vmul.f32 %v2927_v3, %v2630_v2  ;;  %v585_v9 = vmul.f32 %v2927_v3, %v2631_v4  ;;  %v2585_v13 = vld [vmem:[%s3590_s5 + $0x208] sm:$0xff] }
  0x64   : > { %1614 = vmatpush.bf16.msra.mxu2 %v2574_v17  ;;  %1460 = vmatpush.bf16.msra.mxu1 %v2566_v18  ;;  %v600_v11 = vadd.f32 %v2935_v7, %v584_v8  ;;  %v601_v12 = vadd.f32 %v2935_v7, %v585_v9  ;;  %v923_v17 = vld [vmem:[#allocation2 + $0x82] sm:$0xff]  ;;  %v1075_v18 = vld [vmem:[#allocation2 + $0x90] sm:$0xff] }
  0x66   : > { %1767 = vmatpush.bf16.msra.mxu3 %v2582_v19  ;;  %1920 = vmatpush.bf16.msra.mxu0 %v2590_v20  ;;  %v616_v14 = vmax.f32 %v600_v11, 0.0  ;;  %v617_v15 = vmax.f32 %v601_v12, 0.0  ;;  %v1076_v19 = vld [vmem:[#allocation2 + $0x98] sm:$0xff] }
  0x68   : > { %1615 = vmatpush.bf16.msra.mxu2 %v2573_v21  ;;  %1461 = vmatpush.bf16.msra.mxu1 %v2565_v22  ;;  %633 = vst [vmem:[#allocation2 + $0xc1] sm:$0xff] %v616_v14  ;;  %v3376_v21 = vpack.c.bf16 %v1076_v19, %v1075_v18  ;;  %v2568_v22 = vld [vmem:[%s3590_s5 + $0x180] sm:$0xff] }
  0x69   : > { %634 = vst [vmem:[#allocation2 + $0xc9] sm:$0xff] %v617_v15 }
  0x6a   : > { %1768 = vmatpush.bf16.msra.mxu3 %v2581_v23  ;;  %1921 = vmatpush.bf16.msra.mxu0 %v2589_v24  ;;  %v2576_v23 = vld [vmem:[%s3590_s5 + $0x1c0] sm:$0xff] }
  0x6b   : > { %v2560_v24 = vld [vmem:[%s3590_s5 + $0x140] sm:$0xff] }
  0x6c   : > { %1616 = vmatpush.bf16.msra.mxu2 %v2572_v32  ;;  %1462 = vmatpush.bf16.msra.mxu1 %v2564_v36  ;;  %v3398_v36 = vpack.c.bf16 %v1078_v26, %v1077_v35 }
  0x6e   : > { %1769 = vmatpush.bf16.msra.mxu3 %v2580_v34  ;;  %1922 = vmatpush.bf16.msra.mxu0 %v2588_v37 }
  0x6f   : > { %876 = vmatmul.bf16.gmra.mxu1 %v1081_v16  ;;  %1013 = vmatmul.bf16.gmra.mxu2 %v3290_v27  ;;  %v922_v16 = vld [vmem:[#allocation2 + $0x7a] sm:$0xff] }
  0x70   : > { %1617 = vmatpush.bf16.msra.mxu2 %v2571_v43  ;;  %1463 = vmatpush.bf16.msra.mxu1 %v2563_v45  ;;  %v3374_v20 = vpack.c.bf16 %v923_v17, %v922_v16  ;;  %v926_v43 = vld [vmem:[#allocation2 + $0xaa] sm:$0xff]  ;;  %v1079_v45 = vld [vmem:[#allocation2 + $0xc0] sm:$0xff] }
  0x71   : > { %1166 = vmatmul.bf16.gmra.mxu3 %v3292_v31  ;;  %1319 = vmatmul.bf16.gmra.mxu0 %v3091_v30  ;;  %v916_v30 = vld [vmem:[#allocation2 + $0x32] sm:$0xff] }
  0x72   : > { %v3309_v41 = vpack.c.bf16 %v917_v38, %v916_v30  ;;  %1770 = vmatpush.bf16.msra.mxu3 %v2579_v44  ;;  %1923 = vmatpush.bf16.msra.mxu0 %v2587_v46  ;;  %v927_v44 = vld [vmem:[#allocation2 + $0xb2] sm:$0xff]  ;;  %v1080_v46 = vld [vmem:[#allocation2 + $0xc8] sm:$0xff] }
  0x73   : > { %v3414_v52 = vpack.c.bf16 %v927_v44, %v926_v43  ;;  %v1682_v44 = vld [vmem:[#allocation2 + $0x61] sm:$0xff] }
  0x74   : > { %1618 = vmatpush.bf16.msra.mxu2 %v2570_v56  ;;  %1464 = vmatpush.bf16.msra.mxu1 %v2562_v58  ;;  %v3420_v56 = vpack.c.bf16 %v617_v15, %v616_v14 }
  0x76   : > { %1771 = vmatpush.bf16.msra.mxu3 %v2578_v57  ;;  %1924 = vmatpush.bf16.msra.mxu0 %v2586_v59 }
  0x78   : > { %1619 = vmatpush.bf16.msra.mxu2 %v2569_v5  ;;  %1465 = vmatpush.bf16.msra.mxu1 %v2561_v10  ;;  %v1694_v5 = vpack.c.bf16 %v1679_v62, %v1678_v61 }
  0x7a   : > { %1772 = vmatpush.bf16.msra.mxu3 %v2577_v6  ;;  %1925 = vmatpush.bf16.msra.mxu0 %v2585_v13 }
  0x7c   : > { %1620 = vmatpush.bf16.msra.mxu2 %v2568_v22  ;;  %1466 = vmatpush.bf16.msra.mxu1 %v2560_v24 }
  0x7e   : > { %1773 = vmatpush.bf16.msra.mxu3 %v2576_v23  ;;  %1926 = vmatpush.bf16.msra.mxu0 %v2584_v28 }
  0x7f   : > { %881 = vmatmul.bf16.gmra.mxu1 %v3292_v31  ;;  %1018 = vmatmul.bf16.gmra.mxu2 %v3309_v41 }
  0x81   : > { %1171 = vmatmul.bf16.gmra.mxu3 %v3311_v42  ;;  %1324 = vmatmul.bf16.gmra.mxu0 %v3183_v48 }
  0x8f   : > { %886 = vmatmul.bf16.gmra.mxu1 %v3311_v42  ;;  %1023 = vmatmul.bf16.gmra.mxu2 %v3329_v54 }
  0x91   : > { %1176 = vmatmul.bf16.gmra.mxu3 %v3331_v55  ;;  %1329 = vmatmul.bf16.gmra.mxu0 %v3097_v33  ;;  %v920_v33 = vld [vmem:[#allocation2 + $0x62] sm:$0xff] }
  0x92   : > { %v3349_v63 = vpack.c.bf16 %v921_v60, %v920_v33 }
  0x9f   : > { %891 = vmatmul.bf16.gmra.mxu1 %v3331_v55  ;;  %1028 = vmatmul.bf16.gmra.mxu2 %v3349_v63 }
  0xa1   : > { %1181 = vmatmul.bf16.gmra.mxu3 %v3351_v0  ;;  %1334 = vmatmul.bf16.gmra.mxu0 %v3189_v49 }
  0xaf   : > { %896 = vmatmul.bf16.gmra.mxu1 %v3351_v0  ;;  %1033 = vmatmul.bf16.gmra.mxu2 %v3374_v20 }
  0xb1   : > { %1186 = vmatmul.bf16.gmra.mxu3 %v3376_v21  ;;  %1339 = vmatmul.bf16.gmra.mxu0 %v3104_v25  ;;  %v924_v25 = vld [vmem:[#allocation2 + $0x92] sm:$0xff] }
  0xb2   : > { %v3394_v32 = vpack.c.bf16 %v925_v29, %v924_v25 }
  0xbc   : > { %v3396_v34 = vpop.f32.mrf.mxu1 }
  0xbe   : > { %v775_v37 = vpop.f32.mrf.mxu0 }
  0xbf   : > { %901 = vmatmul.bf16.gmra.mxu1 %v3376_v21  ;;  %1038 = vmatmul.bf16.gmra.mxu2 %v3394_v32 }
  0xc1   : > { %1191 = vmatmul.bf16.gmra.mxu3 %v3398_v36  ;;  %1344 = vmatmul.bf16.gmra.mxu0 %v3196_v50  ;;  %v3418_v50 = vpack.c.bf16 %v1080_v46, %v1079_v45  ;;  %v1683_v45 = vld [vmem:[#allocation2 + $0x69] sm:$0xff] }
  0xc2   : > { %v3404_v30 = vpop.f32.mrf.mxu2  ;;  %v1696_v61 = vpack.c.bf16 %v1683_v45, %v1682_v44 }
  0xc4   : > { %v3406_v38 = vpop.f32.mrf.mxu3  ;;  %v3408_v39 = vpop.f32.mrf.mxu1 }
  0xc6   : > { %v777_v40 = vpop.f32.mrf.mxu0 }
  0xca   : > { %v3410_v47 = vpop.f32.mrf.mxu2 }
  0xcc   : > { %v3412_v51 = vpop.f32.mrf.mxu3  ;;  %v3416_v53 = vpop.f32.mrf.mxu1 }
  0xce   : > { %v780_v57 = vpop.f32.mrf.mxu0 }
  0xcf   : > { %906 = vmatmul.bf16.gmra.mxu1 %v3398_v36  ;;  %1043 = vmatmul.bf16.gmra.mxu2 %v3414_v52 }
  0xd1   : > { %1196 = vmatmul.bf16.gmra.mxu3 %v3418_v50  ;;  %1349 = vmatmul.bf16.gmra.mxu0 %v3420_v56 }
  0xd2   : > { %v3426_v58 = vpop.f32.mrf.mxu2 }
  0xd4   : > { %v3428_v59 = vpop.f32.mrf.mxu3  ;;  %v3430_v33 = vpop.f32.mrf.mxu1 }
  0xd6   : > { %v782_v60 = vpop.f32.mrf.mxu0 }
  0xda   : > { %v3432_v1 = vpop.f32.mrf.mxu2 }
  0xdc   : > { %v3434_v2 = vpop.f32.mrf.mxu3  ;;  %v872_v4 = vpop.f32.mrf.mxu1 }
  0xdd   : > { %v873_v6 = vadd.f32 %v872_v4, %v775_v37 }
  0xde   : > { %v1315_v8 = vpop.f32.mrf.mxu0 }
  0xdf   : > { %1467 = vmatmul.bf16.vlgmr.msra.gmra.mxu1 %v3290_v27  ;;  %1621 = vmatmul.bf16.vlgmr.msra.gmra.mxu2 %v3292_v31 }
  0xe1   : > { %1774 = vmatmul.bf16.vlgmr.msra.gmra.mxu3 %v1694_v5  ;;  %1927 = vmatmul.bf16.vlgmr.msra.gmra.mxu0 %v3309_v41 }
  0xe2   : > { %v1009_v9 = vpop.f32.mrf.mxu2 }
  0xe3   : > { %v1049_v10 = vadd.f32 %v1009_v9, %v873_v6 }
  0xe4   : > { %v1162_v11 = vpop.f32.mrf.mxu3  ;;  %v874_v12 = vpop.f32.mrf.mxu1 }
  0xe5   : > { %v1202_v13 = vadd.f32 %v1162_v11, %v1049_v10  ;;  %v875_v14 = vadd.f32 %v874_v12, %v777_v40 }
  0xe6   : > { %v1317_v15 = vpop.f32.mrf.mxu0 }
  0xe7   : > { %v3439_v16 = vadd.f32 %v1315_v8, %v1202_v13 }
  0xea   : > { %v1011_v17 = vpop.f32.mrf.mxu2 }
  0xeb   : > { %v1050_v18 = vadd.f32 %v1011_v17, %v875_v14 }
  0xec   : > { %v1164_v19 = vpop.f32.mrf.mxu3  ;;  %v877_v22 = vpop.f32.mrf.mxu1 }
  0xed   : > { %v1203_v23 = vadd.f32 %v1164_v19, %v1050_v18  ;;  %v878_v27 = vadd.f32 %v877_v22, %v780_v57 }
  0xee   : > { %v1320_v24 = vpop.f32.mrf.mxu0 }
  0xef   : > { %1472 = vmatmul.bf16.gmra.mxu1 %v3309_v41  ;;  %1626 = vmatmul.bf16.gmra.mxu2 %v3311_v42  ;;  %v3443_v31 = vadd.f32 %v1317_v15, %v1203_v23 }
  0xf1   : > { %1779 = vmatmul.bf16.gmra.mxu3 %v3183_v48  ;;  %1932 = vmatmul.bf16.gmra.mxu0 %v3329_v54 }
  0xf2   : > { %v1014_v28 = vpop.f32.mrf.mxu2 }
  0xf3   : > { %v1051_v25 = vadd.f32 %v1014_v28, %v878_v27 }
  0xf4   : > { %v1167_v29 = vpop.f32.mrf.mxu3  ;;  %v879_v35 = vpop.f32.mrf.mxu1 }
  0xf5   : > { %v1204_v26 = vadd.f32 %v1167_v29, %v1051_v25  ;;  %v880_v37 = vadd.f32 %v879_v35, %v782_v60 }
  0xf6   : > { %v1322_v40 = vpop.f32.mrf.mxu0 }
  0xf7   : > { %v3447_v43 = vadd.f32 %v1320_v24, %v1204_v26 }
  0xfa   : > { %v1016_v41 = vpop.f32.mrf.mxu2 }
  0xfb   : > { %v1052_v46 = vadd.f32 %v1016_v41, %v880_v37 }
  0xfc   : > { %v1169_v42 = vpop.f32.mrf.mxu3  ;;  %v882_v57 = vpop.f32.mrf.mxu1 }
  0xfd   : > { %v1205_v62 = vadd.f32 %v1169_v42, %v1052_v46  ;;  %v883_v48 = vadd.f32 %v882_v57, %v3396_v34 }
  0xfe   : > { %v1325_v4 = vpop.f32.mrf.mxu0 }
  0xff   : > { %1477 = vmatmul.bf16.gmra.mxu1 %v3329_v54  ;;  %1631 = vmatmul.bf16.gmra.mxu2 %v3331_v55  ;;  %v3452_v5 = vadd.f32 %v1322_v40, %v1205_v62  ;;  %v2597_v40 = vld [vmem:[%s2907_s25] sm:$0xff]  }
 0x100   : > { %v2598_v41 = vunpack.c.l.bf16 %v2597_v40  ;;  %v2599_v46 = vunpack.c.h.bf16 %v2597_v40 }
 0x101   : > { %1784 = vmatmul.bf16.gmra.mxu3 %v1696_v61  ;;  %1937 = vmatmul.bf16.gmra.mxu0 %v3349_v63 }
 0x102   : > { %v1019_v60 = vpop.f32.mrf.mxu2  ;;  %v506_v42 = vmul.f32 %v2927_v3, %v2599_v46 }
 0x103   : > { %v1053_v6 = vadd.f32 %v1019_v60, %v883_v48 }
 0x104   : > { %v1172_v8 = vpop.f32.mrf.mxu3  ;;  %v884_v9 = vpop.f32.mrf.mxu1  ;;  %v3482_v48 = vadd.f32 %v2935_v7, %v506_v42 }
 0x105   : > { %v1206_v10 = vadd.f32 %v1172_v8, %v1053_v6  ;;  %v885_v11 = vadd.f32 %v884_v9, %v3408_v39  ;;  %v512_v6 = vstv %s511_s19 }
 0x106   : > { %v1327_v12 = vpop.f32.mrf.mxu0  ;;  %vm3486_vm2 = vcmp.eq.s32.totalorder %v512_v6, 1 }
 0x107   : > { %v3456_v13 = vadd.f32 %v1325_v4, %v1206_v10  ;;  %vm2757_vm3 = vmpackc.low %vm3486_vm2, %vm3486_vm2 }
 0x10a   : > { %v1021_v34 = vpop.f32.mrf.mxu2 }
 0x10b   : > { %v1054_v14 = vadd.f32 %v1021_v34, %v885_v11 }
 0x10c   : > { %v1174_v54 = vpop.f32.mrf.mxu3  ;;  %v887_v15 = vpop.f32.mrf.mxu1 }
 0x10d   : > { %v1207_v55 = vadd.f32 %v1174_v54, %v1054_v14  ;;  %v888_v17 = vadd.f32 %v887_v15, %v3416_v53  ;;  %v1688_v14 = vld [vmem:[#allocation2 + $0xa9] sm:$0xff]  ;;  %v1689_v54 = vld [vmem:[#allocation2 + $0xb1] sm:$0xff] }
 0x10e   : > { %v1330_v18 = vpop.f32.mrf.mxu0 }
 0x10f   : > { %1482 = vmatmul.bf16.gmra.mxu1 %v3349_v63  ;;  %1636 = vmatmul.bf16.gmra.mxu2 %v3351_v0  ;;  %v3461_v19 = vadd.f32 %v1327_v12, %v1207_v55  ;;  %v1686_v63 = vld [vmem:[#allocation2 + $0x91] sm:$0xff]  ;;  %v1687_v0 = vld [vmem:[#allocation2 + $0x99] sm:$0xff] }
 0x110   : > { %v1698_v37 = vpack.c.bf16 %v1687_v0, %v1686_v63 }
 0x111   : > { %1789 = vmatmul.bf16.gmra.mxu3 %v3189_v49  ;;  %1942 = vmatmul.bf16.gmra.mxu0 %v3374_v20 }
 0x112   : > { %v1024_v39 = vpop.f32.mrf.mxu2 }
 0x113   : > { %v1055_v22 = vadd.f32 %v1024_v39, %v888_v17  ;;  %v1699_v39 = vpack.c.bf16 %v1689_v54, %v1688_v14 }
 0x114   : > { %v1177_v23 = vpop.f32.mrf.mxu3  ;;  %v889_v27 = vpop.f32.mrf.mxu1 }
 0x115   : > { %v1208_v24 = vadd.f32 %v1177_v23, %v1055_v22  ;;  %v890_v53 = vadd.f32 %v889_v27, %v3430_v33  ;;  %v505_v33 = vmul.f32 %v2927_v3, %v2598_v41  ;;  %v510_v3 = vmax.f32 %v3482_v48, 0.0 }
 0x116   : > { %v1332_v28 = vpop.f32.mrf.mxu0 }
 0x117   : > { %v3466_v25 = vadd.f32 %v1330_v18, %v1208_v24  ;;  %v3479_v62 = vadd.f32 %v2935_v7, %v505_v33  ;;  %v515_v11 = vsel %vm3486_vm2, %v510_v3, 0.0 }
 0x118   : > { %637 = vst [vmem:[#allocation2 + $0xe1] sm:$0xff] %v515_v11 }
 0x119   : > { %v509_v60 = vmax.f32 %v3479_v62, 0.0 }
 0x11a   : > { %v1026_v29 = vpop.f32.mrf.mxu2 }
 0x11b   : > { %v1056_v35 = vadd.f32 %v1026_v29, %v890_v53  ;;  %v514_v7 = vsel %vm3486_vm2, %v509_v60, 0.0 }
 0x11c   : > { %v1179_v26 = vpop.f32.mrf.mxu3  ;;  %v892_v49 = vpop.f32.mrf.mxu1  ;;  %636 = vst [vmem:[#allocation2 + $0xd9] sm:$0xff] %v514_v7 }
 0x11d   : > { %v1209_v44 = vadd.f32 %v1179_v26, %v1056_v35  ;;  %v893_v61 = vadd.f32 %v892_v49, %v3404_v30  ;;  %v1844_v49 = vld [vmem:[#allocation2 + $0xca] sm:$0xff] }
 0x11e   : > { %v1335_v45 = vpop.f32.mrf.mxu0 }
 0x11f   : > { %1487 = vmatmul.bf16.gmra.mxu1 %v3374_v20  ;;  %1641 = vmatmul.bf16.gmra.mxu2 %v3376_v21  ;;  %v3474_v57 = vadd.f32 %v1332_v28, %v1209_v44 }
 0x121   : > { %1794 = vmatmul.bf16.gmra.mxu3 %v1698_v37  ;;  %1947 = vmatmul.bf16.gmra.mxu0 %v3394_v32 }
 0x122   : > { %v1029_v20 = vpop.f32.mrf.mxu2 }
 0x123   : > { %v1057_v21 = vadd.f32 %v1029_v20, %v893_v61 }
 0x124   : > { %v1182_v4 = vpop.f32.mrf.mxu3  ;;  %v894_v8 = vpop.f32.mrf.mxu1 }
 0x125   : > { %v1210_v30 = vadd.f32 %v1182_v4, %v1057_v21  ;;  %v895_v34 = vadd.f32 %v894_v8, %v3410_v47  ;;  %v1539_v8 = vld [vmem:[#allocation2 + $0xd8] sm:$0xff] }
 0x126   : > { %v1337_v10 = vpop.f32.mrf.mxu0 }
 0x127   : > { %v3498_v12 = vadd.f32 %v1335_v45, %v1210_v30  ;;  %v1540_v30 = vld [vmem:[#allocation2 + $0xe0] sm:$0xff] }
 0x12a   : > { %v1031_v15 = vpop.f32.mrf.mxu2 }
 0x12b   : > { %v1058_v55 = vadd.f32 %v1031_v15, %v895_v34  ;;  %v1548_v34 = vpack.c.bf16 %v1540_v30, %v1539_v8 }
 0x12c   : > { %v1184_v17 = vpop.f32.mrf.mxu3  ;;  %v897_v18 = vpop.f32.mrf.mxu1 }
 0x12d   : > { %v1211_v22 = vadd.f32 %v1184_v17, %v1058_v55  ;;  %v898_v47 = vadd.f32 %v897_v18, %v3426_v58 }
 0x12e   : > { %v1340_v23 = vpop.f32.mrf.mxu0 }
 0x12f   : > { %1492 = vmatmul.bf16.gmra.mxu1 %v3394_v32  ;;  %1646 = vmatmul.bf16.gmra.mxu2 %v3398_v36  ;;  %v3503_v27 = vadd.f32 %v1337_v10, %v1211_v22  ;;  %v1843_v32 = vld [vmem:[#allocation2 + $0xc2] sm:$0xff] }
 0x130   : > { %v1853_v45 = vpack.c.bf16 %v1844_v49, %v1843_v32  ;;  %v1846_v10 = vld [vmem:[#allocation2 + $0xe2] sm:$0xff] }
 0x131   : > { %1799 = vmatmul.bf16.gmra.mxu3 %v1699_v39  ;;  %1952 = vmatmul.bf16.gmra.mxu0 %v3414_v52 }
 0x132   : > { %v1034_v24 = vpop.f32.mrf.mxu2 }
 0x133   : > { %v1059_v53 = vadd.f32 %v1034_v24, %v898_v47 }
 0x134   : > { %v1187_v28 = vpop.f32.mrf.mxu3  ;;  %v899_v63 = vpop.f32.mrf.mxu1 }
 0x135   : > { %v1212_v0 = vadd.f32 %v1187_v28, %v1059_v53  ;;  %v900_v26 = vadd.f32 %v899_v63, %v3432_v1 }
 0x136   : > { %v1342_v29 = vpop.f32.mrf.mxu0 }
 0x137   : > { %v3507_v35 = vadd.f32 %v1340_v23, %v1212_v0 }
 0x13a   : > { %v1036_v36 = vpop.f32.mrf.mxu2 }
 0x13b   : > { %v1060_v37 = vadd.f32 %v1036_v36, %v900_v26 }
 0x13c   : > { %v1189_v40 = vpop.f32.mrf.mxu3  ;;  %v902_v44 = vpop.f32.mrf.mxu1 }
 0x13d   : > { %v1213_v41 = vadd.f32 %v1189_v40, %v1060_v37  ;;  %v903_v1 = vadd.f32 %v902_v44, %v3406_v38 }
 0x13e   : > { %v1345_v46 = vpop.f32.mrf.mxu0 }
 0x13f   : > { %1497 = vmatmul.bf16.gmra.mxu1 %v3414_v52  ;;  %1651 = vmatmul.bf16.gmra.mxu2 %v3418_v50  ;;  %v3512_v58 = vadd.f32 %v1342_v29, %v1213_v41  ;;  %v1845_v50 = vld [vmem:[#allocation2 + $0xda] sm:$0xff] }
 0x140   : > { %v1854_v38 = vpack.c.bf16 %v1846_v10, %v1845_v50 }
 0x141   : > { %1804 = vmatmul.bf16.gmra.mxu3 %v3420_v56  ;;  %1957 = vmatmul.bf16.gmra.mxu0 %v1853_v45 }
 0x142   : > { %v1039_v33 = vpop.f32.mrf.mxu2 }
 0x143   : > { %v1061_v42 = vadd.f32 %v1039_v33, %v903_v1 }
 0x144   : > { %v1192_v61 = vpop.f32.mrf.mxu3  ;;  %v904_v20 = vpop.f32.mrf.mxu1 }
 0x145   : > { %v1214_v21 = vadd.f32 %v1192_v61, %v1061_v42  ;;  %v905_v52 = vadd.f32 %v904_v20, %v3412_v51  ;;  %v2758_v51 = vpack.c.bf16 %v510_v3, %v509_v60 }
 0x146   : > { %v1347_v4 = vpop.f32.mrf.mxu0 }
 0x147   : > { %v3516_v6 = vadd.f32 %v1345_v46, %v1214_v21 }
 0x14a   : > { %v1041_v7 = vpop.f32.mrf.mxu2 }
 0x14b   : > { %v1062_v11 = vadd.f32 %v1041_v7, %v905_v52 }
 0x14c   : > { %v1194_v56 = vpop.f32.mrf.mxu3  ;;  %v907_v14 = vpop.f32.mrf.mxu1 }
 0x14d   : > { %v1215_v54 = vadd.f32 %v1194_v56, %v1062_v11  ;;  %v908_v17 = vadd.f32 %v907_v14, %v3428_v59 }
 0x14e   : > { %v1350_v15 = vpop.f32.mrf.mxu0 }
 0x14f   : > { %1502 = vmatmul.bf16.gmra.mxu1 %v1853_v45  ;;  %1656 = vmatmul.bf16.gmra.mxu2 %v1548_v34  ;;  %v3519_v55 = vadd.f32 %v1347_v4, %v1215_v54 }
 0x151   : > { %2759 = vmatmul.msk.bf16.gmra.mxu3 %vm2757_vm3, %v2758_v51  ;;  %1962 = vmatmul.bf16.gmra.mxu0 %v1854_v38 }
 0x152   : > { %v1044_v18 = vpop.f32.mrf.mxu2 }
 0x153   : > { %v1063_v39 = vadd.f32 %v1044_v18, %v908_v17 }
 0x154   : > { %v1197_v22 = vpop.f32.mrf.mxu3  ;;  %v909_v23 = vpop.f32.mrf.mxu1 }
 0x155   : > { %v1216_v47 = vadd.f32 %v1197_v22, %v1063_v39  ;;  %v910_v9 = vadd.f32 %v909_v23, %v3434_v2 }
 0x156   : > { %v1352_v24 = vpop.f32.mrf.mxu0 }
 0x157   : > { %v3529_v53 = vadd.f32 %v1350_v15, %v1216_v47 }
 0x15a   : > { %v1046_v28 = vpop.f32.mrf.mxu2 }
 0x15b   : > { %v1064_v63 = vadd.f32 %v1046_v28, %v910_v9 }
 0x15c   : > { %v1199_v62 = vpop.f32.mrf.mxu3  ;;  %v1468_v0 = vpop.f32.mrf.mxu1 }
 0x15d   : > { %v1217_v48 = vadd.f32 %v1199_v62, %v1064_v63  ;;  %v1508_v59 = vadd.f32 %v1468_v0, %v3439_v16 }
 0x15e   : > { %v1928_v60 = vpop.f32.mrf.mxu0 }
 0x15f   : > { %v3532_v3 = vadd.f32 %v1352_v24, %v1217_v48 }
 0x162   : > { %v1622_v29 = vpop.f32.mrf.mxu2 }
 0x163   : > { %v1662_v32 = vadd.f32 %v1622_v29, %v1508_v59 }
 0x164   : > { %v1775_v26 = vpop.f32.mrf.mxu3  ;;  %v1470_v49 = vpop.f32.mrf.mxu1 }
 0x165   : > { %v1815_v37 = vadd.f32 %v1775_v26, %v1662_v32  ;;  %v1509_v40 = vadd.f32 %v1470_v49, %v3443_v31 }
 0x166   : > { %v1930_v36 = vpop.f32.mrf.mxu0 }
 0x167   : > { %v1968_v41 = vadd.f32 %v1928_v60, %v1815_v37 }
 0x169   : > { %v2041_v61 = vmul.f32 %v1968_v41, %v1968_v41 }
 0x16a   : > { %v1624_v2 = vpop.f32.mrf.mxu2 }
 0x16b   : > { %v1663_v44 = vadd.f32 %v1624_v2, %v1509_v40 }
 0x16c   : > { %v1777_v45 = vpop.f32.mrf.mxu3  ;;  %v1473_v46 = vpop.f32.mrf.mxu1 }
 0x16d   : > { %v1816_v1 = vadd.f32 %v1777_v45, %v1663_v44  ;;  %v1510_v4 = vadd.f32 %v1473_v46, %v3447_v43 }
 0x16e   : > { %v1933_v33 = vpop.f32.mrf.mxu0 }
 0x16f   : > { %v1969_v42 = vadd.f32 %v1930_v36, %v1816_v1 }
 0x171   : > { %v2635_v20 = vpack.c.bf16 %v1969_v42, %v1968_v41  ;;  %v2017_v16 = vadd.f32 %v1969_v42, %v1968_v41  ;;  %v2042_v21 = vmul.f32 %v1969_v42, %v1969_v42 }
 0x172   : > { %v1627_v8 = vpop.f32.mrf.mxu2 }
 0x173   : > { %2636 = vst [vmem:[%s2894_s12] sm:$0xff] %v2635_v20   ;;  %v2057_v30 = vadd.f32 %v2042_v21, %v2041_v61  ;;  %v1664_v52 = vadd.f32 %v1627_v8, %v1510_v4 }
 0x174   : > { %v1780_v50 = vpop.f32.mrf.mxu3  ;;  %v1475_v31 = vpop.f32.mrf.mxu1 }
 0x175   : > { %v1817_v10 = vadd.f32 %v1780_v50, %v1664_v52  ;;  %v1511_v14 = vadd.f32 %v1475_v31, %v3452_v5 }
 0x176   : > { %v1935_v7 = vpop.f32.mrf.mxu0 }
 0x177   : > { %v1970_v11 = vadd.f32 %v1933_v33, %v1817_v10 }
 0x179   : > { %v2018_v56 = vadd.f32 %v2017_v16, %v1970_v11  ;;  %v2043_v34 = vmul.f32 %v1970_v11, %v1970_v11 }
 0x17a   : > { %v1629_v38 = vpop.f32.mrf.mxu2 }
 0x17b   : > { %v2058_v54 = vadd.f32 %v2057_v30, %v2043_v34  ;;  %v1665_v15 = vadd.f32 %v1629_v38, %v1511_v14 }
 0x17c   : > { %v1782_v51 = vpop.f32.mrf.mxu3  ;;  %v1478_v17 = vpop.f32.mrf.mxu1 }
 0x17d   : > { %v1818_v43 = vadd.f32 %v1782_v51, %v1665_v15  ;;  %v1512_v24 = vadd.f32 %v1478_v17, %v3456_v13 }
 0x17e   : > { %v1938_v18 = vpop.f32.mrf.mxu0 }
 0x17f   : > { %v1971_v39 = vadd.f32 %v1935_v7, %v1818_v43 }
 0x181   : > { %v2640_v22 = vpack.c.bf16 %v1971_v39, %v1970_v11  ;;  %v2019_v23 = vadd.f32 %v2018_v56, %v1971_v39  ;;  %v2044_v47 = vmul.f32 %v1971_v39, %v1971_v39 }
 0x182   : > { %v1632_v9 = vpop.f32.mrf.mxu2 }
 0x183   : > { %2679 = vst [vmem:[%s2894_s12 + $0x8] sm:$0xff] %v2640_v22   ;;  %v2059_v28 = vadd.f32 %v2058_v54, %v2044_v47  ;;  %v1666_v63 = vadd.f32 %v1632_v9, %v1512_v24 }
 0x184   : > { %v1785_v62 = vpop.f32.mrf.mxu3  ;;  %v1480_v0 = vpop.f32.mrf.mxu1 }
 0x185   : > { %v1819_v5 = vadd.f32 %v1785_v62, %v1666_v63  ;;  %v1513_v26 = vadd.f32 %v1480_v0, %v3461_v19 }
 0x186   : > { %v1940_v48 = vpop.f32.mrf.mxu0 }
 0x187   : > { %v1972_v60 = vadd.f32 %v1938_v18, %v1819_v5 }
 0x189   : > { %v2020_v59 = vadd.f32 %v2019_v23, %v1972_v60  ;;  %v2045_v29 = vmul.f32 %v1972_v60, %v1972_v60 }
 0x18a   : > { %v1634_v32 = vpop.f32.mrf.mxu2 }
 0x18b   : > { %v2060_v49 = vadd.f32 %v2059_v28, %v2045_v29  ;;  %v1667_v36 = vadd.f32 %v1634_v32, %v1513_v26 }
 0x18c   : > { %v1787_v37 = vpop.f32.mrf.mxu3  ;;  %v1483_v40 = vpop.f32.mrf.mxu1 }
 0x18d   : > { %v1820_v13 = vadd.f32 %v1787_v37, %v1667_v36  ;;  %v1514_v1 = vadd.f32 %v1483_v40, %v3466_v25 }
 0x18e   : > { %v1943_v2 = vpop.f32.mrf.mxu0 }
 0x18f   : > { %v1973_v44 = vadd.f32 %v1940_v48, %v1820_v13 }
 0x191   : > { %v2645_v45 = vpack.c.bf16 %v1973_v44, %v1972_v60  ;;  %v2021_v41 = vadd.f32 %v2020_v59, %v1973_v44  ;;  %v2046_v46 = vmul.f32 %v1973_v44, %v1973_v44 }
 0x192   : > { %v1637_v33 = vpop.f32.mrf.mxu2 }
 0x193   : > { %2680 = vst [vmem:[%s2894_s12 + $0x10] sm:$0xff] %v2645_v45   ;;  %v2061_v42 = vadd.f32 %v2060_v49, %v2046_v46  ;;  %v1668_v61 = vadd.f32 %v1637_v33, %v1514_v1 }
 0x194   : > { %v1790_v20 = vpop.f32.mrf.mxu3  ;;  %v1485_v16 = vpop.f32.mrf.mxu1 }
 0x195   : > { %v1821_v19 = vadd.f32 %v1790_v20, %v1668_v61  ;;  %v1515_v52 = vadd.f32 %v1485_v16, %v3474_v57 }
 0x196   : > { %v1945_v21 = vpop.f32.mrf.mxu0 }
 0x197   : > { %v1974_v4 = vadd.f32 %v1943_v2, %v1821_v19 }
 0x199   : > { %v2022_v8 = vadd.f32 %v2021_v41, %v1974_v4  ;;  %v2047_v30 = vmul.f32 %v1974_v4, %v1974_v4 }
 0x19a   : > { %v1639_v50 = vpop.f32.mrf.mxu2 }
 0x19b   : > { %v2062_v31 = vadd.f32 %v2061_v42, %v2047_v30  ;;  %v1669_v10 = vadd.f32 %v1639_v50, %v1515_v52 }
 0x19c   : > { %v1792_v7 = vpop.f32.mrf.mxu3  ;;  %v1488_v11 = vpop.f32.mrf.mxu1 }
 0x19d   : > { %v1822_v25 = vadd.f32 %v1792_v7, %v1669_v10  ;;  %v1516_v15 = vadd.f32 %v1488_v11, %v3498_v12 }
 0x19e   : > { %v1948_v56 = vpop.f32.mrf.mxu0 }
 0x19f   : > { %v1975_v34 = vadd.f32 %v1945_v21, %v1822_v25 }
 0x1a1   : > { %v2650_v14 = vpack.c.bf16 %v1975_v34, %v1974_v4  ;;  %v2023_v38 = vadd.f32 %v2022_v8, %v1975_v34  ;;  %v2048_v54 = vmul.f32 %v1975_v34, %v1975_v34 }
 0x1a2   : > { %v1642_v51 = vpop.f32.mrf.mxu2 }
 0x1a3   : > { %2681 = vst [vmem:[%s2894_s12 + $0x18] sm:$0xff] %v2650_v14   ;;  %v2063_v17 = vadd.f32 %v2062_v31, %v2048_v54  ;;  %v1670_v43 = vadd.f32 %v1642_v51, %v1516_v15 }
 0x1a4   : > { %v1795_v18 = vpop.f32.mrf.mxu3  ;;  %v1490_v39 = vpop.f32.mrf.mxu1 }
 0x1a5   : > { %v1823_v57 = vadd.f32 %v1795_v18, %v1670_v43  ;;  %v1517_v9 = vadd.f32 %v1490_v39, %v3503_v27 }
 0x1a6   : > { %v1950_v22 = vpop.f32.mrf.mxu0 }
 0x1a7   : > { %v1976_v23 = vadd.f32 %v1948_v56, %v1823_v57 }
 0x1a9   : > { %v2024_v47 = vadd.f32 %v2023_v38, %v1976_v23  ;;  %v2049_v24 = vmul.f32 %v1976_v23, %v1976_v23 }
 0x1aa   : > { %v1644_v28 = vpop.f32.mrf.mxu2 }
 0x1ab   : > { %v2064_v63 = vadd.f32 %v2063_v17, %v2049_v24  ;;  %v1671_v62 = vadd.f32 %v1644_v28, %v1517_v9 }
 0x1ac   : > { %v1797_v0 = vpop.f32.mrf.mxu3  ;;  %v1493_v5 = vpop.f32.mrf.mxu1 }
 0x1ad   : > { %v1824_v12 = vadd.f32 %v1797_v0, %v1671_v62  ;;  %v1518_v32 = vadd.f32 %v1493_v5, %v3507_v35 }
 0x1ae   : > { %v1953_v48 = vpop.f32.mrf.mxu0 }
 0x1af   : > { %v1977_v60 = vadd.f32 %v1950_v22, %v1824_v12 }
 0x1b1   : > { %v2655_v59 = vpack.c.bf16 %v1977_v60, %v1976_v23  ;;  %v2025_v29 = vadd.f32 %v2024_v47, %v1977_v60  ;;  %v2050_v26 = vmul.f32 %v1977_v60, %v1977_v60 }
 0x1b2   : > { %v1647_v49 = vpop.f32.mrf.mxu2 }
 0x1b3   : > { %2682 = vst [vmem:[%s2894_s12 + $0x20] sm:$0xff] %v2655_v59   ;;  %v2065_v36 = vadd.f32 %v2064_v63, %v2050_v26  ;;  %v1672_v37 = vadd.f32 %v1647_v49, %v1518_v32 }
 0x1b4   : > { %v1800_v40 = vpop.f32.mrf.mxu3  ;;  %v1495_v13 = vpop.f32.mrf.mxu1 }
 0x1b5   : > { %v1825_v27 = vadd.f32 %v1800_v40, %v1672_v37  ;;  %v1519_v46 = vadd.f32 %v1495_v13, %v3512_v58 }
 0x1b6   : > { %v1955_v2 = vpop.f32.mrf.mxu0 }
 0x1b7   : > { %v1978_v44 = vadd.f32 %v1953_v48, %v1825_v27 }
 0x1b9   : > { %v2026_v45 = vadd.f32 %v2025_v29, %v1978_v44  ;;  %v2051_v41 = vmul.f32 %v1978_v44, %v1978_v44 }
 0x1ba   : > { %v1649_v1 = vpop.f32.mrf.mxu2 }
 0x1bb   : > { %v2066_v33 = vadd.f32 %v2065_v36, %v2051_v41  ;;  %v1673_v42 = vadd.f32 %v1649_v1, %v1519_v46 }
 0x1bc   : > { %v1802_v61 = vpop.f32.mrf.mxu3  ;;  %v1498_v20 = vpop.f32.mrf.mxu1 }
 0x1bd   : > { %v1826_v35 = vadd.f32 %v1802_v61, %v1673_v42  ;;  %v1520_v30 = vadd.f32 %v1498_v20, %v3516_v6  ;;  %v2040_v20 = vld [vmem:[%s3593_s8] sm:$0x1] }
 0x1be   : > { %v1958_v19 = vpop.f32.mrf.mxu0 }
 0x1bf   : > { %v1979_v16 = vadd.f32 %v1955_v2, %v1826_v35 }
 0x1c1   : > { %v2660_v21 = vpack.c.bf16 %v1979_v16, %v1978_v44  ;;  %v2027_v4 = vadd.f32 %v2026_v45, %v1979_v16  ;;  %v2052_v8 = vmul.f32 %v1979_v16, %v1979_v16 }
 0x1c2   : > { %v1652_v52 = vpop.f32.mrf.mxu2 }
 0x1c3   : > { %2683 = vst [vmem:[%s2894_s12 + $0x28] sm:$0xff] %v2660_v21   ;;  %v2067_v50 = vadd.f32 %v2066_v33, %v2052_v8  ;;  %v1674_v31 = vadd.f32 %v1652_v52, %v1520_v30  ;;  %v2016_v33 = vld [vmem:[%s3592_s7] sm:$0x1] }
 0x1c4   : > { %v1805_v10 = vpop.f32.mrf.mxu3  ;;  %v1500_v7 = vpop.f32.mrf.mxu1 }
 0x1c5   : > { %v1827_v58 = vadd.f32 %v1805_v10, %v1674_v31  ;;  %v1521_v34 = vadd.f32 %v1500_v7, %v3519_v55 }
 0x1c6   : > { %v1960_v14 = vpop.f32.mrf.mxu0 }
 0x1c7   : > { %v1980_v11 = vadd.f32 %v1958_v19, %v1827_v58 }
 0x1c9   : > { %v2028_v25 = vadd.f32 %v2027_v4, %v1980_v11  ;;  %v2053_v56 = vmul.f32 %v1980_v11, %v1980_v11 }
 0x1ca   : > { %v1654_v38 = vpop.f32.mrf.mxu2 }
 0x1cb   : > { %v2068_v54 = vadd.f32 %v2067_v50, %v2053_v56  ;;  %v1675_v15 = vadd.f32 %v1654_v38, %v1521_v34 }
 0x1cc   : > { %v1807_v51 = vpop.f32.mrf.mxu3  ;;  %v1503_v17 = vpop.f32.mrf.mxu1 }
 0x1cd   : > { %v1828_v6 = vadd.f32 %v1807_v51, %v1675_v15  ;;  %v1522_v22 = vadd.f32 %v1503_v17, %v3529_v53 }
 0x1ce   : > { %v1963_v28 = vpop.f32.mrf.mxu0 }
 0x1cf   : > { %v1981_v43 = vadd.f32 %v1960_v14, %v1828_v6 }
 0x1d1   : > { %v2665_v18 = vpack.c.bf16 %v1981_v43, %v1980_v11  ;;  %v2029_v39 = vadd.f32 %v2028_v25, %v1981_v43  ;;  %v2054_v57 = vmul.f32 %v1981_v43, %v1981_v43 }
 0x1d2   : > { %v1657_v23 = vpop.f32.mrf.mxu2 }
 0x1d3   : > { %2684 = vst [vmem:[%s2894_s12 + $0x30] sm:$0xff] %v2665_v18   ;;  %v2069_v47 = vadd.f32 %v2068_v54, %v2054_v57  ;;  %v1676_v24 = vadd.f32 %v1657_v23, %v1522_v22 }
 0x1d4   : > { %v1810_v9 = vpop.f32.mrf.mxu3  ;;  %v1505_v63 = vpop.f32.mrf.mxu1 }
 0x1d5   : > { %v1829_v55 = vadd.f32 %v1810_v9, %v1676_v24  ;;  %v1523_v12 = vadd.f32 %v1505_v63, %v3532_v3 }
 0x1d6   : > { %v1965_v53 = vpop.f32.mrf.mxu0 }
 0x1d7   : > { %v1982_v62 = vadd.f32 %v1963_v28, %v1829_v55 }
 0x1d9   : > { %v2030_v0 = vadd.f32 %v2029_v39, %v1982_v62  ;;  %v2055_v5 = vmul.f32 %v1982_v62, %v1982_v62 }
 0x1da   : > { %v1659_v48 = vpop.f32.mrf.mxu2 }
 0x1db   : > { %v2070_v60 = vadd.f32 %v2069_v47, %v2055_v5  ;;  %v1677_v59 = vadd.f32 %v1659_v48, %v1523_v12 }
 0x1dc   : > { %v1812_v29 = vpop.f32.mrf.mxu3 }
 0x1dd   : > { %v1830_v26 = vadd.f32 %v1812_v29, %v1677_v59 }
 0x1df   : > { %v1983_v32 = vadd.f32 %v1965_v53, %v1830_v26 }
 0x1e1   : > { %v2670_v49 = vpack.c.bf16 %v1983_v32, %v1982_v62  ;;  %v2031_v36 = vadd.f32 %v2030_v0, %v1983_v32  ;;  %v2056_v37 = vmul.f32 %v1983_v32, %v1983_v32 }
 0x1e3   : > { %2685 = vst [vmem:[%s2894_s12 + $0x38] sm:$0xff] %v2670_v49   ;;  %v2032_v40 = vrot.slane %v2031_v36, 4  ;;  %v2071_v13 = vadd.f32 %v2070_v60, %v2056_v37 }
 0x1e5   : > { %v2033_v27 = vadd.f32 %v2032_v40, %v2031_v36  ;;  %v2072_v2 = vrot.slane %v2071_v13, 4 }
 0x1e7   : > { %v2034_v44 = vrot.slane %v2033_v27, 2  ;;  %v2073_v45 = vadd.f32 %v2072_v2, %v2071_v13 }
 0x1e9   : > { %v2035_v41 = vadd.f32 %v2034_v44, %v2033_v27  ;;  %v2074_v46 = vrot.slane %v2073_v45, 2 }
 0x1eb   : > { %v2036_v3 = vrot.slane %v2035_v41, 1  ;;  %v2075_v1 = vadd.f32 %v2074_v46, %v2073_v45 }
 0x1ed   : > { %v2037_v42 = vadd.f32 %v2036_v3, %v2035_v41  ;;  %v2076_v61 = vrot.slane %v2075_v1, 1 }
 0x1ef   : > { %v2038_v35 = vadd.f32 %v2037_v42, %v2016_v33  ;;  %v2077_v16 = vadd.f32 %v2076_v61, %v2075_v1 }
 0x1f1   : > { %2039 = vst [vmem:[%s3592_s7] sm:$0x1] %v2038_v35  ;;  %v2078_v19 = vadd.f32 %v2077_v16, %v2040_v20 }
 0x1f3   : > { %2079 = vst [vmem:[%s3593_s8] sm:$0x1] %v2078_v19 }
 0x1f4 PF: > { %s19_s9 = sadd.s32 1, %s2798_s9   ;;  %s3599_s24 = sld [smem:[#allocation3_spill]] }
 0x1f5   : > { %p16_p1 = scmp.ge.s32.totalorder %s19_s9, 6   ;;  %s3600_s27 = smov %s2790_s29 }
 0x1f6   : > { %s3601_s28 = smov %s2794_s30  ;;  %s3602_s29 = smov %s3605_s10 }
 0x1f7   :  { %18 = sbr.rel (!%p16_p1) target bundleno = 3 (0x3), region = 103 }
 0x1fa   : > { %s3603_s30 = smov %s3599_s24 }

</bundles_post_ra>
